<compile_context>
chip_gen: v5e
topology: v5e:2x2
jax: 0.10.0
libtpu: 0.0.40
codegen_flags: <defaults>
</compile_context>

<pallas_src>
import jax
import jax.numpy as jnp
from jax.experimental import pallas as pl
from jax.experimental.pallas import tpu as pltpu

LANE = 128   # TPU lane width
COFF = 8     # sublane-aligned column offset of the intermediate's interior in scratch


def _double_conv_kernel(x_ref, w1_ref, b1_ref, w2_ref, b2_ref, o_ref, y1p_ref):
    # x_ref  : (1, H+2, W+2, Cin)   zero-padded input tile, one batch element
    # w1_ref : (9, Cin, Cp)         b1_ref : (1, Cp)
    # w2_ref : (9, Cp,  Cp)         b2_ref : (1, Cp)
    # o_ref  : (1, H, W, Cp)
    # y1p_ref: (H+2, W+2*COFF, Cp)  VMEM scratch: padded intermediate, interior at col COFF.
    H, W, Cp = o_ref.shape[1], o_ref.shape[2], o_ref.shape[3]
    Cin = x_ref.shape[3]
    HW = H * W
    WS = y1p_ref.shape[1]

    # ---- conv1 + bias: 9 single MXU matmuls, M = H*W, K = Cin, N = Cp ----
    acc = jnp.broadcast_to(b1_ref[...], (HW, Cp))
    for ky in range(3):
        for kx in range(3):
            patch = x_ref[0, ky:ky + H, kx:kx + W, :].reshape(HW, Cin)
            acc = acc + jnp.dot(patch, w1_ref[ky * 3 + kx],
                                preferred_element_type=jnp.float32)
    y1 = jnp.maximum(acc, 0.0)                                   # ReLU

    # ---- stage padded intermediate in scratch (interior write is sublane-aligned) ----
    # Zero only the halo bands (aligned full-tile stores); interior is fully overwritten.
    y1p_ref[0, :, :] = jnp.zeros((WS, Cp), jnp.float32)
    y1p_ref[H + 1, :, :] = jnp.zeros((WS, Cp), jnp.float32)
    y1p_ref[1:H + 1, 0:COFF, :] = jnp.zeros((H, COFF, Cp), jnp.float32)
    y1p_ref[1:H + 1, COFF + W:WS, :] = jnp.zeros((H, WS - (COFF + W), Cp), jnp.float32)
    y1p_ref[1:H + 1, COFF:COFF + W, :] = y1.reshape(H, W, Cp)

    # ---- conv2 + bias: 9 single MXU matmuls, M = H*W, K = Cp, N = Cp ----
    acc2 = jnp.broadcast_to(b2_ref[...], (HW, Cp))
    for ky in range(3):
        for kx in range(3):
            c0 = COFF - 1 + kx
            patch = y1p_ref[ky:ky + H, c0:c0 + W, :].reshape(HW, Cp)
            acc2 = acc2 + jnp.dot(patch, w2_ref[ky * 3 + kx],
                                  preferred_element_type=jnp.float32)
    y2 = jnp.maximum(acc2, 0.0)                                  # ReLU

    o_ref[0] = y2.reshape(H, W, Cp).astype(o_ref.dtype)


def double_conv(x_nchw, w1_oihw, b1, w2_oihw, b2):
    N, Cin, H, W = x_nchw.shape
    Cout = w1_oihw.shape[0]
    Hp, Wp = H + 2, W + 2
    Cp = ((Cout + LANE - 1) // LANE) * LANE        # lane-dense channel dim (>= 128)
    Cp = max(Cp, LANE)
    WS = W + 2 * COFF

    # NCHW -> NHWC, zero-pad spatial dims (padding=1)
    x = jnp.transpose(x_nchw, (0, 2, 3, 1)).astype(jnp.float32)
    xp = jnp.pad(x, ((0, 0), (1, 1), (1, 1), (0, 0)))

    # OIHW -> (kh*kw, c_in, c_out); zero-pad channel dims to the lane width.
    # TODO(synk): for v6e/v7x, cast weights/activations to bf16 (f32 MXU accumulation) for ~2x
    # bandwidth/throughput; kept f32 here to match PyTorch numerics exactly.
    w1 = jnp.transpose(w1_oihw, (2, 3, 1, 0)).reshape(9, Cin, Cout).astype(jnp.float32)
    w1 = jnp.pad(w1, ((0, 0), (0, 0), (0, Cp - Cout)))
    w2 = jnp.transpose(w2_oihw, (2, 3, 1, 0)).reshape(9, Cout, Cout).astype(jnp.float32)
    w2 = jnp.pad(w2, ((0, 0), (0, Cp - Cout), (0, Cp - Cout)))
    b1r = jnp.pad(b1.reshape(1, Cout).astype(jnp.float32), ((0, 0), (0, Cp - Cout)))
    b2r = jnp.pad(b2.reshape(1, Cout).astype(jnp.float32), ((0, 0), (0, Cp - Cout)))

    out = pl.pallas_call(
        _double_conv_kernel,
        out_shape=jax.ShapeDtypeStruct((N, H, W, Cp), jnp.float32),
        grid_spec=pltpu.PrefetchScalarGridSpec(
            num_scalar_prefetch=0,
            grid=(N,),
            in_specs=[
                pl.BlockSpec((1, Hp, Wp, Cin), lambda n: (n, 0, 0, 0)),
                pl.BlockSpec((9, Cin, Cp), lambda n: (0, 0, 0)),
                pl.BlockSpec((1, Cp), lambda n: (0, 0)),
                pl.BlockSpec((9, Cp, Cp), lambda n: (0, 0, 0)),
                pl.BlockSpec((1, Cp), lambda n: (0, 0)),
            ],
            out_specs=pl.BlockSpec((1, H, W, Cp), lambda n: (n, 0, 0, 0)),
            scratch_shapes=[pltpu.VMEM((Hp, WS, Cp), jnp.float32)],
        ),
        compiler_params=pltpu.CompilerParams(
            dimension_semantics=("parallel",),   # independent images -> megacore on v7x
        ),
    )(xp, w1, b1r, w2, b2r)

    out = out[..., :Cout]                         # drop lane padding
    return jnp.transpose(out, (0, 3, 1, 2))       # back to NCHW


def _reference(x, w1, b1, w2, b2):
    dn = ('NCHW', 'OIHW', 'NCHW')
    y = jax.lax.conv_general_dilated(x, w1, (1, 1), 'SAME', dimension_numbers=dn)
    y = jnp.maximum(y + b1[None, :, None, None], 0.0)
    y = jax.lax.conv_general_dilated(y, w2, (1, 1), 'SAME', dimension_numbers=dn)
    y = jnp.maximum(y + b2[None, :, None, None], 0.0)
    return y


if __name__ == "__main__":
    N, Cin, Cout, H, W = 2, 4, 8, 16, 16
    key = jax.random.PRNGKey(0)
    k1, k2, k3, k4, kx = jax.random.split(key, 5)

    # deterministic synthetic parameters (PyTorch shapes: weight OIHW, bias (O,))
    w1 = jax.random.normal(k1, (Cout, Cin, 3, 3), jnp.float32) * 0.2
    b1 = jax.random.normal(k2, (Cout,), jnp.float32) * 0.1
    w2 = jax.random.normal(k3, (Cout, Cout, 3, 3), jnp.float32) * 0.2
    b2 = jax.random.normal(k4, (Cout,), jnp.float32) * 0.1
    x = jax.random.normal(kx, (N, Cin, H, W), jnp.float32)

    y = double_conv(x, w1, b1, w2, b2)
    y = jax.block_until_ready(y)

    y_ref = _reference(x, w1, b1, w2, b2)
    assert y.shape == (N, Cout, H, W)
    err = float(jnp.max(jnp.abs(y - y_ref)))
    assert jnp.allclose(y, y_ref, atol=1e-3, rtol=1e-3), err

    print("KERNEL_OK")
</pallas_src>

<mosaic_0001>
module attributes {stable_mosaic.version = 11 : i64} {
  func.func @_double_conv_kernel(%arg0: i32, %arg1: memref<1x18x18x4xf32, #tpu.memory_space<vmem>>, %arg2: memref<9x4x128xf32, #tpu.memory_space<vmem>>, %arg3: memref<1x128xf32, #tpu.memory_space<vmem>>, %arg4: memref<9x128x128xf32, #tpu.memory_space<vmem>>, %arg5: memref<1x128xf32, #tpu.memory_space<vmem>>, %arg6: memref<1x16x16x128xf32, #tpu.memory_space<vmem>>, %arg7: memref<18x32x128xf32, #tpu.memory_space<vmem>>) attributes {dimension_semantics = [#tpu.dimension_semantics<parallel>], iteration_bounds = array<i64: 2>, scalar_prefetch = 0 : i64, scratch_operands = 1 : i64, tpu.core_type = #tpu.core_type<tc>, window_params = [{transform_indices = @transform_0, window_bounds = array<i64: 1, 18, 18, 4>}, {pipeline_mode = #tpu.pipeline_mode<synchronous>, transform_indices = @transform_1, window_bounds = array<i64: 9, 4, 128>}, {pipeline_mode = #tpu.pipeline_mode<synchronous>, transform_indices = @transform_2, window_bounds = array<i64: 1, 128>}, {pipeline_mode = #tpu.pipeline_mode<synchronous>, transform_indices = @transform_3, window_bounds = array<i64: 9, 128, 128>}, {pipeline_mode = #tpu.pipeline_mode<synchronous>, transform_indices = @transform_4, window_bounds = array<i64: 1, 128>}, {transform_indices = @transform_5, window_bounds = array<i64: 1, 16, 16, 128>}]} {
    %c0 = arith.constant 0 : index
    %c0_0 = arith.constant 0 : index
    %0 = vector.load %arg3[%c0, %c0_0] : memref<1x128xf32, #tpu.memory_space<vmem>>, vector<1x128xf32>
    %1 = vector.shape_cast %0 : vector<1x128xf32> to vector<1x128xf32>
    %2 = vector.broadcast %1 : vector<1x128xf32> to vector<256x128xf32>
    %c0_1 = arith.constant 0 : index
    %c0_2 = arith.constant 0 : index
    %c0_3 = arith.constant 0 : index
    %c0_4 = arith.constant 0 : index
    %3 = vector.load %arg1[%c0_1, %c0_2, %c0_3, %c0_4] : memref<1x18x18x4xf32, #tpu.memory_space<vmem>>, vector<1x16x16x4xf32>
    %4 = vector.shape_cast %3 : vector<1x16x16x4xf32> to vector<16x16x4xf32>
    %5 = vector.shape_cast %4 : vector<16x16x4xf32> to vector<256x4xf32>
    %c0_5 = arith.constant 0 : index
    %c0_6 = arith.constant 0 : index
    %c0_7 = arith.constant 0 : index
    %6 = vector.load %arg2[%c0_5, %c0_6, %c0_7] : memref<9x4x128xf32, #tpu.memory_space<vmem>>, vector<1x4x128xf32>
    %7 = vector.shape_cast %6 : vector<1x4x128xf32> to vector<4x128xf32>
    %cst = arith.constant dense<0.000000e+00> : vector<256x128xf32>
    %8 = tpu.matmul %5, %7, %cst {dimension_numbers = #tpu.dot_dimension_numbers<[1], [0], [0], [1], [0, 0, 1, 1], [], []>} : vector<256x4xf32>, vector<4x128xf32>, vector<256x128xf32> -> vector<256x128xf32>
    %9 = arith.addf %2, %8 : vector<256x128xf32>
    %c0_8 = arith.constant 0 : index
    %c0_9 = arith.constant 0 : index
    %c1 = arith.constant 1 : index
    %c0_10 = arith.constant 0 : index
    %10 = vector.load %arg1[%c0_8, %c0_9, %c1, %c0_10] : memref<1x18x18x4xf32, #tpu.memory_space<vmem>>, vector<1x16x16x4xf32>
    %11 = vector.shape_cast %10 : vector<1x16x16x4xf32> to vector<16x16x4xf32>
    %12 = vector.shape_cast %11 : vector<16x16x4xf32> to vector<256x4xf32>
    %c1_11 = arith.constant 1 : index
    %c0_12 = arith.constant 0 : index
    %c0_13 = arith.constant 0 : index
    %13 = vector.load %arg2[%c1_11, %c0_12, %c0_13] : memref<9x4x128xf32, #tpu.memory_space<vmem>>, vector<1x4x128xf32>
    %14 = vector.shape_cast %13 : vector<1x4x128xf32> to vector<4x128xf32>
    %cst_14 = arith.constant dense<0.000000e+00> : vector<256x128xf32>
    %15 = tpu.matmul %12, %14, %cst_14 {dimension_numbers = #tpu.dot_dimension_numbers<[1], [0], [0], [1], [0, 0, 1, 1], [], []>} : vector<256x4xf32>, vector<4x128xf32>, vector<256x128xf32> -> vector<256x128xf32>
    %16 = arith.addf %9, %15 : vector<256x128xf32>
    %c0_15 = arith.constant 0 : index
    %c0_16 = arith.constant 0 : index
    %c2 = arith.constant 2 : index
    %c0_17 = arith.constant 0 : index
    %17 = vector.load %arg1[%c0_15, %c0_16, %c2, %c0_17] : memref<1x18x18x4xf32, #tpu.memory_space<vmem>>, vector<1x16x16x4xf32>
    %18 = vector.shape_cast %17 : vector<1x16x16x4xf32> to vector<16x16x4xf32>
    %19 = vector.shape_cast %18 : vector<16x16x4xf32> to vector<256x4xf32>
    %c2_18 = arith.constant 2 : index
    %c0_19 = arith.constant 0 : index
    %c0_20 = arith.constant 0 : index
    %20 = vector.load %arg2[%c2_18, %c0_19, %c0_20] : memref<9x4x128xf32, #tpu.memory_space<vmem>>, vector<1x4x128xf32>
    %21 = vector.shape_cast %20 : vector<1x4x128xf32> to vector<4x128xf32>
    %cst_21 = arith.constant dense<0.000000e+00> : vector<256x128xf32>
    %22 = tpu.matmul %19, %21, %cst_21 {dimension_numbers = #tpu.dot_dimension_numbers<[1], [0], [0], [1], [0, 0, 1, 1], [], []>} : vector<256x4xf32>, vector<4x128xf32>, vector<256x128xf32> -> vector<256x128xf32>
    %23 = arith.addf %16, %22 : vector<256x128xf32>
    %c0_22 = arith.constant 0 : index
    %c1_23 = arith.constant 1 : index
    %c0_24 = arith.constant 0 : index
    %c0_25 = arith.constant 0 : index
    %24 = vector.load %arg1[%c0_22, %c1_23, %c0_24, %c0_25] : memref<1x18x18x4xf32, #tpu.memory_space<vmem>>, vector<1x16x16x4xf32>
    %25 = vector.shape_cast %24 : vector<1x16x16x4xf32> to vector<16x16x4xf32>
    %26 = vector.shape_cast %25 : vector<16x16x4xf32> to vector<256x4xf32>
    %c3 = arith.constant 3 : index
    %c0_26 = arith.constant 0 : index
    %c0_27 = arith.constant 0 : index
    %27 = vector.load %arg2[%c3, %c0_26, %c0_27] : memref<9x4x128xf32, #tpu.memory_space<vmem>>, vector<1x4x128xf32>
    %28 = vector.shape_cast %27 : vector<1x4x128xf32> to vector<4x128xf32>
    %cst_28 = arith.constant dense<0.000000e+00> : vector<256x128xf32>
    %29 = tpu.matmul %26, %28, %cst_28 {dimension_numbers = #tpu.dot_dimension_numbers<[1], [0], [0], [1], [0, 0, 1, 1], [], []>} : vector<256x4xf32>, vector<4x128xf32>, vector<256x128xf32> -> vector<256x128xf32>
    %30 = arith.addf %23, %29 : vector<256x128xf32>
    %c0_29 = arith.constant 0 : index
    %c1_30 = arith.constant 1 : index
    %c1_31 = arith.constant 1 : index
    %c0_32 = arith.constant 0 : index
    %31 = vector.load %arg1[%c0_29, %c1_30, %c1_31, %c0_32] : memref<1x18x18x4xf32, #tpu.memory_space<vmem>>, vector<1x16x16x4xf32>
    %32 = vector.shape_cast %31 : vector<1x16x16x4xf32> to vector<16x16x4xf32>
    %33 = vector.shape_cast %32 : vector<16x16x4xf32> to vector<256x4xf32>
    %c4 = arith.constant 4 : index
    %c0_33 = arith.constant 0 : index
    %c0_34 = arith.constant 0 : index
    %34 = vector.load %arg2[%c4, %c0_33, %c0_34] : memref<9x4x128xf32, #tpu.memory_space<vmem>>, vector<1x4x128xf32>
    %35 = vector.shape_cast %34 : vector<1x4x128xf32> to vector<4x128xf32>
    %cst_35 = arith.constant dense<0.000000e+00> : vector<256x128xf32>
    %36 = tpu.matmul %33, %35, %cst_35 {dimension_numbers = #tpu.dot_dimension_numbers<[1], [0], [0], [1], [0, 0, 1, 1], [], []>} : vector<256x4xf32>, vector<4x128xf32>, vector<256x128xf32> -> vector<256x128xf32>
    %37 = arith.addf %30, %36 : vector<256x128xf32>
    %c0_36 = arith.constant 0 : index
    %c1_37 = arith.constant 1 : index
    %c2_38 = arith.constant 2 : index
    %c0_39 = arith.constant 0 : index
    %38 = vector.load %arg1[%c0_36, %c1_37, %c2_38, %c0_39] : memref<1x18x18x4xf32, #tpu.memory_space<vmem>>, vector<1x16x16x4xf32>
    %39 = vector.shape_cast %38 : vector<1x16x16x4xf32> to vector<16x16x4xf32>
    %40 = vector.shape_cast %39 : vector<16x16x4xf32> to vector<256x4xf32>
    %c5 = arith.constant 5 : index
    %c0_40 = arith.constant 0 : index
    %c0_41 = arith.constant 0 : index
    %41 = vector.load %arg2[%c5, %c0_40, %c0_41] : memref<9x4x128xf32, #tpu.memory_space<vmem>>, vector<1x4x128xf32>
    %42 = vector.shape_cast %41 : vector<1x4x128xf32> to vector<4x128xf32>
    %cst_42 = arith.constant dense<0.000000e+00> : vector<256x128xf32>
    %43 = tpu.matmul %40, %42, %cst_42 {dimension_numbers = #tpu.dot_dimension_numbers<[1], [0], [0], [1], [0, 0, 1, 1], [], []>} : vector<256x4xf32>, vector<4x128xf32>, vector<256x128xf32> -> vector<256x128xf32>
    %44 = arith.addf %37, %43 : vector<256x128xf32>
    %c0_43 = arith.constant 0 : index
    %c2_44 = arith.constant 2 : index
    %c0_45 = arith.constant 0 : index
    %c0_46 = arith.constant 0 : index
    %45 = vector.load %arg1[%c0_43, %c2_44, %c0_45, %c0_46] : memref<1x18x18x4xf32, #tpu.memory_space<vmem>>, vector<1x16x16x4xf32>
    %46 = vector.shape_cast %45 : vector<1x16x16x4xf32> to vector<16x16x4xf32>
    %47 = vector.shape_cast %46 : vector<16x16x4xf32> to vector<256x4xf32>
    %c6 = arith.constant 6 : index
    %c0_47 = arith.constant 0 : index
    %c0_48 = arith.constant 0 : index
    %48 = vector.load %arg2[%c6, %c0_47, %c0_48] : memref<9x4x128xf32, #tpu.memory_space<vmem>>, vector<1x4x128xf32>
    %49 = vector.shape_cast %48 : vector<1x4x128xf32> to vector<4x128xf32>
    %cst_49 = arith.constant dense<0.000000e+00> : vector<256x128xf32>
    %50 = tpu.matmul %47, %49, %cst_49 {dimension_numbers = #tpu.dot_dimension_numbers<[1], [0], [0], [1], [0, 0, 1, 1], [], []>} : vector<256x4xf32>, vector<4x128xf32>, vector<256x128xf32> -> vector<256x128xf32>
    %51 = arith.addf %44, %50 : vector<256x128xf32>
    %c0_50 = arith.constant 0 : index
    %c2_51 = arith.constant 2 : index
    %c1_52 = arith.constant 1 : index
    %c0_53 = arith.constant 0 : index
    %52 = vector.load %arg1[%c0_50, %c2_51, %c1_52, %c0_53] : memref<1x18x18x4xf32, #tpu.memory_space<vmem>>, vector<1x16x16x4xf32>
    %53 = vector.shape_cast %52 : vector<1x16x16x4xf32> to vector<16x16x4xf32>
    %54 = vector.shape_cast %53 : vector<16x16x4xf32> to vector<256x4xf32>
    %c7 = arith.constant 7 : index
    %c0_54 = arith.constant 0 : index
    %c0_55 = arith.constant 0 : index
    %55 = vector.load %arg2[%c7, %c0_54, %c0_55] : memref<9x4x128xf32, #tpu.memory_space<vmem>>, vector<1x4x128xf32>
    %56 = vector.shape_cast %55 : vector<1x4x128xf32> to vector<4x128xf32>
    %cst_56 = arith.constant dense<0.000000e+00> : vector<256x128xf32>
    %57 = tpu.matmul %54, %56, %cst_56 {dimension_numbers = #tpu.dot_dimension_numbers<[1], [0], [0], [1], [0, 0, 1, 1], [], []>} : vector<256x4xf32>, vector<4x128xf32>, vector<256x128xf32> -> vector<256x128xf32>
    %58 = arith.addf %51, %57 : vector<256x128xf32>
    %c0_57 = arith.constant 0 : index
    %c2_58 = arith.constant 2 : index
    %c2_59 = arith.constant 2 : index
    %c0_60 = arith.constant 0 : index
    %59 = vector.load %arg1[%c0_57, %c2_58, %c2_59, %c0_60] : memref<1x18x18x4xf32, #tpu.memory_space<vmem>>, vector<1x16x16x4xf32>
    %60 = vector.shape_cast %59 : vector<1x16x16x4xf32> to vector<16x16x4xf32>
    %61 = vector.shape_cast %60 : vector<16x16x4xf32> to vector<256x4xf32>
    %c8 = arith.constant 8 : index
    %c0_61 = arith.constant 0 : index
    %c0_62 = arith.constant 0 : index
    %62 = vector.load %arg2[%c8, %c0_61, %c0_62] : memref<9x4x128xf32, #tpu.memory_space<vmem>>, vector<1x4x128xf32>
    %63 = vector.shape_cast %62 : vector<1x4x128xf32> to vector<4x128xf32>
    %cst_63 = arith.constant dense<0.000000e+00> : vector<256x128xf32>
    %64 = tpu.matmul %61, %63, %cst_63 {dimension_numbers = #tpu.dot_dimension_numbers<[1], [0], [0], [1], [0, 0, 1, 1], [], []>} : vector<256x4xf32>, vector<4x128xf32>, vector<256x128xf32> -> vector<256x128xf32>
    %65 = arith.addf %58, %64 : vector<256x128xf32>
    %cst_64 = arith.constant 0.000000e+00 : f32
    %66 = vector.broadcast %cst_64 : f32 to vector<256x128xf32>
    %67 = arith.maximumf %65, %66 : vector<256x128xf32>
    %cst_65 = arith.constant 0.000000e+00 : f32
    %68 = vector.broadcast %cst_65 : f32 to vector<32x128xf32>
    %c0_66 = arith.constant 0 : index
    %c0_67 = arith.constant 0 : index
    %c0_68 = arith.constant 0 : index
    %69 = vector.load %arg7[%c0_66, %c0_67, %c0_68] : memref<18x32x128xf32, #tpu.memory_space<vmem>>, vector<1x32x128xf32>
    %70 = vector.shape_cast %69 : vector<1x32x128xf32> to vector<32x128xf32>
    %71 = vector.shape_cast %68 : vector<32x128xf32> to vector<1x32x128xf32>
    tpu.vector_store %arg7[%c0_66, %c0_67, %c0_68], %71 {strides = array<i32>} : memref<18x32x128xf32, #tpu.memory_space<vmem>>, vector<1x32x128xf32>,
    %cst_69 = arith.constant 0.000000e+00 : f32
    %72 = vector.broadcast %cst_69 : f32 to vector<32x128xf32>
    %c17 = arith.constant 17 : index
    %c0_70 = arith.constant 0 : index
    %c0_71 = arith.constant 0 : index
    %73 = vector.load %arg7[%c17, %c0_70, %c0_71] : memref<18x32x128xf32, #tpu.memory_space<vmem>>, vector<1x32x128xf32>
    %74 = vector.shape_cast %73 : vector<1x32x128xf32> to vector<32x128xf32>
    %75 = vector.shape_cast %72 : vector<32x128xf32> to vector<1x32x128xf32>
    tpu.vector_store %arg7[%c17, %c0_70, %c0_71], %75 {strides = array<i32>} : memref<18x32x128xf32, #tpu.memory_space<vmem>>, vector<1x32x128xf32>,
    %cst_72 = arith.constant 0.000000e+00 : f32
    %76 = vector.broadcast %cst_72 : f32 to vector<16x8x128xf32>
    %c1_73 = arith.constant 1 : index
    %c0_74 = arith.constant 0 : index
    %c0_75 = arith.constant 0 : index
    %77 = vector.load %arg7[%c1_73, %c0_74, %c0_75] : memref<18x32x128xf32, #tpu.memory_space<vmem>>, vector<16x8x128xf32>
    tpu.vector_store %arg7[%c1_73, %c0_74, %c0_75], %76 {strides = array<i32>} : memref<18x32x128xf32, #tpu.memory_space<vmem>>, vector<16x8x128xf32>,
    %cst_76 = arith.constant 0.000000e+00 : f32
    %78 = vector.broadcast %cst_76 : f32 to vector<16x8x128xf32>
    %c1_77 = arith.constant 1 : index
    %c24 = arith.constant 24 : index
    %c0_78 = arith.constant 0 : index
    %79 = vector.load %arg7[%c1_77, %c24, %c0_78] : memref<18x32x128xf32, #tpu.memory_space<vmem>>, vector<16x8x128xf32>
    tpu.vector_store %arg7[%c1_77, %c24, %c0_78], %78 {strides = array<i32>} : memref<18x32x128xf32, #tpu.memory_space<vmem>>, vector<16x8x128xf32>,
    %80 = vector.shape_cast %67 : vector<256x128xf32> to vector<16x16x128xf32>
    %c1_79 = arith.constant 1 : index
    %c8_80 = arith.constant 8 : index
    %c0_81 = arith.constant 0 : index
    %81 = vector.load %arg7[%c1_79, %c8_80, %c0_81] : memref<18x32x128xf32, #tpu.memory_space<vmem>>, vector<16x16x128xf32>
    tpu.vector_store %arg7[%c1_79, %c8_80, %c0_81], %80 {strides = array<i32>} : memref<18x32x128xf32, #tpu.memory_space<vmem>>, vector<16x16x128xf32>,
    %c0_82 = arith.constant 0 : index
    %c0_83 = arith.constant 0 : index
    %82 = vector.load %arg5[%c0_82, %c0_83] : memref<1x128xf32, #tpu.memory_space<vmem>>, vector<1x128xf32>
    %83 = vector.shape_cast %82 : vector<1x128xf32> to vector<1x128xf32>
    %84 = vector.broadcast %83 : vector<1x128xf32> to vector<256x128xf32>
    %c0_84 = arith.constant 0 : index
    %c7_85 = arith.constant 7 : index
    %c0_86 = arith.constant 0 : index
    %85 = vector.load %arg7[%c0_84, %c7_85, %c0_86] : memref<18x32x128xf32, #tpu.memory_space<vmem>>, vector<16x16x128xf32>
    %86 = vector.shape_cast %85 : vector<16x16x128xf32> to vector<256x128xf32>
    %c0_87 = arith.constant 0 : index
    %c0_88 = arith.constant 0 : index
    %c0_89 = arith.constant 0 : index
    %87 = vector.load %arg4[%c0_87, %c0_88, %c0_89] : memref<9x128x128xf32, #tpu.memory_space<vmem>>, vector<1x128x128xf32>
    %88 = vector.shape_cast %87 : vector<1x128x128xf32> to vector<128x128xf32>
    %cst_90 = arith.constant dense<0.000000e+00> : vector<256x128xf32>
    %89 = tpu.matmul %86, %88, %cst_90 {dimension_numbers = #tpu.dot_dimension_numbers<[1], [0], [0], [1], [0, 0, 1, 1], [], []>} : vector<256x128xf32>, vector<128x128xf32>, vector<256x128xf32> -> vector<256x128xf32>
    %90 = arith.addf %84, %89 : vector<256x128xf32>
    %c0_91 = arith.constant 0 : index
    %c8_92 = arith.constant 8 : index
    %c0_93 = arith.constant 0 : index
    %91 = vector.load %arg7[%c0_91, %c8_92, %c0_93] : memref<18x32x128xf32, #tpu.memory_space<vmem>>, vector<16x16x128xf32>
    %92 = vector.shape_cast %91 : vector<16x16x128xf32> to vector<256x128xf32>
    %c1_94 = arith.constant 1 : index
    %c0_95 = arith.constant 0 : index
    %c0_96 = arith.constant 0 : index
    %93 = vector.load %arg4[%c1_94, %c0_95, %c0_96] : memref<9x128x128xf32, #tpu.memory_space<vmem>>, vector<1x128x128xf32>
    %94 = vector.shape_cast %93 : vector<1x128x128xf32> to vector<128x128xf32>
    %cst_97 = arith.constant dense<0.000000e+00> : vector<256x128xf32>
    %95 = tpu.matmul %92, %94, %cst_97 {dimension_numbers = #tpu.dot_dimension_numbers<[1], [0], [0], [1], [0, 0, 1, 1], [], []>} : vector<256x128xf32>, vector<128x128xf32>, vector<256x128xf32> -> vector<256x128xf32>
    %96 = arith.addf %90, %95 : vector<256x128xf32>
    %c0_98 = arith.constant 0 : index
    %c9 = arith.constant 9 : index
    %c0_99 = arith.constant 0 : index
    %97 = vector.load %arg7[%c0_98, %c9, %c0_99] : memref<18x32x128xf32, #tpu.memory_space<vmem>>, vector<16x16x128xf32>
    %98 = vector.shape_cast %97 : vector<16x16x128xf32> to vector<256x128xf32>
    %c2_100 = arith.constant 2 : index
    %c0_101 = arith.constant 0 : index
    %c0_102 = arith.constant 0 : index
    %99 = vector.load %arg4[%c2_100, %c0_101, %c0_102] : memref<9x128x128xf32, #tpu.memory_space<vmem>>, vector<1x128x128xf32>
    %100 = vector.shape_cast %99 : vector<1x128x128xf32> to vector<128x128xf32>
    %cst_103 = arith.constant dense<0.000000e+00> : vector<256x128xf32>
    %101 = tpu.matmul %98, %100, %cst_103 {dimension_numbers = #tpu.dot_dimension_numbers<[1], [0], [0], [1], [0, 0, 1, 1], [], []>} : vector<256x128xf32>, vector<128x128xf32>, vector<256x128xf32> -> vector<256x128xf32>
    %102 = arith.addf %96, %101 : vector<256x128xf32>
    %c1_104 = arith.constant 1 : index
    %c7_105 = arith.constant 7 : index
    %c0_106 = arith.constant 0 : index
    %103 = vector.load %arg7[%c1_104, %c7_105, %c0_106] : memref<18x32x128xf32, #tpu.memory_space<vmem>>, vector<16x16x128xf32>
    %104 = vector.shape_cast %103 : vector<16x16x128xf32> to vector<256x128xf32>
    %c3_107 = arith.constant 3 : index
    %c0_108 = arith.constant 0 : index
    %c0_109 = arith.constant 0 : index
    %105 = vector.load %arg4[%c3_107, %c0_108, %c0_109] : memref<9x128x128xf32, #tpu.memory_space<vmem>>, vector<1x128x128xf32>
    %106 = vector.shape_cast %105 : vector<1x128x128xf32> to vector<128x128xf32>
    %cst_110 = arith.constant dense<0.000000e+00> : vector<256x128xf32>
    %107 = tpu.matmul %104, %106, %cst_110 {dimension_numbers = #tpu.dot_dimension_numbers<[1], [0], [0], [1], [0, 0, 1, 1], [], []>} : vector<256x128xf32>, vector<128x128xf32>, vector<256x128xf32> -> vector<256x128xf32>
    %108 = arith.addf %102, %107 : vector<256x128xf32>
    %c1_111 = arith.constant 1 : index
    %c8_112 = arith.constant 8 : index
    %c0_113 = arith.constant 0 : index
    %109 = vector.load %arg7[%c1_111, %c8_112, %c0_113] : memref<18x32x128xf32, #tpu.memory_space<vmem>>, vector<16x16x128xf32>
    %110 = vector.shape_cast %109 : vector<16x16x128xf32> to vector<256x128xf32>
    %c4_114 = arith.constant 4 : index
    %c0_115 = arith.constant 0 : index
    %c0_116 = arith.constant 0 : index
    %111 = vector.load %arg4[%c4_114, %c0_115, %c0_116] : memref<9x128x128xf32, #tpu.memory_space<vmem>>, vector<1x128x128xf32>
    %112 = vector.shape_cast %111 : vector<1x128x128xf32> to vector<128x128xf32>
    %cst_117 = arith.constant dense<0.000000e+00> : vector<256x128xf32>
    %113 = tpu.matmul %110, %112, %cst_117 {dimension_numbers = #tpu.dot_dimension_numbers<[1], [0], [0], [1], [0, 0, 1, 1], [], []>} : vector<256x128xf32>, vector<128x128xf32>, vector<256x128xf32> -> vector<256x128xf32>
    %114 = arith.addf %108, %113 : vector<256x128xf32>
    %c1_118 = arith.constant 1 : index
    %c9_119 = arith.constant 9 : index
    %c0_120 = arith.constant 0 : index
    %115 = vector.load %arg7[%c1_118, %c9_119, %c0_120] : memref<18x32x128xf32, #tpu.memory_space<vmem>>, vector<16x16x128xf32>
    %116 = vector.shape_cast %115 : vector<16x16x128xf32> to vector<256x128xf32>
    %c5_121 = arith.constant 5 : index
    %c0_122 = arith.constant 0 : index
    %c0_123 = arith.constant 0 : index
    %117 = vector.load %arg4[%c5_121, %c0_122, %c0_123] : memref<9x128x128xf32, #tpu.memory_space<vmem>>, vector<1x128x128xf32>
    %118 = vector.shape_cast %117 : vector<1x128x128xf32> to vector<128x128xf32>
    %cst_124 = arith.constant dense<0.000000e+00> : vector<256x128xf32>
    %119 = tpu.matmul %116, %118, %cst_124 {dimension_numbers = #tpu.dot_dimension_numbers<[1], [0], [0], [1], [0, 0, 1, 1], [], []>} : vector<256x128xf32>, vector<128x128xf32>, vector<256x128xf32> -> vector<256x128xf32>
    %120 = arith.addf %114, %119 : vector<256x128xf32>
    %c2_125 = arith.constant 2 : index
    %c7_126 = arith.constant 7 : index
    %c0_127 = arith.constant 0 : index
    %121 = vector.load %arg7[%c2_125, %c7_126, %c0_127] : memref<18x32x128xf32, #tpu.memory_space<vmem>>, vector<16x16x128xf32>
    %122 = vector.shape_cast %121 : vector<16x16x128xf32> to vector<256x128xf32>
    %c6_128 = arith.constant 6 : index
    %c0_129 = arith.constant 0 : index
    %c0_130 = arith.constant 0 : index
    %123 = vector.load %arg4[%c6_128, %c0_129, %c0_130] : memref<9x128x128xf32, #tpu.memory_space<vmem>>, vector<1x128x128xf32>
    %124 = vector.shape_cast %123 : vector<1x128x128xf32> to vector<128x128xf32>
    %cst_131 = arith.constant dense<0.000000e+00> : vector<256x128xf32>
    %125 = tpu.matmul %122, %124, %cst_131 {dimension_numbers = #tpu.dot_dimension_numbers<[1], [0], [0], [1], [0, 0, 1, 1], [], []>} : vector<256x128xf32>, vector<128x128xf32>, vector<256x128xf32> -> vector<256x128xf32>
    %126 = arith.addf %120, %125 : vector<256x128xf32>
    %c2_132 = arith.constant 2 : index
    %c8_133 = arith.constant 8 : index
    %c0_134 = arith.constant 0 : index
    %127 = vector.load %arg7[%c2_132, %c8_133, %c0_134] : memref<18x32x128xf32, #tpu.memory_space<vmem>>, vector<16x16x128xf32>
    %128 = vector.shape_cast %127 : vector<16x16x128xf32> to vector<256x128xf32>
    %c7_135 = arith.constant 7 : index
    %c0_136 = arith.constant 0 : index
    %c0_137 = arith.constant 0 : index
    %129 = vector.load %arg4[%c7_135, %c0_136, %c0_137] : memref<9x128x128xf32, #tpu.memory_space<vmem>>, vector<1x128x128xf32>
    %130 = vector.shape_cast %129 : vector<1x128x128xf32> to vector<128x128xf32>
    %cst_138 = arith.constant dense<0.000000e+00> : vector<256x128xf32>
    %131 = tpu.matmul %128, %130, %cst_138 {dimension_numbers = #tpu.dot_dimension_numbers<[1], [0], [0], [1], [0, 0, 1, 1], [], []>} : vector<256x128xf32>, vector<128x128xf32>, vector<256x128xf32> -> vector<256x128xf32>
    %132 = arith.addf %126, %131 : vector<256x128xf32>
    %c2_139 = arith.constant 2 : index
    %c9_140 = arith.constant 9 : index
    %c0_141 = arith.constant 0 : index
    %133 = vector.load %arg7[%c2_139, %c9_140, %c0_141] : memref<18x32x128xf32, #tpu.memory_space<vmem>>, vector<16x16x128xf32>
    %134 = vector.shape_cast %133 : vector<16x16x128xf32> to vector<256x128xf32>
    %c8_142 = arith.constant 8 : index
    %c0_143 = arith.constant 0 : index
    %c0_144 = arith.constant 0 : index
    %135 = vector.load %arg4[%c8_142, %c0_143, %c0_144] : memref<9x128x128xf32, #tpu.memory_space<vmem>>, vector<1x128x128xf32>
    %136 = vector.shape_cast %135 : vector<1x128x128xf32> to vector<128x128xf32>
    %cst_145 = arith.constant dense<0.000000e+00> : vector<256x128xf32>
    %137 = tpu.matmul %134, %136, %cst_145 {dimension_numbers = #tpu.dot_dimension_numbers<[1], [0], [0], [1], [0, 0, 1, 1], [], []>} : vector<256x128xf32>, vector<128x128xf32>, vector<256x128xf32> -> vector<256x128xf32>
    %138 = arith.addf %132, %137 : vector<256x128xf32>
    %cst_146 = arith.constant 0.000000e+00 : f32
    %139 = vector.broadcast %cst_146 : f32 to vector<256x128xf32>
    %140 = arith.maximumf %138, %139 : vector<256x128xf32>
    %141 = vector.shape_cast %140 : vector<256x128xf32> to vector<16x16x128xf32>
    %c0_147 = arith.constant 0 : index
    %c0_148 = arith.constant 0 : index
    %c0_149 = arith.constant 0 : index
    %c0_150 = arith.constant 0 : index
    %142 = vector.load %arg6[%c0_147, %c0_148, %c0_149, %c0_150] : memref<1x16x16x128xf32, #tpu.memory_space<vmem>>, vector<1x16x16x128xf32>
    %143 = vector.shape_cast %142 : vector<1x16x16x128xf32> to vector<16x16x128xf32>
    %144 = vector.shape_cast %141 : vector<16x16x128xf32> to vector<1x16x16x128xf32>
    tpu.vector_store %arg6[%c0_147, %c0_148, %c0_149, %c0_150], %144 {strides = array<i32>} : memref<1x16x16x128xf32, #tpu.memory_space<vmem>>, vector<1x16x16x128xf32>,
    return
  }
  func.func @transform_0(%arg0: i32) -> (i32, i32, i32, i32) {
    %c0_i32 = arith.constant 0 : i32
    %c0_i32_0 = arith.constant 0 : i32
    %c0_i32_1 = arith.constant 0 : i32
    %c0_i32_2 = arith.constant 0 : i32
    return %arg0, %c0_i32, %c0_i32_0, %c0_i32_1 : i32, i32, i32, i32
  }
  func.func @transform_1(%arg0: i32) -> (i32, i32, i32) {
    %c0_i32 = arith.constant 0 : i32
    %c0_i32_0 = arith.constant 0 : i32
    %c0_i32_1 = arith.constant 0 : i32
    %c0_i32_2 = arith.constant 0 : i32
    return %c0_i32, %c0_i32_0, %c0_i32_1 : i32, i32, i32
  }
  func.func @transform_2(%arg0: i32) -> (i32, i32) {
    %c0_i32 = arith.constant 0 : i32
    %c0_i32_0 = arith.constant 0 : i32
    %c0_i32_1 = arith.constant 0 : i32
    return %c0_i32, %c0_i32_0 : i32, i32
  }
  func.func @transform_3(%arg0: i32) -> (i32, i32, i32) {
    %c0_i32 = arith.constant 0 : i32
    %c0_i32_0 = arith.constant 0 : i32
    %c0_i32_1 = arith.constant 0 : i32
    %c0_i32_2 = arith.constant 0 : i32
    return %c0_i32, %c0_i32_0, %c0_i32_1 : i32, i32, i32
  }
  func.func @transform_4(%arg0: i32) -> (i32, i32) {
    %c0_i32 = arith.constant 0 : i32
    %c0_i32_0 = arith.constant 0 : i32
    %c0_i32_1 = arith.constant 0 : i32
    return %c0_i32, %c0_i32_0 : i32, i32
  }
  func.func @transform_5(%arg0: i32) -> (i32, i32, i32, i32) {
    %c0_i32 = arith.constant 0 : i32
    %c0_i32_0 = arith.constant 0 : i32
    %c0_i32_1 = arith.constant 0 : i32
    %c0_i32_2 = arith.constant 0 : i32
    return %arg0, %c0_i32, %c0_i32_0, %c0_i32_1 : i32, i32, i32, i32
  }
}

</mosaic_0001>

<bundles_post_ra>
// kernel: tpu_custom_call.1
= control target key start
LH: loop header
LB: loop body
LE: loop exit
PB: predicated region body
PF: predicated region fallthrough
CT: control target
= control target key end

     0   :  { %10 = vsyncpa [#allocation4], 0  ;;  %s7755_s0 = inlined_call_operand.vmem [shape: f32[2,18,18,4], index: 0, kind: input, shape index: {}]   ;;  %s7756_s1 = inlined_call_operand.vmem [shape: f32[9,4,128], index: 1, kind: input, shape index: {}]   ;;  %s7757_s2 = inlined_call_operand.vmem [shape: f32[1,128], index: 2, kind: input, shape index: {}]   ;;  %s7758_s3 = inlined_call_operand.hbm [shape: f32[9,128,128], index: 3, kind: input, shape index: {}]   ;;  %s7759_s4 = inlined_call_operand.vmem [shape: f32[1,128], index: 4, kind: input, shape index: {}]   ;;  %s7760_s5 = inlined_call_operand.hbm [shape: f32[2,16,16,128], index: 5, kind: output, shape index: {}]  }
   0x1   :  { %11 = vsyncpa [#allocation5], 0 }
   0x2   :  { %13 = vsyncpa [#allocation5 + $0x1], 0  ;;  %s5466_s18 = smov 0   ;;  %s5468_s19 = smov 0  }
   0x3   :  { %s5470_s20 = smov 0   ;;  %s5472_s21 = smov 0  }
   0x4 LB: > { %s5487_s22 = sadd.s32 4294967295, %s5428_s21   ;;  %s4759_s23 = sadd.s32 4294967294, %s5428_s21   ;;  %s5428_s21 = sphi %s5472_s21, %s7997_s21   ;;  %s5424_s20 = sphi %s5470_s20, %s7996_s20   ;;  %s5420_s19 = sphi %s5468_s19, %s7995_s19   ;;  %s5416_s18 = sphi %s5466_s18, %s7994_s18  }
   0x5   : > { %s5491_s24 = sadd.s32 1, %s5428_s21   ;;  %s136_s25 = sadd.s32 1, %s5424_s20 }
   0x6   : > { %s133_s26 = ssub.s32 %s5428_s21, %s5491_s24  ;;  %p146_p0 = scmp.ne.s32.totalorder %s5424_s20, %s5420_s19 }
   0x7   : > { %p134_p1 = scmp.eq.s32.totalorder %s133_s26, 0  ;;  %p147_p2 = scmp.eq.s32.totalorder %s5487_s22, 1 }
   0x8   : > { %p152_p3 = scmp.ne.s32.totalorder %s5420_s19, %s5416_s18  ;;  %p153_p4 = scmp.eq.s32.totalorder %s4759_s23, 1 }
   0x9   : > { %s5502_s27 = scalar_select %p134_p1, %s5424_s20, %s136_s25  }
   0xa   : > { %p5504_p5 = por %p147_p2, %p146_p0  ;;  %p5508_p6 = por %p153_p4, %p152_p3 }
   0xb   : > { %p4760_p7 = scmp.ge.s32.totalorder %s5428_s21, 1  ;;  %p160_p8 = scmp.lt.s32.totalorder %s5428_s21, 3 }
   0xc   : > { %p5287_p9 = scmp.eq.s32.totalorder %s5487_s22, 0  ;;  %s177_s7 = sshll.u32 %s7758_s3, 4  ;;  %s178_s7 = int_to_ptr.hbm [resolvable:$true] %s177_s7 }
   0xd   : > { %p161_p10 = pnand %p4760_p7, %p160_p8  ;;  %s5430_s8 = smov [#allocation3]  }
   0xe   : > { %s179_s9 = sshll.u32 %s5430_s8, 4  ;;  %s5431_s10 = smov 128   ;;  %s180_s9 = int_to_ptr.vmem [resolvable:$true] %s179_s9 }
   0xf   : > { %p5279_p11 = pneg %p161_p10  ;;  %s5432_s11 = smov 8  }
  0x10   : > { %206 = sbr.rel (%p161_p10) target bundleno = 1441 (0x5a1), region = 40 }
  0x11   : > { %p5280_p12 = pnand %p5287_p9, %p5279_p11 }
  0x13   : > { %5282 = dma.hbm_to_vmem [thread:$0]  (!%p5280_p12), %s178_s7, 18432, %s180_s9, [#allocation4], %s5431_s10, %s5431_s10, %s5432_s11  }
  0x15   : > { %5407 = dma.done.wait (%p5287_p9), [#allocation4], 18432  }
  0x16   : > { %5409 = vsyncadd (%p5287_p9), [#allocation4], 4294948864  ;;  %p235_p13 = scmp.lt.s32.totalorder %s5487_s22, 1  ;;  %vm374_vm0 = vcmask 1043456   ;;  %vm277_vm1 = vcmask 31744   ;;  %s232_s9 = sand.u32 1, %s5420_s19  }
  0x17   : > { %v276_v0 = vld [vmem:[%s7756_s1] sm:$0xf]  ;;  %v4800_v1 = vld [vmem:[%s7756_s1 + $0x4] sm:$0xf]  ;;  %v4834_v5 = vld [vmem:[%s7756_s1 + $0x8] sm:$0xf] }
  0x18   : > { %s236_s12 = scalar_select %p235_p13, %s5487_s22, 1  ;;  %4767 = vmatpush.msk.msra.mxu0 %vm374_vm0, %v276_v0  ;;  %5270 = vmatpush.msk.msra.mxu2 %vm374_vm0, %v276_v0  ;;  %v4900_v6 = vld [vmem:[%s7756_s1 + $0xc] sm:$0xf]  ;;  %v4966_v7 = vld [vmem:[%s7756_s1 + $0x10] sm:$0xf] }
  0x19   : > { %5271 = vmatpush.msk.msra.mxu3 %vm374_vm0, %v4800_v1  ;;  %4801 = vmatpush.msk.msra.mxu1 %vm374_vm0, %v4800_v1  ;;  %v5098_v57 = vld [vmem:[%s7756_s1 + $0x18] sm:$0xf]  ;;  %v5164_v58 = vld [vmem:[%s7756_s1 + $0x1c] sm:$0xf]  ;;  %v5032_v62 = vld [vmem:[%s7756_s1 + $0x14] sm:$0xf] }
  0x1a   : > { %s5272_s13 = smul.u32 432, %s236_s12  ;;  %4835 = vmatpush.msk.msrb.mxu2 %vm374_vm0, %v4834_v5  ;;  %4967 = vmatpush.msk.msrb.mxu0 %vm374_vm0, %v4966_v7  ;;  %v5230_v0 = vld [vmem:[%s7756_s1 + $0x20] sm:$0xf]  ;;  %s4765_s10 = sshll.u32 %s232_s9, 8 }
  0x1b   : > { %4901 = vmatpush.msk.msrb.mxu3 %vm374_vm0, %v4900_v6  ;;  %5033 = vmatpush.msk.msrb.mxu1 %vm374_vm0, %v5032_v62  ;;  %v5885_v62 = vld [vmem:[%s7757_s2] ss:$0 sm:$0xff]  ;;  %s7619_s11 = scalar_lea.vmem [#allocation6], %s4765_s10  ;;  %s5269_s12 = sshll.u32 %s5487_s22, 8 }
  0x1c   : > { %s5529_s16 = scalar_lea.vmem %s7755_s0, %s5272_s13  ;;  %s4681_s15 = scalar_lea.hbm %s7760_s5, %s5269_s12 }
  0x1d   : > { %v244_v2 = vld [vmem:[%s5529_s16] sm:$0xff]  ;;  %v245_v9 = vld [vmem:[%s5529_s16 + $0x8] sm:$0xff]  ;;  %v5582_v13 = vld [vmem:[%s5529_s16 + $0x18] sm:$0xff]  ;;  %s4682_s17 = sshll.u32 %s7619_s11, 4  ;;  %s4684_s23 = sshll.u32 %s4681_s15, 4  ;;  %s4683_s17 = int_to_ptr.vmem [resolvable:$true] %s4682_s17  ;;  %s4685_s23 = int_to_ptr.hbm [resolvable:$true] %s4684_s23 }
  0x1e   : > { %v5541_v3 = vld [vmem:[%s5529_s16 + $0xc0] sm:$0xff]  ;;  %4768 = vmatmul.msk.f32.vlgmr.msra.gmra.mxu0 %vm277_vm1, %v244_v2  ;;  %v5569_v10 = vld [vmem:[%s5529_s16 + $0xc8] sm:$0xff]  ;;  %v5585_v14 = vld [vmem:[%s5529_s16 + $0xd8] sm:$0xff]  ;;  %s4670_s22 = scalar_lea.sflag [#allocation5], %s232_s9  ;;  %s5376_s25 = sshra.s32 %s4685_s23, 4  ;;  %s5377_s25 = int_to_ptr.hbm [resolvable:$true] %s5376_s25 }
  0x1f   : > { %v5544_v4 = vld [vmem:[%s5529_s16 + $0xc1] sm:$0xff]  ;;  %4784 = vmatmul.msk.f32.vlgmr.msra.gmra.mxu2 %vm277_vm1, %v5541_v3  ;;  %v5572_v11 = vld [vmem:[%s5529_s16 + $0xc9] sm:$0xff]  ;;  %v5588_v15 = vld [vmem:[%s5529_s16 + $0xd9] sm:$0xff]  ;;  %5231 = vmatpush.msk.msra.mxu0 %vm374_vm0, %v5230_v0  ;;  %s5378_s26 = scalar_lea.hbm %s5377_s25, 256  ;;  %s5382_s6 = scalar_lea.hbm %s7760_s5, 512 }
  0x20   : > { %4818 = vmatmul.msk.f32.vlgmr.msra.gmra.mxu3 %vm277_vm1, %v5544_v4  ;;  %v523_v8 = vld [vmem:[%s5529_s16 + $0x1] sm:$0xff]  ;;  %v524_v12 = vld [vmem:[%s5529_s16 + $0x9] sm:$0xff]  ;;  %v5597_v16 = vld [vmem:[%s5529_s16 + $0x19] sm:$0xff]  ;;  %5099 = vmatpush.msk.msra.mxu2 %vm374_vm0, %v5098_v57  ;;  %p5379_p0 = scmp.ne.s32.totalorder %s5377_s25, %s5378_s26  ;;  %p5383_p3 = scmp.lt.s32.totalorder %s5377_s25, %s7760_s5 }
  0x21   : > { %4802 = vmatmul.msk.f32.vlgmr.msra.gmra.mxu1 %vm277_vm1, %v523_v8  ;;  %v5602_v17 = vld [vmem:[%s5529_s16 + $0x20] sm:$0xff]  ;;  %v5622_v21 = vld [vmem:[%s5529_s16 + $0x30] sm:$0xff]  ;;  %v5642_v25 = vld [vmem:[%s5529_s16 + $0x38] sm:$0xff]  ;;  %5165 = vmatpush.msk.msra.mxu3 %vm374_vm0, %v5164_v58  ;;  %p5384_p4 = scmp.lt.s32.totalorder %s5382_s6, %s5378_s26 }
  0x22   : > { %v5605_v18 = vld [vmem:[%s5529_s16 + $0xe0] sm:$0xff]  ;;  %v5625_v22 = vld [vmem:[%s5529_s16 + $0xf0] sm:$0xff]  ;;  %v5645_v26 = vld [vmem:[%s5529_s16 + $0xf8] sm:$0xff]  ;;  %p5380_p1 = pnand %p5379_p0, %p5504_p5 }
  0x23   : > { %v5608_v19 = vld [vmem:[%s5529_s16 + $0xe1] sm:$0xff]  ;;  %v5628_v23 = vld [vmem:[%s5529_s16 + $0xf1] sm:$0xff]  ;;  %v5648_v27 = vld [vmem:[%s5529_s16 + $0xf9] sm:$0xff]  ;;  %p5385_p7 = por %p5384_p4, %p5383_p3 }
  0x24   : > { %v5617_v20 = vld [vmem:[%s5529_s16 + $0x21] sm:$0xff]  ;;  %v5637_v24 = vld [vmem:[%s5529_s16 + $0x31] sm:$0xff]  ;;  %v5657_v28 = vld [vmem:[%s5529_s16 + $0x39] sm:$0xff]  ;;  %p5381_p2 = pneg %p5380_p1 }
  0x25   : > { %v5662_v29 = vld [vmem:[%s5529_s16 + $0x48] sm:$0xff]  ;;  %v5682_v33 = vld [vmem:[%s5529_s16 + $0x50] sm:$0xff]  ;;  %v5702_v37 = vld [vmem:[%s5529_s16 + $0x60] sm:$0xff] }
  0x26   : > { %4769 = vmatmul.msk.f32.gmra.mxu0 %vm277_vm1, %v245_v9  ;;  %v5665_v30 = vld [vmem:[%s5529_s16 + $0x108] sm:$0xff]  ;;  %v5685_v34 = vld [vmem:[%s5529_s16 + $0x110] sm:$0xff]  ;;  %v5705_v38 = vld [vmem:[%s5529_s16 + $0x120] sm:$0xff]  ;;  %p5386_p8 = pnand %p5385_p7, %p5381_p2 }
  0x27   : > { %4785 = vmatmul.msk.f32.gmra.mxu2 %vm277_vm1, %v5569_v10  ;;  %v5668_v31 = vld [vmem:[%s5529_s16 + $0x109] sm:$0xff]  ;;  %v5688_v35 = vld [vmem:[%s5529_s16 + $0x111] sm:$0xff]  ;;  %v5708_v39 = vld [vmem:[%s5529_s16 + $0x121] sm:$0xff] }
  0x28   : > { %4819 = vmatmul.msk.f32.gmra.mxu3 %vm277_vm1, %v5572_v11  ;;  %v5677_v32 = vld [vmem:[%s5529_s16 + $0x49] sm:$0xff]  ;;  %v5697_v36 = vld [vmem:[%s5529_s16 + $0x51] sm:$0xff]  ;;  %v5717_v40 = vld [vmem:[%s5529_s16 + $0x61] sm:$0xff] }
  0x29   : > { %4803 = vmatmul.msk.f32.gmra.mxu1 %vm277_vm1, %v524_v12  ;;  %v5722_v41 = vld [vmem:[%s5529_s16 + $0x68] sm:$0xff]  ;;  %v5742_v45 = vld [vmem:[%s5529_s16 + $0x78] sm:$0xff]  ;;  %v5762_v49 = vld [vmem:[%s5529_s16 + $0x80] sm:$0xff] }
  0x2a   : > { %v5725_v42 = vld [vmem:[%s5529_s16 + $0x128] sm:$0xff]  ;;  %v5745_v46 = vld [vmem:[%s5529_s16 + $0x138] sm:$0xff]  ;;  %v5765_v50 = vld [vmem:[%s5529_s16 + $0x140] sm:$0xff] }
  0x2b   : > { %v5728_v43 = vld [vmem:[%s5529_s16 + $0x129] sm:$0xff]  ;;  %v5748_v47 = vld [vmem:[%s5529_s16 + $0x139] sm:$0xff]  ;;  %v5768_v51 = vld [vmem:[%s5529_s16 + $0x141] sm:$0xff] }
  0x2c   : > { %v5737_v44 = vld [vmem:[%s5529_s16 + $0x69] sm:$0xff]  ;;  %v5757_v48 = vld [vmem:[%s5529_s16 + $0x79] sm:$0xff]  ;;  %v5777_v52 = vld [vmem:[%s5529_s16 + $0x81] sm:$0xff] }
  0x2d   : > { %v5782_v53 = vld [vmem:[%s5529_s16 + $0x90] sm:$0xff]  ;;  %v5810_v59 = vld [vmem:[%s5529_s16 + $0x98] sm:$0xff]  ;;  %v5838_v1 = vld [vmem:[%s5529_s16 + $0xa8] sm:$0xff] }
  0x2e   : > { %4770 = vmatmul.msk.f32.gmra.mxu0 %vm277_vm1, %v5582_v13  ;;  %v5785_v54 = vld [vmem:[%s5529_s16 + $0x150] sm:$0xff]  ;;  %v5813_v60 = vld [vmem:[%s5529_s16 + $0x158] sm:$0xff]  ;;  %v5841_v2 = vld [vmem:[%s5529_s16 + $0x168] sm:$0xff] }
  0x2f   : > { %4786 = vmatmul.msk.f32.gmra.mxu2 %vm277_vm1, %v5585_v14  ;;  %7815 = vst [vmem:[#allocation9_spill] sm:$0xff] %v5785_v54  ;;  %v5788_v55 = vld [vmem:[%s5529_s16 + $0x151] sm:$0xff]  ;;  %v5816_v61 = vld [vmem:[%s5529_s16 + $0x159] sm:$0xff]  ;;  %v5844_v5 = vld [vmem:[%s5529_s16 + $0x169] sm:$0xff] }
  0x30   : > { %4820 = vmatmul.msk.f32.gmra.mxu3 %vm277_vm1, %v5588_v15  ;;  %7816 = vst [vmem:[#allocation10_spill] sm:$0xff] %v5788_v55  ;;  %v5797_v56 = vld [vmem:[%s5529_s16 + $0x91] sm:$0xff]  ;;  %v5829_v63 = vld [vmem:[%s5529_s16 + $0x99] sm:$0xff]  ;;  %v5853_v6 = vld [vmem:[%s5529_s16 + $0xa9] sm:$0xff] }
  0x31   : > { %4804 = vmatmul.msk.f32.gmra.mxu1 %vm277_vm1, %v5597_v16  ;;  %7817 = vst [vmem:[#allocation11_spill] sm:$0xff] %v5813_v60  ;;  %v5858_v7 = vld [vmem:[%s5529_s16 + $0xb0] sm:$0xff]  ;;  %v801_v58 = vld [vmem:[%s5529_s16 + $0x2] sm:$0xff] }
  0x32   : > { %7818 = vst [vmem:[#allocation12_spill] sm:$0xff] %v5816_v61  ;;  %v5861_v8 = vld [vmem:[%s5529_s16 + $0x170] sm:$0xff] }
  0x33   : > { %7819 = vst [vmem:[#allocation13_spill] sm:$0xff] %v5841_v2  ;;  %v5864_v9 = vld [vmem:[%s5529_s16 + $0x171] sm:$0xff] }
  0x34   : > { %7820 = vst [vmem:[#allocation14_spill] sm:$0xff] %v5844_v5  ;;  %v5873_v12 = vld [vmem:[%s5529_s16 + $0xb1] sm:$0xff] }
  0x35   : > { %7821 = vst [vmem:[#allocation15_spill] sm:$0xff] %v5861_v8 }
  0x36   : > { %4771 = vmatmul.msk.f32.gmra.mxu0 %vm277_vm1, %v5602_v17  ;;  %7822 = vst [vmem:[#allocation16_spill] sm:$0xff] %v5864_v9 }
  0x37   : > { %4787 = vmatmul.msk.f32.gmra.mxu2 %vm277_vm1, %v5605_v18 }
  0x38   : > { %4821 = vmatmul.msk.f32.gmra.mxu3 %vm277_vm1, %v5608_v19 }
  0x39   : > { %4805 = vmatmul.msk.f32.gmra.mxu1 %vm277_vm1, %v5617_v20 }
  0x3e   : > { %4772 = vmatmul.msk.f32.gmra.mxu0 %vm277_vm1, %v5622_v21 }
  0x3f   : > { %4788 = vmatmul.msk.f32.gmra.mxu2 %vm277_vm1, %v5625_v22 }
  0x40   : > { %4822 = vmatmul.msk.f32.gmra.mxu3 %vm277_vm1, %v5628_v23 }
  0x41   : > { %4806 = vmatmul.msk.f32.gmra.mxu1 %vm277_vm1, %v5637_v24 }
  0x46   : > { %4773 = vmatmul.msk.f32.gmra.mxu0 %vm277_vm1, %v5642_v25 }
  0x47   : > { %4789 = vmatmul.msk.f32.gmra.mxu2 %vm277_vm1, %v5645_v26 }
  0x48   : > { %4823 = vmatmul.msk.f32.gmra.mxu3 %vm277_vm1, %v5648_v27 }
  0x49   : > { %4807 = vmatmul.msk.f32.gmra.mxu1 %vm277_vm1, %v5657_v28 }
  0x4e   : > { %4774 = vmatmul.msk.f32.gmra.mxu0 %vm277_vm1, %v5662_v29 }
  0x4f   : > { %4790 = vmatmul.msk.f32.gmra.mxu2 %vm277_vm1, %v5665_v30 }
  0x50   : > { %4824 = vmatmul.msk.f32.gmra.mxu3 %vm277_vm1, %v5668_v31 }
  0x51   : > { %4808 = vmatmul.msk.f32.gmra.mxu1 %vm277_vm1, %v5677_v32 }
  0x56   : > { %4775 = vmatmul.msk.f32.gmra.mxu0 %vm277_vm1, %v5682_v33 }
  0x57   : > { %4791 = vmatmul.msk.f32.gmra.mxu2 %vm277_vm1, %v5685_v34 }
  0x58   : > { %4825 = vmatmul.msk.f32.gmra.mxu3 %vm277_vm1, %v5688_v35 }
  0x59   : > { %4809 = vmatmul.msk.f32.gmra.mxu1 %vm277_vm1, %v5697_v36 }
  0x5e   : > { %4776 = vmatmul.msk.f32.gmra.mxu0 %vm277_vm1, %v5702_v37 }
  0x5f   : > { %4792 = vmatmul.msk.f32.gmra.mxu2 %vm277_vm1, %v5705_v38 }
  0x60   : > { %4826 = vmatmul.msk.f32.gmra.mxu3 %vm277_vm1, %v5708_v39 }
  0x61   : > { %4810 = vmatmul.msk.f32.gmra.mxu1 %vm277_vm1, %v5717_v40 }
  0x66   : > { %4777 = vmatmul.msk.f32.gmra.mxu0 %vm277_vm1, %v5722_v41 }
  0x67   : > { %4793 = vmatmul.msk.f32.gmra.mxu2 %vm277_vm1, %v5725_v42 }
  0x68   : > { %4827 = vmatmul.msk.f32.gmra.mxu3 %vm277_vm1, %v5728_v43 }
  0x69   : > { %4811 = vmatmul.msk.f32.gmra.mxu1 %vm277_vm1, %v5737_v44 }
  0x6e   : > { %4778 = vmatmul.msk.f32.gmra.mxu0 %vm277_vm1, %v5742_v45 }
  0x6f   : > { %4794 = vmatmul.msk.f32.gmra.mxu2 %vm277_vm1, %v5745_v46 }
  0x70   : > { %4828 = vmatmul.msk.f32.gmra.mxu3 %vm277_vm1, %v5748_v47 }
  0x71   : > { %4812 = vmatmul.msk.f32.gmra.mxu1 %vm277_vm1, %v5757_v48 }
  0x76   : > { %4779 = vmatmul.msk.f32.gmra.mxu0 %vm277_vm1, %v5762_v49 }
  0x77   : > { %4795 = vmatmul.msk.f32.gmra.mxu2 %vm277_vm1, %v5765_v50 }
  0x78   : > { %4829 = vmatmul.msk.f32.gmra.mxu3 %vm277_vm1, %v5768_v51 }
  0x79   : > { %4813 = vmatmul.msk.f32.gmra.mxu1 %vm277_vm1, %v5777_v52 }
  0x7e   : > { %4780 = vmatmul.msk.f32.gmra.mxu0 %vm277_vm1, %v5782_v53 }
  0x7f   : > { %4796 = vmatmul.msk.f32.gmra.mxu2 %vm277_vm1, %v5785_v54 }
  0x80   : > { %4830 = vmatmul.msk.f32.gmra.mxu3 %vm277_vm1, %v5788_v55 }
  0x81   : > { %4814 = vmatmul.msk.f32.gmra.mxu1 %vm277_vm1, %v5797_v56 }
  0x86   : > { %4781 = vmatmul.msk.f32.gmra.mxu0 %vm277_vm1, %v5810_v59 }
  0x87   : > { %4797 = vmatmul.msk.f32.gmra.mxu2 %vm277_vm1, %v5813_v60  ;;  %v802_v60 = vld [vmem:[%s5529_s16 + $0xa] sm:$0xff] }
  0x88   : > { %4831 = vmatmul.msk.f32.gmra.mxu3 %vm277_vm1, %v5816_v61 }
  0x89   : > { %4815 = vmatmul.msk.f32.gmra.mxu1 %vm277_vm1, %v5829_v63 }
  0x8e   : > { %4782 = vmatmul.msk.f32.gmra.mxu0 %vm277_vm1, %v5838_v1 }
  0x8f   : > { %4798 = vmatmul.msk.f32.gmra.mxu2 %vm277_vm1, %v5841_v2 }
  0x90   : > { %4832 = vmatmul.msk.f32.gmra.mxu3 %vm277_vm1, %v5844_v5 }
  0x91   : > { %4816 = vmatmul.msk.f32.gmra.mxu1 %vm277_vm1, %v5853_v6 }
  0x96   : > { %4783 = vmatmul.msk.f32.gmra.mxu0 %vm277_vm1, %v5858_v7 }
  0x97   : > { %4799 = vmatmul.msk.f32.gmra.mxu2 %vm277_vm1, %v5861_v8  ;;  %v5000_v8 = vld [vmem:[%s5529_s16 + $0x1a] sm:$0xff] }
  0x98   : > { %4833 = vmatmul.msk.f32.gmra.mxu3 %vm277_vm1, %v5864_v9 }
  0x99   : > { %4817 = vmatmul.msk.f32.gmra.mxu1 %vm277_vm1, %v5873_v12 }
  0x9b   : > { %v5877_v57 = vpop.f32.mrf.mxu0 }
  0x9e   : > { %4968 = vmatmul.msk.f32.vlgmr.msrb.gmra.mxu0 %vm277_vm1, %v5597_v16  ;;  %v5890_v0 = vpop.f32.mrf.mxu1 }
  0x9f   : > { %4836 = vmatmul.msk.f32.vlgmr.msrb.gmra.mxu2 %vm277_vm1, %v801_v58  ;;  %v5001_v58 = vld [vmem:[%s5529_s16 + $0x22] sm:$0xff] }
  0xa0   : > { %4902 = vmatmul.msk.f32.vlgmr.msrb.gmra.mxu3 %vm277_vm1, %v5582_v13 }
  0xa1   : > { %5034 = vmatmul.msk.f32.vlgmr.msrb.gmra.mxu1 %vm277_vm1, %v5000_v8 }
  0xa2   : > { %v443_v9 = vpop.f32.mrf.mxu2 }
  0xa3   : > { %v721_v2 = vpop.f32.mrf.mxu3  ;;  %v507_v16 = vadd.f32 %v5885_v62, %v443_v9  ;;  %v5895_v5 = vpop.f32.mrf.mxu0 }
  0xa5   : > { %v5898_v61 = vadd.f32 %v721_v2, %v507_v16 }
  0xa6   : > { %4969 = vmatmul.msk.f32.gmra.mxu0 %vm277_vm1, %v5617_v20  ;;  %v5905_v13 = vpop.f32.mrf.mxu1  ;;  %v5922_v20 = vld [vmem:[%s5529_s16 + $0x32] sm:$0xff] }
  0xa7   : > { %7823 = vst [vmem:[#allocation17_spill] sm:$0xff] %v5898_v61  ;;  %4837 = vmatmul.msk.f32.gmra.mxu2 %vm277_vm1, %v802_v60 }
  0xa8   : > { %4903 = vmatmul.msk.f32.gmra.mxu3 %vm277_vm1, %v5602_v17  ;;  %7825 = vst [vmem:[#allocation19_spill] sm:$0xff] %v5922_v20 }
  0xa9   : > { %5035 = vmatmul.msk.f32.gmra.mxu1 %vm277_vm1, %v5001_v58 }
  0xaa   : > { %v446_v54 = vpop.f32.mrf.mxu2 }
  0xab   : > { %v724_v55 = vpop.f32.mrf.mxu3  ;;  %v508_v9 = vadd.f32 %v5885_v62, %v446_v54  ;;  %v5910_v2 = vpop.f32.mrf.mxu0 }
  0xad   : > { %v5912_v16 = vadd.f32 %v724_v55, %v508_v9 }
  0xae   : > { %4970 = vmatmul.msk.f32.gmra.mxu0 %vm277_vm1, %v5637_v24  ;;  %v5919_v17 = vpop.f32.mrf.mxu1  ;;  %v5939_v24 = vld [vmem:[%s5529_s16 + $0x3a] sm:$0xff] }
  0xaf   : > { %7824 = vst [vmem:[#allocation18_spill] sm:$0xff] %v5912_v16  ;;  %4838 = vmatmul.msk.f32.gmra.mxu2 %vm277_vm1, %v5000_v8 }
  0xb0   : > { %4904 = vmatmul.msk.f32.gmra.mxu3 %vm277_vm1, %v5622_v21  ;;  %7827 = vst [vmem:[#allocation21_spill] sm:$0xff] %v5939_v24 }
  0xb1   : > { %5036 = vmatmul.msk.f32.gmra.mxu1 %vm277_vm1, %v5922_v20 }
  0xb2   : > { %v449_v60 = vpop.f32.mrf.mxu2 }
  0xb3   : > { %v727_v61 = vpop.f32.mrf.mxu3  ;;  %v509_v54 = vadd.f32 %v5885_v62, %v449_v60  ;;  %v5927_v55 = vpop.f32.mrf.mxu0 }
  0xb5   : > { %v5929_v9 = vadd.f32 %v727_v61, %v509_v54 }
  0xb6   : > { %4971 = vmatmul.msk.f32.gmra.mxu0 %vm277_vm1, %v5657_v28  ;;  %v5936_v21 = vpop.f32.mrf.mxu1  ;;  %v5957_v28 = vld [vmem:[%s5529_s16 + $0x4a] sm:$0xff] }
  0xb7   : > { %7826 = vst [vmem:[#allocation20_spill] sm:$0xff] %v5929_v9  ;;  %4839 = vmatmul.msk.f32.gmra.mxu2 %vm277_vm1, %v5001_v58 }
  0xb8   : > { %4905 = vmatmul.msk.f32.gmra.mxu3 %vm277_vm1, %v5642_v25  ;;  %7829 = vst [vmem:[#allocation23_spill] sm:$0xff] %v5957_v28 }
  0xb9   : > { %5037 = vmatmul.msk.f32.gmra.mxu1 %vm277_vm1, %v5939_v24 }
  0xba   : > { %v452_v8 = vpop.f32.mrf.mxu2 }
  0xbb   : > { %v730_v16 = vpop.f32.mrf.mxu3  ;;  %v510_v61 = vadd.f32 %v5885_v62, %v452_v8  ;;  %v5944_v60 = vpop.f32.mrf.mxu0 }
  0xbd   : > { %v5946_v54 = vadd.f32 %v730_v16, %v510_v61 }
  0xbe   : > { %4972 = vmatmul.msk.f32.gmra.mxu0 %vm277_vm1, %v5677_v32  ;;  %v5954_v25 = vpop.f32.mrf.mxu1 }
  0xbf   : > { %7828 = vst [vmem:[#allocation22_spill] sm:$0xff] %v5946_v54  ;;  %4840 = vmatmul.msk.f32.gmra.mxu2 %vm277_vm1, %v5922_v20  ;;  %v5975_v54 = vld [vmem:[%s5529_s16 + $0x52] sm:$0xff] }
  0xc0   : > { %4906 = vmatmul.msk.f32.gmra.mxu3 %vm277_vm1, %v5662_v29  ;;  %7831 = vst [vmem:[#allocation25_spill] sm:$0xff] %v5975_v54 }
  0xc1   : > { %5038 = vmatmul.msk.f32.gmra.mxu1 %vm277_vm1, %v5957_v28 }
  0xc2   : > { %v455_v58 = vpop.f32.mrf.mxu2 }
  0xc3   : > { %v733_v8 = vpop.f32.mrf.mxu3  ;;  %v511_v16 = vadd.f32 %v5885_v62, %v455_v58  ;;  %v5962_v61 = vpop.f32.mrf.mxu0 }
  0xc5   : > { %v5964_v32 = vadd.f32 %v733_v8, %v511_v16 }
  0xc6   : > { %4973 = vmatmul.msk.f32.gmra.mxu0 %vm277_vm1, %v5697_v36  ;;  %v5972_v29 = vpop.f32.mrf.mxu1 }
  0xc7   : > { %7830 = vst [vmem:[#allocation24_spill] sm:$0xff] %v5964_v32  ;;  %4841 = vmatmul.msk.f32.gmra.mxu2 %vm277_vm1, %v5939_v24  ;;  %v5993_v32 = vld [vmem:[%s5529_s16 + $0x62] sm:$0xff] }
  0xc8   : > { %4907 = vmatmul.msk.f32.gmra.mxu3 %vm277_vm1, %v5682_v33  ;;  %7833 = vst [vmem:[#allocation27_spill] sm:$0xff] %v5993_v32 }
  0xc9   : > { %5039 = vmatmul.msk.f32.gmra.mxu1 %vm277_vm1, %v5975_v54 }
  0xca   : > { %v458_v9 = vpop.f32.mrf.mxu2 }
  0xcb   : > { %v736_v58 = vpop.f32.mrf.mxu3  ;;  %v512_v8 = vadd.f32 %v5885_v62, %v458_v9  ;;  %v5980_v16 = vpop.f32.mrf.mxu0 }
  0xcd   : > { %v5982_v36 = vadd.f32 %v736_v58, %v512_v8 }
  0xce   : > { %4974 = vmatmul.msk.f32.gmra.mxu0 %vm277_vm1, %v5717_v40  ;;  %v5990_v33 = vpop.f32.mrf.mxu1 }
  0xcf   : > { %7832 = vst [vmem:[#allocation26_spill] sm:$0xff] %v5982_v36  ;;  %4842 = vmatmul.msk.f32.gmra.mxu2 %vm277_vm1, %v5957_v28  ;;  %v6011_v36 = vld [vmem:[%s5529_s16 + $0x6a] sm:$0xff] }
  0xd0   : > { %4908 = vmatmul.msk.f32.gmra.mxu3 %vm277_vm1, %v5702_v37  ;;  %7835 = vst [vmem:[#allocation29_spill] sm:$0xff] %v6011_v36 }
  0xd1   : > { %5040 = vmatmul.msk.f32.gmra.mxu1 %vm277_vm1, %v5993_v32 }
  0xd2   : > { %v461_v24 = vpop.f32.mrf.mxu2 }
  0xd3   : > { %v739_v9 = vpop.f32.mrf.mxu3  ;;  %v513_v58 = vadd.f32 %v5885_v62, %v461_v24  ;;  %v5998_v8 = vpop.f32.mrf.mxu0 }
  0xd5   : > { %v6000_v40 = vadd.f32 %v739_v9, %v513_v58 }
  0xd6   : > { %4975 = vmatmul.msk.f32.gmra.mxu0 %vm277_vm1, %v5737_v44  ;;  %v6008_v37 = vpop.f32.mrf.mxu1 }
  0xd7   : > { %7834 = vst [vmem:[#allocation28_spill] sm:$0xff] %v6000_v40  ;;  %4843 = vmatmul.msk.f32.gmra.mxu2 %vm277_vm1, %v5975_v54  ;;  %v6029_v40 = vld [vmem:[%s5529_s16 + $0x7a] sm:$0xff] }
  0xd8   : > { %4909 = vmatmul.msk.f32.gmra.mxu3 %vm277_vm1, %v5722_v41  ;;  %7837 = vst [vmem:[#allocation31_spill] sm:$0xff] %v6029_v40 }
  0xd9   : > { %5041 = vmatmul.msk.f32.gmra.mxu1 %vm277_vm1, %v6011_v36 }
  0xda   : > { %v464_v28 = vpop.f32.mrf.mxu2 }
  0xdb   : > { %v742_v24 = vpop.f32.mrf.mxu3  ;;  %v514_v9 = vadd.f32 %v5885_v62, %v464_v28  ;;  %v6016_v58 = vpop.f32.mrf.mxu0 }
  0xdd   : > { %v6018_v44 = vadd.f32 %v742_v24, %v514_v9 }
  0xde   : > { %4976 = vmatmul.msk.f32.gmra.mxu0 %vm277_vm1, %v5757_v48  ;;  %v6026_v41 = vpop.f32.mrf.mxu1 }
  0xdf   : > { %7836 = vst [vmem:[#allocation30_spill] sm:$0xff] %v6018_v44  ;;  %4844 = vmatmul.msk.f32.gmra.mxu2 %vm277_vm1, %v5993_v32  ;;  %v6047_v44 = vld [vmem:[%s5529_s16 + $0x82] sm:$0xff] }
  0xe0   : > { %4910 = vmatmul.msk.f32.gmra.mxu3 %vm277_vm1, %v5742_v45  ;;  %7839 = vst [vmem:[#allocation33_spill] sm:$0xff] %v6047_v44 }
  0xe1   : > { %5042 = vmatmul.msk.f32.gmra.mxu1 %vm277_vm1, %v6029_v40 }
  0xe2   : > { %v467_v54 = vpop.f32.mrf.mxu2 }
  0xe3   : > { %v745_v28 = vpop.f32.mrf.mxu3  ;;  %v515_v24 = vadd.f32 %v5885_v62, %v467_v54  ;;  %v6034_v9 = vpop.f32.mrf.mxu0 }
  0xe5   : > { %v6036_v48 = vadd.f32 %v745_v28, %v515_v24 }
  0xe6   : > { %4977 = vmatmul.msk.f32.gmra.mxu0 %vm277_vm1, %v5777_v52  ;;  %v6044_v45 = vpop.f32.mrf.mxu1 }
  0xe7   : > { %7838 = vst [vmem:[#allocation32_spill] sm:$0xff] %v6036_v48  ;;  %4845 = vmatmul.msk.f32.gmra.mxu2 %vm277_vm1, %v6011_v36  ;;  %v6065_v48 = vld [vmem:[%s5529_s16 + $0x92] sm:$0xff] }
  0xe8   : > { %4911 = vmatmul.msk.f32.gmra.mxu3 %vm277_vm1, %v5762_v49  ;;  %7841 = vst [vmem:[#allocation35_spill] sm:$0xff] %v6065_v48 }
  0xe9   : > { %5043 = vmatmul.msk.f32.gmra.mxu1 %vm277_vm1, %v6047_v44 }
  0xea   : > { %v470_v32 = vpop.f32.mrf.mxu2 }
  0xeb   : > { %v748_v54 = vpop.f32.mrf.mxu3  ;;  %v516_v28 = vadd.f32 %v5885_v62, %v470_v32  ;;  %v6052_v24 = vpop.f32.mrf.mxu0 }
  0xed   : > { %v6054_v52 = vadd.f32 %v748_v54, %v516_v28 }
  0xee   : > { %4978 = vmatmul.msk.f32.gmra.mxu0 %vm277_vm1, %v5797_v56  ;;  %v6062_v49 = vpop.f32.mrf.mxu1 }
  0xef   : > { %7840 = vst [vmem:[#allocation34_spill] sm:$0xff] %v6054_v52  ;;  %4846 = vmatmul.msk.f32.gmra.mxu2 %vm277_vm1, %v6029_v40  ;;  %v6083_v52 = vld [vmem:[%s5529_s16 + $0x9a] sm:$0xff] }
  0xf0   : > { %4912 = vmatmul.msk.f32.gmra.mxu3 %vm277_vm1, %v5782_v53  ;;  %7843 = vst [vmem:[#allocation37_spill] sm:$0xff] %v6083_v52 }
  0xf1   : > { %5044 = vmatmul.msk.f32.gmra.mxu1 %vm277_vm1, %v6065_v48 }
  0xf2   : > { %v473_v36 = vpop.f32.mrf.mxu2 }
  0xf3   : > { %v751_v32 = vpop.f32.mrf.mxu3  ;;  %v517_v54 = vadd.f32 %v5885_v62, %v473_v36  ;;  %v6070_v28 = vpop.f32.mrf.mxu0 }
  0xf5   : > { %v6072_v56 = vadd.f32 %v751_v32, %v517_v54 }
  0xf6   : > { %4979 = vmatmul.msk.f32.gmra.mxu0 %vm277_vm1, %v5829_v63  ;;  %v6080_v53 = vpop.f32.mrf.mxu1 }
  0xf7   : > { %7842 = vst [vmem:[#allocation36_spill] sm:$0xff] %v6072_v56  ;;  %4847 = vmatmul.msk.f32.gmra.mxu2 %vm277_vm1, %v6047_v44  ;;  %v6101_v56 = vld [vmem:[%s5529_s16 + $0xaa] sm:$0xff] }
  0xf8   : > { %4913 = vmatmul.msk.f32.gmra.mxu3 %vm277_vm1, %v5810_v59  ;;  %7845 = vst [vmem:[#allocation39_spill] sm:$0xff] %v6101_v56 }
  0xf9   : > { %5045 = vmatmul.msk.f32.gmra.mxu1 %vm277_vm1, %v6083_v52 }
  0xfa   : > { %v476_v40 = vpop.f32.mrf.mxu2 }
  0xfb   : > { %v754_v36 = vpop.f32.mrf.mxu3  ;;  %v518_v32 = vadd.f32 %v5885_v62, %v476_v40  ;;  %v6088_v54 = vpop.f32.mrf.mxu0 }
  0xfd   : > { %v6090_v63 = vadd.f32 %v754_v36, %v518_v32 }
  0xfe   : > { %4980 = vmatmul.msk.f32.gmra.mxu0 %vm277_vm1, %v5853_v6  ;;  %v6098_v59 = vpop.f32.mrf.mxu1 }
  0xff   : > { %7844 = vst [vmem:[#allocation38_spill] sm:$0xff] %v6090_v63  ;;  %4848 = vmatmul.msk.f32.gmra.mxu2 %vm277_vm1, %v6065_v48  ;;  %v2906_v63 = vld [vmem:[#allocation3 + $0x78] sm:$0xff] }
 0x100   : > { %4914 = vmatmul.msk.f32.gmra.mxu3 %vm277_vm1, %v5838_v1  ;;  %2907 = vmatpush.msra.mxu1 %v2906_v63  ;;  %v6119_v48 = vld [vmem:[%s5529_s16 + $0xb2] sm:$0xff] }
 0x101   : > { %5046 = vmatmul.msk.f32.gmra.mxu1 %vm277_vm1, %v6101_v56  ;;  %7847 = vst [vmem:[#allocation41_spill] sm:$0xff] %v6119_v48 }
 0x102   : > { %v479_v44 = vpop.f32.mrf.mxu2 }
 0x103   : > { %v757_v40 = vpop.f32.mrf.mxu3  ;;  %v519_v36 = vadd.f32 %v5885_v62, %v479_v44  ;;  %v6106_v32 = vpop.f32.mrf.mxu0 }
 0x105   : > { %v6108_v6 = vadd.f32 %v757_v40, %v519_v36  ;;  %v6137_v36 = vld [vmem:[%s5529_s16 + $0xc2] sm:$0xff] }
 0x106   : > { %4981 = vmatmul.msk.f32.gmra.mxu0 %vm277_vm1, %v5873_v12  ;;  %v6116_v1 = vpop.f32.mrf.mxu1 }
 0x107   : > { %7846 = vst [vmem:[#allocation40_spill] sm:$0xff] %v6108_v6  ;;  %4849 = vmatmul.msk.f32.gmra.mxu2 %vm277_vm1, %v6083_v52 }
 0x108   : > { %4915 = vmatmul.msk.f32.gmra.mxu3 %vm277_vm1, %v5858_v7 }
 0x109   : > { %5047 = vmatmul.msk.f32.gmra.mxu1 %vm277_vm1, %v6119_v48 }
 0x10a   : > { %v482_v44 = vpop.f32.mrf.mxu2 }
 0x10b   : > { %v760_v20 = vpop.f32.mrf.mxu3  ;;  %v520_v40 = vadd.f32 %v5885_v62, %v482_v44  ;;  %v6124_v12 = vpop.f32.mrf.mxu0 }
 0x10d   : > { %v6126_v63 = vadd.f32 %v760_v20, %v520_v40 }
 0x10e   : > { %4982 = vmatmul.msk.f32.gmra.mxu0 %vm277_vm1, %v5544_v4  ;;  %v6134_v7 = vpop.f32.mrf.mxu1 }
 0x10f   : > { %7848 = vst [vmem:[#allocation42_spill] sm:$0xff] %v6126_v63  ;;  %4850 = vmatmul.msk.f32.gmra.mxu2 %vm277_vm1, %v6101_v56  ;;  %v2905_v63 = vld [vmem:[#allocation3 + $0x70] sm:$0xff] }
 0x110   : > { %4916 = vmatmul.msk.f32.gmra.mxu3 %vm277_vm1, %v5541_v3  ;;  %2908 = vmatpush.msra.mxu1 %v2905_v63  ;;  %v6155_v56 = vld [vmem:[%s5529_s16 + $0xca] sm:$0xff]  ;;  %v491_v63 = vadd.f32 %v5885_v62, %v5877_v57 }
 0x111   : > { %5048 = vmatmul.msk.f32.gmra.mxu1 %vm277_vm1, %v6137_v36 }
 0x112   : > { %v485_v6 = vpop.f32.mrf.mxu2 }
 0x113   : > { %v763_v44 = vpop.f32.mrf.mxu3  ;;  %v521_v20 = vadd.f32 %v5885_v62, %v485_v6  ;;  %v6142_v40 = vpop.f32.mrf.mxu0 }
 0x115   : > { %v6144_v4 = vadd.f32 %v763_v44, %v521_v20 }
 0x116   : > { %4983 = vmatmul.msk.f32.gmra.mxu0 %vm277_vm1, %v5572_v11  ;;  %v6152_v3 = vpop.f32.mrf.mxu1 }
 0x117   : > { %7849 = vst [vmem:[#allocation43_spill] sm:$0xff] %v6144_v4  ;;  %4851 = vmatmul.msk.f32.gmra.mxu2 %vm277_vm1, %v6119_v48  ;;  %v6171_v4 = vld [vmem:[%s5529_s16 + $0xda] sm:$0xff] }
 0x118   : > { %4917 = vmatmul.msk.f32.gmra.mxu3 %vm277_vm1, %v5569_v10  ;;  %7850 = vst [vmem:[#allocation44_spill] sm:$0xff] %v6152_v3 }
 0x119   : > { %5049 = vmatmul.msk.f32.gmra.mxu1 %vm277_vm1, %v6155_v56 }
 0x11a   : > { %v488_v6 = vpop.f32.mrf.mxu2 }
 0x11b   : > { %v766_v52 = vpop.f32.mrf.mxu3  ;;  %v522_v44 = vadd.f32 %v5885_v62, %v488_v6  ;;  %v1508_v11 = vpop.f32.mrf.mxu0  ;;  %v769_v6 = vadd.f32 %v5890_v0, %v491_v63 }
 0x11d   : > { %v6162_v20 = vadd.f32 %v766_v52, %v522_v44 }
 0x11e   : > { %4984 = vmatmul.msk.f32.gmra.mxu0 %vm277_vm1, %v5588_v15  ;;  %v1786_v10 = vpop.f32.mrf.mxu1  ;;  %v492_v15 = vadd.f32 %v5885_v62, %v5895_v5 }
 0x11f   : > { %7851 = vst [vmem:[#allocation45_spill] sm:$0xff] %v6162_v20  ;;  %4852 = vmatmul.msk.f32.gmra.mxu2 %vm277_vm1, %v6137_v36  ;;  %v2904_v20 = vld [vmem:[#allocation3 + $0x68] sm:$0xff] }
 0x120   : > { %4918 = vmatmul.msk.f32.gmra.mxu3 %vm277_vm1, %v5585_v14  ;;  %2909 = vmatpush.msra.mxu1 %v2904_v20  ;;  %v770_v63 = vadd.f32 %v5905_v13, %v492_v15 }
 0x121   : > { %5050 = vmatmul.msk.f32.gmra.mxu1 %vm277_vm1, %v6171_v4 }
 0x122   : > { %v951_v48 = vpop.f32.mrf.mxu2 }
 0x123   : > { %v1230_v3 = vpop.f32.mrf.mxu3  ;;  %v1047_v57 = vadd.f32 %v951_v48, %v769_v6  ;;  %v1511_v52 = vpop.f32.mrf.mxu0  ;;  %v6185_v48 = vld [vmem:[%s5529_s16 + $0xe2] sm:$0xff] }
 0x125   : > { %v1326_v44 = vadd.f32 %v1230_v3, %v1047_v57  ;;  %v493_v57 = vadd.f32 %v5885_v62, %v5910_v2 }
 0x126   : > { %4985 = vmatmul.msk.f32.gmra.mxu0 %vm277_vm1, %v5608_v19  ;;  %v1789_v0 = vpop.f32.mrf.mxu1 }
 0x127   : > { %4853 = vmatmul.msk.f32.gmra.mxu2 %vm277_vm1, %v6155_v56  ;;  %v1604_v14 = vadd.f32 %v1508_v11, %v1326_v44  ;;  %v771_v15 = vadd.f32 %v5919_v17, %v493_v57 }
 0x128   : > { %4919 = vmatmul.msk.f32.gmra.mxu3 %vm277_vm1, %v5605_v18 }
 0x129   : > { %v6188_v5 = vadd.f32 %v1786_v10, %v1604_v14  ;;  %5051 = vmatmul.msk.f32.gmra.mxu1 %vm277_vm1, %v6185_v48  ;;  %v6201_v10 = vld [vmem:[%s5529_s16 + $0xf2] sm:$0xff] }
 0x12a   : > { %v954_v3 = vpop.f32.mrf.mxu2 }
 0x12b   : > { %v1233_v6 = vpop.f32.mrf.mxu3  ;;  %v1048_v19 = vadd.f32 %v954_v3, %v770_v63  ;;  %v1514_v20 = vpop.f32.mrf.mxu0  ;;  %v494_v3 = vadd.f32 %v5885_v62, %v5927_v55 }
 0x12d   : > { %v1327_v18 = vadd.f32 %v1233_v6, %v1048_v19  ;;  %v6217_v6 = vld [vmem:[%s5529_s16 + $0xfa] sm:$0xff]  ;;  %v772_v19 = vadd.f32 %v5936_v21, %v494_v3 }
 0x12e   : > { %4986 = vmatmul.msk.f32.gmra.mxu0 %vm277_vm1, %v5628_v23  ;;  %v1792_v11 = vpop.f32.mrf.mxu1 }
 0x12f   : > { %4854 = vmatmul.msk.f32.gmra.mxu2 %vm277_vm1, %v6171_v4  ;;  %v1605_v13 = vadd.f32 %v1511_v52, %v1327_v18  ;;  %v2903_v52 = vld [vmem:[#allocation3 + $0x60] sm:$0xff] }
 0x130   : > { %4920 = vmatmul.msk.f32.gmra.mxu3 %vm277_vm1, %v5625_v22  ;;  %2910 = vmatpush.msra.mxu1 %v2903_v52  ;;  %v6249_v52 = vld [vmem:[%s5529_s16 + $0x112] sm:$0xff] }
 0x131   : > { %v6204_v44 = vadd.f32 %v1789_v0, %v1605_v13  ;;  %5052 = vmatmul.msk.f32.gmra.mxu1 %vm277_vm1, %v6201_v10 }
 0x132   : > { %v957_v2 = vpop.f32.mrf.mxu2 }
 0x133   : > { %v1236_v14 = vpop.f32.mrf.mxu3  ;;  %v1049_v23 = vadd.f32 %v957_v2, %v771_v15  ;;  %v1517_v63 = vpop.f32.mrf.mxu0  ;;  %v495_v15 = vadd.f32 %v5885_v62, %v5944_v60 }
 0x135   : > { %v1328_v22 = vadd.f32 %v1236_v14, %v1049_v23  ;;  %v773_v2 = vadd.f32 %v5954_v25, %v495_v15 }
 0x136   : > { %4987 = vmatmul.msk.f32.gmra.mxu0 %vm277_vm1, %v5648_v27  ;;  %v1795_v0 = vpop.f32.mrf.mxu1 }
 0x137   : > { %4855 = vmatmul.msk.f32.gmra.mxu2 %vm277_vm1, %v6185_v48  ;;  %v1606_v17 = vadd.f32 %v1514_v20, %v1328_v22  ;;  %v496_v22 = vadd.f32 %v5885_v62, %v5962_v61 }
 0x138   : > { %4921 = vmatmul.msk.f32.gmra.mxu3 %vm277_vm1, %v5645_v26 }
 0x139   : > { %v6220_v55 = vadd.f32 %v1792_v11, %v1606_v17  ;;  %5053 = vmatmul.msk.f32.gmra.mxu1 %vm277_vm1, %v6217_v6  ;;  %v6233_v11 = vld [vmem:[%s5529_s16 + $0x10a] sm:$0xff]  ;;  %v774_v17 = vadd.f32 %v5972_v29, %v496_v22 }
 0x13a   : > { %v960_v57 = vpop.f32.mrf.mxu2 }
 0x13b   : > { %v1239_v18 = vpop.f32.mrf.mxu3  ;;  %v1050_v27 = vadd.f32 %v960_v57, %v772_v19  ;;  %v1520_v13 = vpop.f32.mrf.mxu0 }
 0x13d   : > { %v1329_v26 = vadd.f32 %v1239_v18, %v1050_v27  ;;  %v497_v27 = vadd.f32 %v5885_v62, %v5980_v16 }
 0x13e   : > { %4988 = vmatmul.msk.f32.gmra.mxu0 %vm277_vm1, %v5668_v31  ;;  %v1798_v20 = vpop.f32.mrf.mxu1 }
 0x13f   : > { %4856 = vmatmul.msk.f32.gmra.mxu2 %vm277_vm1, %v6201_v10  ;;  %v1607_v21 = vadd.f32 %v1517_v63, %v1329_v26  ;;  %v2902_v63 = vld [vmem:[#allocation3 + $0x58] sm:$0xff]  ;;  %v775_v15 = vadd.f32 %v5990_v33, %v497_v27  ;;  %v5023_v33 = vld [vmem:[%s5529_s16 + $0x12a] sm:$0xff] }
 0x140   : > { %4922 = vmatmul.msk.f32.gmra.mxu3 %vm277_vm1, %v5665_v30  ;;  %2911 = vmatpush.msra.mxu1 %v2902_v63 }
 0x141   : > { %v6236_v14 = vadd.f32 %v1795_v0, %v1607_v21  ;;  %5054 = vmatmul.msk.f32.gmra.mxu1 %vm277_vm1, %v6233_v11 }
 0x142   : > { %v963_v60 = vpop.f32.mrf.mxu2 }
 0x143   : > { %v1242_v23 = vpop.f32.mrf.mxu3  ;;  %v1051_v31 = vadd.f32 %v963_v60, %v773_v2  ;;  %v1523_v3 = vpop.f32.mrf.mxu0  ;;  %v498_v60 = vadd.f32 %v5885_v62, %v5998_v8 }
 0x145   : > { %v1330_v30 = vadd.f32 %v1242_v23, %v1051_v31  ;;  %v2901_v31 = vld [vmem:[#allocation3 + $0x50] sm:$0xff] }
 0x146   : > { %4989 = vmatmul.msk.f32.gmra.mxu0 %vm277_vm1, %v5688_v35  ;;  %v1801_v61 = vpop.f32.mrf.mxu1  ;;  %2912 = vmatpush.msra.mxu1 %v2901_v31 }
 0x147   : > { %4857 = vmatmul.msk.f32.gmra.mxu2 %vm277_vm1, %v6217_v6  ;;  %v1608_v25 = vadd.f32 %v1520_v13, %v1330_v30  ;;  %v5022_v13 = vld [vmem:[%s5529_s16 + $0x122] sm:$0xff] }
 0x148   : > { %4923 = vmatmul.msk.f32.gmra.mxu3 %vm277_vm1, %v5685_v34 }
 0x149   : > { %v6252_v0 = vadd.f32 %v1798_v20, %v1608_v25  ;;  %5055 = vmatmul.msk.f32.gmra.mxu1 %vm277_vm1, %v6249_v52  ;;  %v499_v25 = vadd.f32 %v5885_v62, %v6016_v58 }
 0x14a   : > { %v966_v19 = vpop.f32.mrf.mxu2 }
 0x14b   : > { %v1245_v57 = vpop.f32.mrf.mxu3  ;;  %v1052_v35 = vadd.f32 %v966_v19, %v774_v17  ;;  %v1526_v18 = vpop.f32.mrf.mxu0  ;;  %v777_v19 = vadd.f32 %v6026_v41, %v499_v25  ;;  %v5025_v41 = vld [vmem:[%s5529_s16 + $0x142] sm:$0xff] }
 0x14d   : > { %v1331_v34 = vadd.f32 %v1245_v57, %v1052_v35 }
 0x14e   : > { %4990 = vmatmul.msk.f32.gmra.mxu0 %vm277_vm1, %v5708_v39  ;;  %v1804_v39 = vpop.f32.mrf.mxu1 }
 0x14f   : > { %4858 = vmatmul.msk.f32.gmra.mxu2 %vm277_vm1, %v6233_v11  ;;  %v1609_v29 = vadd.f32 %v1523_v3, %v1331_v34  ;;  %v776_v3 = vadd.f32 %v6008_v37, %v498_v60 }
 0x150   : > { %4924 = vmatmul.msk.f32.gmra.mxu3 %vm277_vm1, %v5705_v38 }
 0x151   : > { %v6266_v26 = vadd.f32 %v1801_v61, %v1609_v29  ;;  %5056 = vmatmul.msk.f32.gmra.mxu1 %vm277_vm1, %v5022_v13  ;;  %v5024_v61 = vld [vmem:[%s5529_s16 + $0x13a] sm:$0xff]  ;;  %v2900_v29 = vld [vmem:[#allocation3 + $0x48] sm:$0xff] }
 0x152   : > { %v969_v21 = vpop.f32.mrf.mxu2  ;;  %2913 = vmatpush.msra.mxu1 %v2900_v29 }
 0x153   : > { %v1248_v20 = vpop.f32.mrf.mxu3  ;;  %v1053_v16 = vadd.f32 %v969_v21, %v775_v15  ;;  %v1529_v2 = vpop.f32.mrf.mxu0 }
 0x155   : > { %v1332_v23 = vadd.f32 %v1248_v20, %v1053_v16 }
 0x156   : > { %4991 = vmatmul.msk.f32.gmra.mxu0 %vm277_vm1, %v5728_v43 }
 0x157   : > { %4859 = vmatmul.msk.f32.gmra.mxu2 %vm277_vm1, %v6249_v52  ;;  %v1610_v38 = vadd.f32 %v1526_v18, %v1332_v23 }
 0x158   : > { %4925 = vmatmul.msk.f32.gmra.mxu3 %vm277_vm1, %v5725_v42  ;;  %v1807_v42 = vpop.f32.mrf.mxu1 }
 0x159   : > { %v6279_v22 = vadd.f32 %v1804_v39, %v1610_v38  ;;  %5057 = vmatmul.msk.f32.gmra.mxu1 %vm277_vm1, %v5023_v33 }
 0x15a   : > { %v972_v8 = vpop.f32.mrf.mxu2 }
 0x15b   : > { %v1251_v30 = vpop.f32.mrf.mxu3  ;;  %v1054_v63 = vadd.f32 %v972_v8, %v776_v3  ;;  %v1532_v43 = vpop.f32.mrf.mxu0  ;;  %v2899_v8 = vld [vmem:[#allocation3 + $0x40] sm:$0xff] }
 0x15c   : > { %2914 = vmatpush.msra.mxu1 %v2899_v8 }
 0x15d   : > { %v1333_v17 = vadd.f32 %v1251_v30, %v1054_v63  ;;  %v7854_v30 = vld [vmem:[#allocation12_spill] sm:$0xff]  ;;  %v7855_v63 = vld [vmem:[#allocation11_spill] sm:$0xff] }
 0x15e   : > { %4992 = vmatmul.msk.f32.gmra.mxu0 %vm277_vm1, %v5748_v47  ;;  %v500_v47 = vadd.f32 %v5885_v62, %v6034_v9 }
 0x15f   : > { %4860 = vmatmul.msk.f32.gmra.mxu2 %vm277_vm1, %v5022_v13  ;;  %v1611_v37 = vadd.f32 %v1529_v2, %v1333_v17  ;;  %v7852_v2 = vld [vmem:[#allocation10_spill] sm:$0xff] }
 0x160   : > { %4926 = vmatmul.msk.f32.gmra.mxu3 %vm277_vm1, %v5745_v46  ;;  %v778_v13 = vadd.f32 %v6044_v45, %v500_v47  ;;  %v5026_v45 = vld [vmem:[%s5529_s16 + $0x152] sm:$0xff] }
 0x161   : > { %v6291_v57 = vadd.f32 %v1807_v42, %v1611_v37  ;;  %5058 = vmatmul.msk.f32.gmra.mxu1 %vm277_vm1, %v5024_v61 }
 0x162   : > { %v975_v35 = vpop.f32.mrf.mxu2 }
 0x163   : > { %v1254_v18 = vpop.f32.mrf.mxu3  ;;  %v1055_v58 = vadd.f32 %v975_v35, %v777_v19  ;;  %v1535_v27 = vpop.f32.mrf.mxu0  ;;  %v7856_v35 = vld [vmem:[#allocation14_spill] sm:$0xff] }
 0x165   : > { %v1334_v34 = vadd.f32 %v1254_v18, %v1055_v58  ;;  %v7857_v18 = vld [vmem:[#allocation13_spill] sm:$0xff] }
 0x166   : > { %4993 = vmatmul.msk.f32.gmra.mxu0 %vm277_vm1, %v5768_v51  ;;  %v501_v51 = vadd.f32 %v5885_v62, %v6052_v24 }
 0x167   : > { %4861 = vmatmul.msk.f32.gmra.mxu2 %vm277_vm1, %v5023_v33  ;;  %v6301_v46 = vadd.f32 %v1532_v43, %v1334_v34  ;;  %v502_v33 = vadd.f32 %v5885_v62, %v6070_v28  ;;  %v5027_v43 = vld [vmem:[%s5529_s16 + $0x15a] sm:$0xff] }
 0x168   : > { %4927 = vmatmul.msk.f32.gmra.mxu3 %vm277_vm1, %v5765_v50  ;;  %v7853_v50 = vld [vmem:[#allocation9_spill] sm:$0xff]  ;;  %v779_v60 = vadd.f32 %v6062_v49, %v501_v51 }
 0x169   : > { %5059 = vmatmul.msk.f32.gmra.mxu1 %vm277_vm1, %v5025_v41  ;;  %v780_v25 = vadd.f32 %v6080_v53, %v502_v33  ;;  %v5028_v53 = vld [vmem:[%s5529_s16 + $0x16a] sm:$0xff] }
 0x16a   : > { %v978_v15 = vpop.f32.mrf.mxu2 }
 0x16b   : > { %v1257_v21 = vpop.f32.mrf.mxu3  ;;  %v1056_v9 = vadd.f32 %v978_v15, %v778_v13  ;;  %v1538_v20 = vpop.f32.mrf.mxu0  ;;  %v2898_v15 = vld [vmem:[#allocation3 + $0x38] sm:$0xff] }
 0x16c   : > { %2915 = vmatpush.msra.mxu1 %v2898_v15  ;;  %v5067_v15 = vld [vmem:[%s5529_s16 + $0x38] sm:$0xff] }
 0x16d   : > { %v1335_v16 = vadd.f32 %v1257_v21, %v1056_v9  ;;  %v7858_v21 = vld [vmem:[#allocation16_spill] sm:$0xff] }
 0x16e   : > { %4994 = vmatmul.msk.f32.gmra.mxu0 %vm277_vm1, %v7852_v2 }
 0x16f   : > { %4862 = vmatmul.msk.f32.gmra.mxu2 %vm277_vm1, %v5024_v61  ;;  %v6313_v39 = vadd.f32 %v1535_v27, %v1335_v16  ;;  %v503_v61 = vadd.f32 %v5885_v62, %v6088_v54 }
 0x170   : > { %4928 = vmatmul.msk.f32.gmra.mxu3 %vm277_vm1, %v7853_v50 }
 0x171   : > { %5060 = vmatmul.msk.f32.gmra.mxu1 %vm277_vm1, %v5026_v45  ;;  %v781_v27 = vadd.f32 %v6098_v59, %v503_v61  ;;  %v7859_v59 = vld [vmem:[#allocation15_spill] sm:$0xff] }
 0x172   : > { %v981_v23 = vpop.f32.mrf.mxu2 }
 0x173   : > { %v1260_v31 = vpop.f32.mrf.mxu3  ;;  %v1057_v24 = vadd.f32 %v981_v23, %v779_v60  ;;  %v1541_v38 = vpop.f32.mrf.mxu0  ;;  %v4898_v60 = vld [vmem:[%s5529_s16 + $0x180] sm:$0xff]  ;;  %v505_v23 = vadd.f32 %v5885_v62, %v6124_v12  ;;  %v4965_v12 = vld [vmem:[%s5529_s16 + $0x189] sm:$0xff] }
 0x175   : > { %v1336_v3 = vadd.f32 %v1260_v31, %v1057_v24  ;;  %v5030_v24 = vld [vmem:[%s5529_s16 + $0x182] sm:$0xff] }
 0x176   : > { %4995 = vmatmul.msk.f32.gmra.mxu0 %vm277_vm1, %v7854_v30 }
 0x177   : > { %4863 = vmatmul.msk.f32.gmra.mxu2 %vm277_vm1, %v5025_v41  ;;  %v6325_v49 = vadd.f32 %v1538_v20, %v1336_v3  ;;  %v504_v41 = vadd.f32 %v5885_v62, %v6106_v32  ;;  %v5029_v20 = vld [vmem:[%s5529_s16 + $0x172] sm:$0xff] }
 0x178   : > { %4929 = vmatmul.msk.f32.gmra.mxu3 %vm277_vm1, %v7855_v63  ;;  %v4899_v63 = vld [vmem:[%s5529_s16 + $0x188] sm:$0xff] }
 0x179   : > { %5061 = vmatmul.msk.f32.gmra.mxu1 %vm277_vm1, %v5027_v43  ;;  %v782_v51 = vadd.f32 %v6116_v1, %v504_v41 }
 0x17a   : > { %v984_v17 = vpop.f32.mrf.mxu2 }
 0x17b   : > { %v1263_v42 = vpop.f32.mrf.mxu3  ;;  %v1058_v28 = vadd.f32 %v984_v17, %v780_v25  ;;  %v1544_v37 = vpop.f32.mrf.mxu0  ;;  %v2897_v17 = vld [vmem:[#allocation3 + $0x30] sm:$0xff] }
 0x17c   : > { %2916 = vmatpush.msra.mxu1 %v2897_v17  ;;  %v5135_v17 = vld [vmem:[%s5529_s16 + $0x51] sm:$0xff] }
 0x17d   : > { %v1337_v19 = vadd.f32 %v1263_v42, %v1058_v28  ;;  %v5031_v42 = vld [vmem:[%s5529_s16 + $0x18a] sm:$0xff]  ;;  %v7860_v28 = vld [vmem:[#allocation44_spill] sm:$0xff] }
 0x17e   : > { %4996 = vmatmul.msk.f32.gmra.mxu0 %vm277_vm1, %v7856_v35  ;;  %v5066_v35 = vld [vmem:[%s5529_s16 + $0x30] sm:$0xff] }
 0x17f   : > { %4864 = vmatmul.msk.f32.gmra.mxu2 %vm277_vm1, %v5026_v45  ;;  %v6337_v58 = vadd.f32 %v1541_v38, %v1337_v19  ;;  %v4964_v45 = vld [vmem:[%s5529_s16 + $0x181] sm:$0xff]  ;;  %v783_v38 = vadd.f32 %v6134_v7, %v505_v23 }
 0x180   : > { %4930 = vmatmul.msk.f32.gmra.mxu3 %vm277_vm1, %v7857_v18  ;;  %v5132_v18 = vld [vmem:[%s5529_s16 + $0x31] sm:$0xff]  ;;  %v5068_v23 = vld [vmem:[%s5529_s16 + $0x48] sm:$0xff] }
 0x181   : > { %5062 = vmatmul.msk.f32.gmra.mxu1 %vm277_vm1, %v5028_v53 }
 0x182   : > { %v987_v47 = vpop.f32.mrf.mxu2 }
 0x183   : > { %v1266_v34 = vpop.f32.mrf.mxu3  ;;  %v1059_v54 = vadd.f32 %v987_v47, %v781_v27  ;;  %v1547_v29 = vpop.f32.mrf.mxu0  ;;  %v7861_v27 = vld [vmem:[#allocation19_spill] sm:$0xff] }
 0x185   : > { %v1338_v13 = vadd.f32 %v1266_v34, %v1059_v54 }
 0x186   : > { %4997 = vmatmul.msk.f32.gmra.mxu0 %vm277_vm1, %v7858_v21  ;;  %v5133_v21 = vld [vmem:[%s5529_s16 + $0x39] sm:$0xff] }
 0x187   : > { %4865 = vmatmul.msk.f32.gmra.mxu2 %vm277_vm1, %v5027_v43  ;;  %v6349_v9 = vadd.f32 %v1544_v37, %v1338_v13  ;;  %v506_v43 = vadd.f32 %v5885_v62, %v6142_v40 }
 0x188   : > { %4931 = vmatmul.msk.f32.gmra.mxu3 %vm277_vm1, %v7859_v59 }
 0x189   : > { %5063 = vmatmul.msk.f32.gmra.mxu1 %vm277_vm1, %v5029_v20  ;;  %v784_v37 = vadd.f32 %v7860_v28, %v506_v43  ;;  %v2895_v28 = vld [vmem:[#allocation3 + $0x20] sm:$0xff] }
 0x18a   : > { %v990_v16 = vpop.f32.mrf.mxu2 }
 0x18b   : > { %v1269_v32 = vpop.f32.mrf.mxu3  ;;  %v1060_v2 = vadd.f32 %v990_v16, %v782_v51  ;;  %v1550_v50 = vpop.f32.mrf.mxu0  ;;  %v7863_v51 = vld [vmem:[#allocation21_spill] sm:$0xff] }
 0x18d   : > { %v1339_v31 = vadd.f32 %v1269_v32, %v1060_v2 }
 0x18e   : > { %4998 = vmatmul.msk.f32.gmra.mxu0 %vm277_vm1, %v4964_v45 }
 0x18f   : > { %4866 = vmatmul.msk.f32.gmra.mxu2 %vm277_vm1, %v5028_v53  ;;  %v6361_v1 = vadd.f32 %v1547_v29, %v1339_v31  ;;  %v7862_v29 = vld [vmem:[#allocation17_spill] sm:$0xff]  ;;  %v5134_v31 = vld [vmem:[%s5529_s16 + $0x49] sm:$0xff] }
 0x190   : > { %4932 = vmatmul.msk.f32.gmra.mxu3 %vm277_vm1, %v4898_v60 }
 0x191   : > { %5064 = vmatmul.msk.f32.gmra.mxu1 %vm277_vm1, %v5030_v24  ;;  %v6398_v24 = vpop.f32.mrf.mxu1 }
 0x192   : > { %v993_v33 = vpop.f32.mrf.mxu2 }
 0x193   : > { %v1272_v3 = vpop.f32.mrf.mxu3  ;;  %v1061_v8 = vadd.f32 %v993_v33, %v783_v38  ;;  %v1553_v30 = vpop.f32.mrf.mxu0  ;;  %v7865_v33 = vld [vmem:[#allocation23_spill] sm:$0xff] }
 0x195   : > { %v1340_v25 = vadd.f32 %v1272_v3, %v1061_v8 }
 0x196   : > { %4999 = vmatmul.msk.f32.gmra.mxu0 %vm277_vm1, %v4965_v12  ;;  %v7866_v12 = vld [vmem:[#allocation20_spill] sm:$0xff] }
 0x197   : > { %4867 = vmatmul.msk.f32.gmra.mxu2 %vm277_vm1, %v5029_v20  ;;  %v6373_v7 = vadd.f32 %v1550_v50, %v1340_v25  ;;  %v2896_v20 = vld [vmem:[#allocation3 + $0x28] sm:$0xff]  ;;  %v5069_v25 = vld [vmem:[%s5529_s16 + $0x50] sm:$0xff] }
 0x198   : > { %4933 = vmatmul.msk.f32.gmra.mxu3 %vm277_vm1, %v4899_v63  ;;  %2917 = vmatpush.msra.mxu1 %v2896_v20  ;;  %v7864_v50 = vld [vmem:[#allocation18_spill] sm:$0xff] }
 0x199   : > { %5065 = vmatmul.msk.f32.gmra.mxu1 %vm277_vm1, %v5031_v42 }
 0x19a   : > { %v996_v61 = vpop.f32.mrf.mxu2  ;;  %2918 = vmatpush.msra.mxu1 %v2895_v28 }
 0x19b   : > { %v1275_v19 = vpop.f32.mrf.mxu3  ;;  %v1062_v62 = vadd.f32 %v996_v61, %v784_v37  ;;  %v1556_v40 = vpop.f32.mrf.mxu0  ;;  %v7867_v37 = vld [vmem:[#allocation25_spill] sm:$0xff] }
 0x19c   : > { %v6411_v61 = vpop.f32.mrf.mxu1 }
 0x19d   : > { %v1341_v53 = vadd.f32 %v1275_v19, %v1062_v62 }
 0x19e   : > { %5232 = vmatmul.msk.f32.vlgmr.msra.gmra.mxu0 %vm277_vm1, %v7861_v27  ;;  %v5070_v27 = vld [vmem:[%s5529_s16 + $0x60] sm:$0xff] }
 0x19f   : > { %5100 = vmatmul.msk.f32.vlgmr.msra.gmra.mxu2 %vm277_vm1, %v5066_v35  ;;  %v6384_v47 = vadd.f32 %v1553_v30, %v1341_v53  ;;  %v7868_v35 = vld [vmem:[#allocation22_spill] sm:$0xff] }
 0x1a0   : > { %5166 = vmatmul.msk.f32.vlgmr.msra.gmra.mxu3 %vm277_vm1, %v5132_v18 }
 0x1a2   : > { %v999_v34 = vpop.f32.mrf.mxu2 }
 0x1a3   : > { %v1278_v54 = vpop.f32.mrf.mxu3  ;;  %v1063_v41 = vadd.f32 %v999_v34, %v7862_v29  ;;  %v1559_v13 = vpop.f32.mrf.mxu0  ;;  %v5136_v34 = vld [vmem:[%s5529_s16 + $0x61] sm:$0xff]  ;;  %v7869_v29 = vld [vmem:[#allocation27_spill] sm:$0xff] }
 0x1a5   : > { %v1342_v59 = vadd.f32 %v1278_v54, %v1063_v41 }
 0x1a6   : > { %5233 = vmatmul.msk.f32.gmra.mxu0 %vm277_vm1, %v7863_v51 }
 0x1a7   : > { %5101 = vmatmul.msk.f32.gmra.mxu2 %vm277_vm1, %v5067_v15  ;;  %v6393_v16 = vadd.f32 %v1556_v40, %v1342_v59  ;;  %v7870_v59 = vld [vmem:[#allocation24_spill] sm:$0xff] }
 0x1a8   : > { %5167 = vmatmul.msk.f32.gmra.mxu3 %vm277_vm1, %v5133_v21 }
 0x1aa   : > { %v1002_v32 = vpop.f32.mrf.mxu2 }
 0x1ab   : > { %v1281_v2 = vpop.f32.mrf.mxu3  ;;  %v1064_v45 = vadd.f32 %v1002_v32, %v7864_v50  ;;  %v1562_v60 = vpop.f32.mrf.mxu0  ;;  %v5071_v32 = vld [vmem:[%s5529_s16 + $0x68] sm:$0xff] }
 0x1ad   : > { %v1343_v38 = vadd.f32 %v1281_v2, %v1064_v45  ;;  %v5137_v2 = vld [vmem:[%s5529_s16 + $0x69] sm:$0xff]  ;;  %v2894_v45 = vld [vmem:[#allocation3 + $0x18] sm:$0xff] }
 0x1ae   : > { %5234 = vmatmul.msk.f32.gmra.mxu0 %vm277_vm1, %v7865_v33  ;;  %2919 = vmatpush.msra.mxu1 %v2894_v45 }
 0x1af   : > { %5102 = vmatmul.msk.f32.gmra.mxu2 %vm277_vm1, %v5068_v23  ;;  %v6404_v3 = vadd.f32 %v1559_v13, %v1343_v38  ;;  %v6426_v13 = vpop.f32.mrf.mxu1 }
 0x1b0   : > { %5168 = vmatmul.msk.f32.gmra.mxu3 %vm277_vm1, %v5134_v31 }
 0x1b2   : > { %v1005_v8 = vpop.f32.mrf.mxu2 }
 0x1b3   : > { %v1284_v30 = vpop.f32.mrf.mxu3  ;;  %v1065_v63 = vadd.f32 %v1005_v8, %v7866_v12  ;;  %v1565_v43 = vpop.f32.mrf.mxu0  ;;  %v7872_v8 = vld [vmem:[#allocation26_spill] sm:$0xff] }
 0x1b5   : > { %v1344_v42 = vadd.f32 %v1284_v30, %v1065_v63  ;;  %v5072_v63 = vld [vmem:[%s5529_s16 + $0x78] sm:$0xff] }
 0x1b6   : > { %5235 = vmatmul.msk.f32.gmra.mxu0 %vm277_vm1, %v7867_v37 }
 0x1b7   : > { %5103 = vmatmul.msk.f32.gmra.mxu2 %vm277_vm1, %v5069_v25  ;;  %v6415_v19 = vadd.f32 %v1562_v60, %v1344_v42  ;;  %v7871_v60 = vld [vmem:[#allocation29_spill] sm:$0xff]  ;;  %v6437_v33 = vpop.f32.mrf.mxu1 }
 0x1b8   : > { %5169 = vmatmul.msk.f32.gmra.mxu3 %vm277_vm1, %v5135_v17  ;;  %v7873_v17 = vld [vmem:[#allocation31_spill] sm:$0xff] }
 0x1ba   : > { %v1008_v62 = vpop.f32.mrf.mxu2 }
 0x1bb   : > { %v1287_v40 = vpop.f32.mrf.mxu3  ;;  %v1066_v18 = vadd.f32 %v1008_v62, %v7868_v35  ;;  %v1568_v53 = vpop.f32.mrf.mxu0  ;;  %v7874_v62 = vld [vmem:[#allocation28_spill] sm:$0xff] }
 0x1bd   : > { %v1345_v54 = vadd.f32 %v1287_v40, %v1066_v18  ;;  %v5073_v18 = vld [vmem:[%s5529_s16 + $0x80] sm:$0xff] }
 0x1be   : > { %5236 = vmatmul.msk.f32.gmra.mxu0 %vm277_vm1, %v7869_v29  ;;  %v7875_v29 = vld [vmem:[#allocation33_spill] sm:$0xff] }
 0x1bf   : > { %5104 = vmatmul.msk.f32.gmra.mxu2 %vm277_vm1, %v5070_v27  ;;  %v6424_v41 = vadd.f32 %v1565_v43, %v1345_v54  ;;  %v5138_v43 = vld [vmem:[%s5529_s16 + $0x79] sm:$0xff]  ;;  %v6451_v27 = vpop.f32.mrf.mxu1  ;;  %v2893_v54 = vld [vmem:[#allocation3 + $0x10] sm:$0xff] }
 0x1c0   : > { %5170 = vmatmul.msk.f32.gmra.mxu3 %vm277_vm1, %v5136_v34  ;;  %2920 = vmatpush.msra.mxu1 %v2893_v54 }
 0x1c2   : > { %v1011_v15 = vpop.f32.mrf.mxu2 }
 0x1c3   : > { %v1290_v21 = vpop.f32.mrf.mxu3  ;;  %v1067_v20 = vadd.f32 %v1011_v15, %v7870_v59  ;;  %v1571_v51 = vpop.f32.mrf.mxu0 }
 0x1c5   : > { %v1346_v50 = vadd.f32 %v1290_v21, %v1067_v20  ;;  %v7876_v20 = vld [vmem:[#allocation30_spill] sm:$0xff] }
 0x1c6   : > { %5237 = vmatmul.msk.f32.gmra.mxu0 %vm277_vm1, %v7871_v60  ;;  %v7877_v60 = vld [vmem:[#allocation35_spill] sm:$0xff] }
 0x1c7   : > { %5105 = vmatmul.msk.f32.gmra.mxu2 %vm277_vm1, %v5071_v32  ;;  %v6435_v23 = vadd.f32 %v1568_v53, %v1346_v50  ;;  %v5139_v53 = vld [vmem:[%s5529_s16 + $0x81] sm:$0xff]  ;;  %v5140_v50 = vld [vmem:[%s5529_s16 + $0x91] sm:$0xff] }
 0x1c8   : > { %5171 = vmatmul.msk.f32.gmra.mxu3 %vm277_vm1, %v5137_v2  ;;  %v5074_v2 = vld [vmem:[%s5529_s16 + $0x90] sm:$0xff] }
 0x1ca   : > { %v1014_v31 = vpop.f32.mrf.mxu2 }
 0x1cb   : > { %v1293_v38 = vpop.f32.mrf.mxu3  ;;  %v1068_v30 = vadd.f32 %v1014_v31, %v7872_v8  ;;  %v1574_v12 = vpop.f32.mrf.mxu0 }
 0x1cc   : > { %v6464_v31 = vpop.f32.mrf.mxu1 }
 0x1cd   : > { %v1347_v25 = vadd.f32 %v1293_v38, %v1068_v30 }
 0x1ce   : > { %5238 = vmatmul.msk.f32.gmra.mxu0 %vm277_vm1, %v7873_v17  ;;  %v5141_v17 = vld [vmem:[%s5529_s16 + $0x99] sm:$0xff] }
 0x1cf   : > { %5106 = vmatmul.msk.f32.gmra.mxu2 %vm277_vm1, %v5072_v63  ;;  %v6446_v42 = vadd.f32 %v1571_v51, %v1347_v25  ;;  %v5075_v25 = vld [vmem:[%s5529_s16 + $0x98] sm:$0xff] }
 0x1d0   : > { %5172 = vmatmul.msk.f32.gmra.mxu3 %vm277_vm1, %v5138_v43 }
 0x1d2   : > { %v1017_v28 = vpop.f32.mrf.mxu2 }
 0x1d3   : > { %v1296_v37 = vpop.f32.mrf.mxu3  ;;  %v1069_v40 = vadd.f32 %v1017_v28, %v7874_v62  ;;  %v1577_v35 = vpop.f32.mrf.mxu0  ;;  %v7879_v62 = vld [vmem:[#allocation37_spill] sm:$0xff] }
 0x1d5   : > { %v1348_v34 = vadd.f32 %v1296_v37, %v1069_v40  ;;  %v2892_v37 = vld [vmem:[#allocation3 + $0x8] sm:$0xff] }
 0x1d6   : > { %5239 = vmatmul.msk.f32.gmra.mxu0 %vm277_vm1, %v7875_v29  ;;  %2921 = vmatpush.msra.mxu1 %v2892_v37  ;;  %v3100_v37 = vld [vmem:[#allocation3 + $0xf8] sm:$0xff] }
 0x1d7   : > { %5107 = vmatmul.msk.f32.gmra.mxu2 %vm277_vm1, %v5073_v18  ;;  %v6457_v15 = vadd.f32 %v1574_v12, %v1348_v34  ;;  %v7878_v12 = vld [vmem:[#allocation32_spill] sm:$0xff]  ;;  %v7880_v34 = vld [vmem:[#allocation34_spill] sm:$0xff] }
 0x1d8   : > { %5173 = vmatmul.msk.f32.gmra.mxu3 %vm277_vm1, %v5139_v53  ;;  %3101 = vmatpush.msrb.mxu2 %v3100_v37 }
 0x1da   : > { %v1020_v21 = vpop.f32.mrf.mxu2 }
 0x1db   : > { %v1299_v59 = vpop.f32.mrf.mxu3  ;;  %v1070_v51 = vadd.f32 %v1020_v21, %v7876_v20  ;;  %v1580_v32 = vpop.f32.mrf.mxu0  ;;  %v5076_v21 = vld [vmem:[%s5529_s16 + $0xa8] sm:$0xff] }
 0x1dd   : > { %v1349_v45 = vadd.f32 %v1299_v59, %v1070_v51  ;;  %v5142_v59 = vld [vmem:[%s5529_s16 + $0xa9] sm:$0xff] }
 0x1de   : > { %5240 = vmatmul.msk.f32.gmra.mxu0 %vm277_vm1, %v7877_v60  ;;  %v7881_v51 = vld [vmem:[#allocation39_spill] sm:$0xff]  ;;  %v7883_v60 = vld [vmem:[#allocation36_spill] sm:$0xff] }
 0x1df   : > { %5108 = vmatmul.msk.f32.gmra.mxu2 %vm277_vm1, %v5074_v2  ;;  %v6468_v38 = vadd.f32 %v1577_v35, %v1349_v45  ;;  %v6479_v35 = vpop.f32.mrf.mxu1 }
 0x1e0   : > { %5174 = vmatmul.msk.f32.gmra.mxu3 %vm277_vm1, %v5140_v50 }
 0x1e2   : > { %v1023_v8 = vpop.f32.mrf.mxu2 }
 0x1e3   : > { %v1302_v30 = vpop.f32.mrf.mxu3  ;;  %v1071_v63 = vadd.f32 %v1023_v8, %v7878_v12  ;;  %v1583_v43 = vpop.f32.mrf.mxu0  ;;  %v5077_v12 = vld [vmem:[%s5529_s16 + $0xb0] sm:$0xff] }
 0x1e5   : > { %v1350_v28 = vadd.f32 %v1302_v30, %v1071_v63  ;;  %v5143_v63 = vld [vmem:[%s5529_s16 + $0xb1] sm:$0xff] }
 0x1e6   : > { %5241 = vmatmul.msk.f32.gmra.mxu0 %vm277_vm1, %v7879_v62  ;;  %v3294_v62 = vld [vmem:[#allocation3 + $0x178] sm:$0xff] }
 0x1e7   : > { %5109 = vmatmul.msk.f32.gmra.mxu2 %vm277_vm1, %v5075_v25  ;;  %v6477_v40 = vadd.f32 %v1580_v32, %v1350_v28  ;;  %v6490_v45 = vpop.f32.mrf.mxu1  ;;  %v7884_v28 = vld [vmem:[#allocation41_spill] sm:$0xff]  ;;  %3295 = vmatpush.msrb.mxu3 %v3294_v62 }
 0x1e8   : > { %5175 = vmatmul.msk.f32.gmra.mxu3 %vm277_vm1, %v5141_v17  ;;  %v2891_v17 = vld [vmem:[#allocation3] sm:$0xff] }
 0x1e9   : > { %2922 = vmatpush.msra.mxu1 %v2891_v17 }
 0x1ea   : > { %v1026_v18 = vpop.f32.mrf.mxu2 }
 0x1eb   : > { %v1305_v53 = vpop.f32.mrf.mxu3  ;;  %v1072_v54 = vadd.f32 %v1026_v18, %v7880_v34  ;;  %v1586_v29 = vpop.f32.mrf.mxu0  ;;  %v7886_v34 = vld [vmem:[#allocation38_spill] sm:$0xff] }
 0x1ed   : > { %v1351_v20 = vadd.f32 %v1305_v53, %v1072_v54 }
 0x1ee   : > { %5242 = vmatmul.msk.f32.gmra.mxu0 %vm277_vm1, %v7881_v51  ;;  %v5144_v51 = vld [vmem:[%s5529_s16 + $0xc1] sm:$0xff] }
 0x1ef   : > { %5110 = vmatmul.msk.f32.gmra.mxu2 %vm277_vm1, %v5076_v21  ;;  %v6488_v32 = vadd.f32 %v1583_v43, %v1351_v20  ;;  %v5078_v20 = vld [vmem:[%s5529_s16 + $0xc0] sm:$0xff] }
 0x1f0   : > { %5176 = vmatmul.msk.f32.gmra.mxu3 %vm277_vm1, %v5142_v59  ;;  %v7784_v59 = vmov 0.0  }
 0x1f1   : > { %7882 = vst [vmem:[#allocation10_spill] sm:$0xff] %v6488_v32 }
 0x1f2   : > { %v1029_v2 = vpop.f32.mrf.mxu2  ;;  %2781 = vst [vmem:[#allocation2] sm:$0xff] %v7784_v59 }
 0x1f3   : > { %v1308_v50 = vpop.f32.mrf.mxu3  ;;  %v1073_v8 = vadd.f32 %v1029_v2, %v7883_v60  ;;  %v1589_v30 = vpop.f32.mrf.mxu0  ;;  %2782 = vst [vmem:[#allocation2 + $0x8] sm:$0xff] %v7784_v59  ;;  %v3488_v60 = vld [vmem:[#allocation3 + $0x1f8] sm:$0xff] }
 0x1f4   : > { %v6506_v2 = vpop.f32.mrf.mxu1  ;;  %2783 = vst [vmem:[#allocation2 + $0x10] sm:$0xff] %v7784_v59  ;;  %3489 = vmatpush.msrb.mxu0 %v3488_v60  ;;  %v3099_v60 = vld [vmem:[#allocation3 + $0xf0] sm:$0xff] }
 0x1f5   : > { %v1352_v25 = vadd.f32 %v1308_v50, %v1073_v8  ;;  %2784 = vst [vmem:[#allocation2 + $0x18] sm:$0xff] %v7784_v59  ;;  %3102 = vmatpush.msrb.mxu2 %v3099_v60 }
 0x1f6   : > { %5243 = vmatmul.msk.f32.gmra.mxu0 %vm277_vm1, %v7884_v28  ;;  %2786 = vst [vmem:[#allocation2 + $0x220] sm:$0xff] %v7784_v59  ;;  %v5145_v28 = vld [vmem:[%s5529_s16 + $0xc9] sm:$0xff] }
 0x1f7   : > { %5111 = vmatmul.msk.f32.gmra.mxu2 %vm277_vm1, %v5077_v12  ;;  %v6499_v43 = vadd.f32 %v1586_v29, %v1352_v25  ;;  %2787 = vst [vmem:[#allocation2 + $0x228] sm:$0xff] %v7784_v59 }
 0x1f8   : > { %5177 = vmatmul.msk.f32.gmra.mxu3 %vm277_vm1, %v5143_v63  ;;  %2788 = vst [vmem:[#allocation2 + $0x230] sm:$0xff] %v7784_v59 }
 0x1f9   : > { %7885 = vst [vmem:[#allocation9_spill] sm:$0xff] %v6499_v43 }
 0x1fa   : > { %v1032_v18 = vpop.f32.mrf.mxu2  ;;  %2789 = vst [vmem:[#allocation2 + $0x238] sm:$0xff] %v7784_v59  ;;  %v2859_v17 = vld [vmem:[#allocation2 + $0x7] sm:$0xff] }
 0x1fb   : > { %v1311_v53 = vpop.f32.mrf.mxu3  ;;  %v1074_v54 = vadd.f32 %v1032_v18, %v7886_v34  ;;  %v1592_v21 = vpop.f32.mrf.mxu0  ;;  %2791 = vst [vmem:[#allocation2 + $0x20] sm:$0xff] %v7784_v59  ;;  %2923 = vmatmul.f32.vlgmr.msra.gmra.mxu1 %v2859_v17  ;;  %v2860_v34 = vld [vmem:[#allocation2 + $0xf] sm:$0xff] }
 0x1fc   : > { %2792 = vst [vmem:[#allocation2 + $0x40] sm:$0xff] %v7784_v59  ;;  %v6529_v62 = vpop.f32.mrf.mxu1 }
 0x1fd   : > { %v1353_v29 = vadd.f32 %v1311_v53, %v1074_v54  ;;  %2793 = vst [vmem:[#allocation2 + $0x60] sm:$0xff] %v7784_v59  ;;  %v7890_v54 = vld [vmem:[#allocation42_spill] sm:$0xff] }
 0x1fe   : > { %5244 = vmatmul.msk.f32.gmra.mxu0 %vm277_vm1, %v6137_v36  ;;  %v7888_v36 = vld [vmem:[#allocation40_spill] sm:$0xff]  ;;  %2794 = vst [vmem:[#allocation2 + $0x80] sm:$0xff] %v7784_v59 }
 0x1ff   : > { %5112 = vmatmul.msk.f32.gmra.mxu2 %vm277_vm1, %v5078_v20  ;;  %v6514_v50 = vadd.f32 %v1589_v30, %v1353_v29  ;;  %v5079_v30 = vld [vmem:[%s5529_s16 + $0xc8] sm:$0xff]  ;;  %2795 = vst [vmem:[#allocation2 + $0xa0] sm:$0xff] %v7784_v59  ;;  %v3682_v29 = vld [vmem:[#allocation3 + $0x278] sm:$0xff] }
 0x200   : > { %5178 = vmatmul.msk.f32.gmra.mxu3 %vm277_vm1, %v5144_v51  ;;  %2796 = vst [vmem:[#allocation2 + $0xc0] sm:$0xff] %v7784_v59  ;;  %3683 = vmatpush.msrb.mxu1 %v3682_v29 }
 0x201   : > { %7887 = vst [vmem:[#allocation12_spill] sm:$0xff] %v6514_v50 }
 0x202   : > { %v1035_v8 = vpop.f32.mrf.mxu2  ;;  %2797 = vst [vmem:[#allocation2 + $0xe0] sm:$0xff] %v7784_v59 }
 0x203   : > { %v1314_v12 = vpop.f32.mrf.mxu3  ;;  %v1075_v63 = vadd.f32 %v1035_v8, %v7888_v36  ;;  %v1595_v25 = vpop.f32.mrf.mxu0  ;;  %2798 = vst [vmem:[#allocation2 + $0x100] sm:$0xff] %v7784_v59  ;;  %v5080_v8 = vld [vmem:[%s5529_s16 + $0xd8] sm:$0xff]  ;;  %2926 = vmatmul.f32.gmra.mxu1 %v2860_v34  ;;  %v5147_v34 = vld [vmem:[%s5529_s16 + $0xe1] sm:$0xff] }
 0x204   : > { %2799 = vst [vmem:[#allocation2 + $0x120] sm:$0xff] %v7784_v59  ;;  %v6554_v17 = vpop.f32.mrf.mxu1 }
 0x205   : > { %v1354_v37 = vadd.f32 %v1314_v12, %v1075_v63  ;;  %v5146_v12 = vld [vmem:[%s5529_s16 + $0xd9] sm:$0xff]  ;;  %2800 = vst [vmem:[#allocation2 + $0x140] sm:$0xff] %v7784_v59 }
 0x206   : > { %5245 = vmatmul.msk.f32.gmra.mxu0 %vm277_vm1, %v6155_v56  ;;  %2801 = vst [vmem:[#allocation2 + $0x160] sm:$0xff] %v7784_v59 }
 0x207   : > { %5113 = vmatmul.msk.f32.gmra.mxu2 %vm277_vm1, %v5079_v30  ;;  %v6533_v18 = vadd.f32 %v1592_v21, %v1354_v37  ;;  %v3293_v21 = vld [vmem:[#allocation3 + $0x170] sm:$0xff]  ;;  %2802 = vst [vmem:[#allocation2 + $0x180] sm:$0xff] %v7784_v59 }
 0x208   : > { %5179 = vmatmul.msk.f32.gmra.mxu3 %vm277_vm1, %v5145_v28  ;;  %2803 = vst [vmem:[#allocation2 + $0x1a0] sm:$0xff] %v7784_v59  ;;  %v7892_v28 = vld [vmem:[#allocation43_spill] sm:$0xff] }
 0x209   : > { %7889 = vst [vmem:[#allocation11_spill] sm:$0xff] %v6533_v18  ;;  %3296 = vmatpush.msrb.mxu3 %v3293_v21  ;;  %v7894_v21 = vld [vmem:[#allocation45_spill] sm:$0xff] }
 0x20a   : > { %v1038_v53 = vpop.f32.mrf.mxu2  ;;  %2804 = vst [vmem:[#allocation2 + $0x1c0] sm:$0xff] %v7784_v59 }
 0x20b   : > { %v1317_v56 = vpop.f32.mrf.mxu3  ;;  %v1076_v20 = vadd.f32 %v1038_v53, %v7890_v54  ;;  %v1598_v51 = vpop.f32.mrf.mxu0  ;;  %2805 = vst [vmem:[#allocation2 + $0x1e0] sm:$0xff] %v7784_v59 }
 0x20c   : > { %2806 = vst [vmem:[#allocation2 + $0x200] sm:$0xff] %v7784_v59 }
 0x20d   : > { %v1355_v36 = vadd.f32 %v1317_v56, %v1076_v20  ;;  %2807 = vst [vmem:[#allocation2 + $0x38] sm:$0xff] %v7784_v59  ;;  %v3487_v56 = vld [vmem:[#allocation3 + $0x1f0] sm:$0xff] }
 0x20e   : > { %5246 = vmatmul.msk.f32.gmra.mxu0 %vm277_vm1, %v6171_v4  ;;  %2808 = vst [vmem:[#allocation2 + $0x58] sm:$0xff] %v7784_v59 }
 0x20f   : > { %5114 = vmatmul.msk.f32.gmra.mxu2 %vm277_vm1, %v5080_v8  ;;  %v6550_v63 = vadd.f32 %v1595_v25, %v1355_v36  ;;  %v5081_v25 = vld [vmem:[%s5529_s16 + $0xe0] sm:$0xff]  ;;  %3490 = vmatpush.msrb.mxu0 %v3487_v56  ;;  %2809 = vst [vmem:[#allocation2 + $0x78] sm:$0xff] %v7784_v59  ;;  %v3681_v36 = vld [vmem:[#allocation3 + $0x270] sm:$0xff] }
 0x210   : > { %5180 = vmatmul.msk.f32.gmra.mxu3 %vm277_vm1, %v5146_v12  ;;  %2810 = vst [vmem:[#allocation2 + $0x98] sm:$0xff] %v7784_v59  ;;  %3684 = vmatpush.msrb.mxu1 %v3681_v36 }
 0x211   : > { %7891 = vst [vmem:[#allocation14_spill] sm:$0xff] %v6550_v63 }
 0x212   : > { %v1041_v30 = vpop.f32.mrf.mxu2  ;;  %2811 = vst [vmem:[#allocation2 + $0xb8] sm:$0xff] %v7784_v59 }
 0x213   : > { %v1320_v4 = vpop.f32.mrf.mxu3  ;;  %v1077_v37 = vadd.f32 %v1041_v30, %v7892_v28  ;;  %v1601_v53 = vpop.f32.mrf.mxu0  ;;  %2812 = vst [vmem:[#allocation2 + $0xd8] sm:$0xff] %v7784_v59  ;;  %v3292_v30 = vld [vmem:[#allocation3 + $0x168] sm:$0xff]  ;;  %v5148_v28 = vld [vmem:[%s5529_s16 + $0xf1] sm:$0xff] }
 0x214   : > { %2813 = vst [vmem:[#allocation2 + $0xf8] sm:$0xff] %v7784_v59  ;;  %3297 = vmatpush.msrb.mxu3 %v3292_v30 }
 0x215   : > { %v1356_v54 = vadd.f32 %v1320_v4, %v1077_v37  ;;  %2814 = vst [vmem:[#allocation2 + $0x118] sm:$0xff] %v7784_v59  ;;  %v5082_v4 = vld [vmem:[%s5529_s16 + $0xf0] sm:$0xff] }
 0x216   : > { %5247 = vmatmul.msk.f32.gmra.mxu0 %vm277_vm1, %v6185_v48  ;;  %v6575_v48 = vpop.f32.mrf.mxu1  ;;  %2815 = vst [vmem:[#allocation2 + $0x138] sm:$0xff] %v7784_v59 }
 0x217   : > { %5115 = vmatmul.msk.f32.gmra.mxu2 %vm277_vm1, %v5081_v25  ;;  %v6569_v20 = vadd.f32 %v1598_v51, %v1356_v54  ;;  %v3098_v51 = vld [vmem:[#allocation3 + $0xe8] sm:$0xff]  ;;  %2816 = vst [vmem:[#allocation2 + $0x158] sm:$0xff] %v7784_v59 }
 0x218   : > { %5181 = vmatmul.msk.f32.gmra.mxu3 %vm277_vm1, %v5147_v34  ;;  %3103 = vmatpush.msrb.mxu2 %v3098_v51  ;;  %2817 = vst [vmem:[#allocation2 + $0x178] sm:$0xff] %v7784_v59 }
 0x219   : > { %7893 = vst [vmem:[#allocation13_spill] sm:$0xff] %v6569_v20 }
 0x21a   : > { %v1044_v29 = vpop.f32.mrf.mxu2  ;;  %2818 = vst [vmem:[#allocation2 + $0x198] sm:$0xff] %v7784_v59 }
 0x21b   : > { %v1323_v60 = vpop.f32.mrf.mxu3  ;;  %v1078_v8 = vadd.f32 %v1044_v29, %v7894_v21  ;;  %v2621_v12 = vpop.f32.mrf.mxu0  ;;  %2819 = vst [vmem:[#allocation2 + $0x1b8] sm:$0xff] %v7784_v59  ;;  %v3486_v29 = vld [vmem:[#allocation3 + $0x1e8] sm:$0xff]  ;;  %v5149_v21 = vld [vmem:[%s5529_s16 + $0xf9] sm:$0xff] }
 0x21c   : > { %2820 = vst [vmem:[#allocation2 + $0x1d8] sm:$0xff] %v7784_v59  ;;  %3491 = vmatpush.msrb.mxu0 %v3486_v29 }
 0x21d   : > { %v1357_v37 = vadd.f32 %v1323_v60, %v1078_v8  ;;  %2821 = vst [vmem:[#allocation2 + $0x1f8] sm:$0xff] %v7784_v59  ;;  %v5083_v60 = vld [vmem:[%s5529_s16 + $0xf8] sm:$0xff] }
 0x21e   : > { %5248 = vmatmul.msk.f32.gmra.mxu0 %vm277_vm1, %v6201_v10  ;;  %2822 = vst [vmem:[#allocation2 + $0x218] sm:$0xff] %v7784_v59 }
 0x21f   : > { %5116 = vmatmul.msk.f32.gmra.mxu2 %vm277_vm1, %v5082_v4  ;;  %v6588_v56 = vadd.f32 %v1601_v53, %v1357_v37  ;;  %v6597_v53 = vpop.f32.mrf.mxu1  ;;  %v3680_v37 = vld [vmem:[#allocation3 + $0x268] sm:$0xff] }
 0x220   : > { %5182 = vmatmul.msk.f32.gmra.mxu3 %vm277_vm1, %v5148_v28  ;;  %3685 = vmatpush.msrb.mxu1 %v3680_v37  ;;  %v5151_v37 = vld [vmem:[%s5529_s16 + $0x111] sm:$0xff] }
 0x221   : > { %7895 = vst [vmem:[#allocation16_spill] sm:$0xff] %v6588_v56  ;;  %v5220_v56 = vld [vmem:[%s5529_s16 + $0x13a] sm:$0xff] }
 0x222   : > { %v2065_v25 = vpop.f32.mrf.mxu2 }
 0x223   : > { %v2343_v34 = vpop.f32.mrf.mxu3  ;;  %v2161_v10 = vadd.f32 %v2065_v25, %v6188_v5  ;;  %v2624_v54 = vpop.f32.mrf.mxu0  ;;  %v3097_v25 = vld [vmem:[#allocation3 + $0xe0] sm:$0xff] }
 0x224   : > { %3104 = vmatpush.msrb.mxu2 %v3097_v25 }
 0x225   : > { %v2439_v8 = vadd.f32 %v2343_v34, %v2161_v10  ;;  %v3291_v34 = vld [vmem:[#allocation3 + $0x160] sm:$0xff] }
 0x226   : > { %5249 = vmatmul.msk.f32.gmra.mxu0 %vm277_vm1, %v6217_v6  ;;  %v5084_v6 = vld [vmem:[%s5529_s16 + $0x108] sm:$0xff]  ;;  %3298 = vmatpush.msrb.mxu3 %v3291_v34 }
 0x227   : > { %v6601_v36 = vadd.f32 %v2621_v12, %v2439_v8  ;;  %5117 = vmatmul.msk.f32.gmra.mxu2 %vm277_vm1, %v5083_v60  ;;  %v5150_v12 = vld [vmem:[%s5529_s16 + $0x109] sm:$0xff]  ;;  %v6613_v29 = vpop.f32.mrf.mxu1 }
 0x228   : > { %5183 = vmatmul.msk.f32.gmra.mxu3 %vm277_vm1, %v5149_v21 }
 0x229   : > { %v7783_v5 = vmax.f32 %v6601_v36, 0.0 }
 0x22a   : > { %v2068_v51 = vpop.f32.mrf.mxu2 }
 0x22b   : > { %v2346_v30 = vpop.f32.mrf.mxu3  ;;  %2823 = vst [vmem:[#allocation2 + $0x28] sm:$0xff] %v7783_v5  ;;  %v2162_v4 = vadd.f32 %v2068_v51, %v6204_v44  ;;  %v2627_v28 = vpop.f32.mrf.mxu0 }
 0x22d   : > { %v2440_v10 = vadd.f32 %v2346_v30, %v2162_v4  ;;  %v5085_v4 = vld [vmem:[%s5529_s16 + $0x110] sm:$0xff] }
 0x22e   : > { %5250 = vmatmul.msk.f32.gmra.mxu0 %vm277_vm1, %v6233_v11 }
 0x22f   : > { %v6615_v60 = vadd.f32 %v2624_v54, %v2440_v10  ;;  %5118 = vmatmul.msk.f32.gmra.mxu2 %vm277_vm1, %v5084_v6  ;;  %v3485_v54 = vld [vmem:[#allocation3 + $0x1e0] sm:$0xff] }
 0x230   : > { %5184 = vmatmul.msk.f32.gmra.mxu3 %vm277_vm1, %v5150_v12  ;;  %3492 = vmatpush.msrb.mxu0 %v3485_v54  ;;  %v3096_v54 = vld [vmem:[#allocation3 + $0xd8] sm:$0xff] }
 0x231   : > { %v7781_v44 = vmax.f32 %v6615_v60, 0.0  ;;  %3105 = vmatpush.msrb.mxu2 %v3096_v54  ;;  %v5153_v54 = vld [vmem:[%s5529_s16 + $0x129] sm:$0xff] }
 0x232   : > { %v2071_v21 = vpop.f32.mrf.mxu2  ;;  %v6620_v51 = vld [vmem:[#allocation2 + $0x27] sm:$0xff] }
 0x233   : > { %v2349_v8 = vpop.f32.mrf.mxu3  ;;  %2824 = vst [vmem:[#allocation2 + $0x30] sm:$0xff] %v7781_v44  ;;  %v2163_v30 = vadd.f32 %v2071_v21, %v6220_v55  ;;  %2929 = vmatmul.f32.gmra.mxu1 %v6620_v51  ;;  %v2630_v11 = vpop.f32.mrf.mxu0 }
 0x234   : > { %v6634_v55 = vpop.f32.mrf.mxu1 }
 0x235   : > { %v2441_v25 = vadd.f32 %v2349_v8, %v2163_v30  ;;  %v5218_v8 = vld [vmem:[%s5529_s16 + $0x122] sm:$0xff] }
 0x236   : > { %5251 = vmatmul.msk.f32.gmra.mxu0 %vm277_vm1, %v6249_v52  ;;  %v3679_v30 = vld [vmem:[#allocation3 + $0x260] sm:$0xff] }
 0x237   : > { %v6630_v34 = vadd.f32 %v2627_v28, %v2441_v25  ;;  %5119 = vmatmul.msk.f32.gmra.mxu2 %vm277_vm1, %v5085_v4  ;;  %v3290_v4 = vld [vmem:[#allocation3 + $0x158] sm:$0xff]  ;;  %v5152_v25 = vld [vmem:[%s5529_s16 + $0x121] sm:$0xff]  ;;  %3686 = vmatpush.msrb.mxu1 %v3679_v30 }
 0x238   : > { %5185 = vmatmul.msk.f32.gmra.mxu3 %vm277_vm1, %v5151_v37  ;;  %v5086_v37 = vld [vmem:[%s5529_s16 + $0x120] sm:$0xff] }
 0x239   : > { %v7782_v6 = vmax.f32 %v6630_v34, 0.0  ;;  %3299 = vmatpush.msrb.mxu3 %v3290_v4 }
 0x23a   : > { %v2074_v12 = vpop.f32.mrf.mxu2  ;;  %v6637_v21 = vld [vmem:[#allocation2 + $0x2f] sm:$0xff] }
 0x23b   : > { %v2352_v10 = vpop.f32.mrf.mxu3  ;;  %2825 = vst [vmem:[#allocation2 + $0x48] sm:$0xff] %v7782_v6  ;;  %v2164_v52 = vadd.f32 %v2074_v12, %v6236_v14  ;;  %2932 = vmatmul.f32.gmra.mxu1 %v6637_v21  ;;  %v2633_v28 = vpop.f32.mrf.mxu0 }
 0x23c   : > { %v6654_v30 = vpop.f32.mrf.mxu1 }
 0x23d   : > { %v2442_v44 = vadd.f32 %v2352_v10, %v2164_v52  ;;  %v5087_v52 = vld [vmem:[%s5529_s16 + $0x128] sm:$0xff] }
 0x23e   : > { %5252 = vmatmul.msk.f32.gmra.mxu0 %vm277_vm1, %v5218_v8  ;;  %v3484_v8 = vld [vmem:[#allocation3 + $0x1d8] sm:$0xff] }
 0x23f   : > { %v6647_v6 = vadd.f32 %v2630_v11, %v2442_v44  ;;  %5120 = vmatmul.msk.f32.gmra.mxu2 %vm277_vm1, %v5086_v37  ;;  %v5219_v11 = vld [vmem:[%s5529_s16 + $0x12a] sm:$0xff]  ;;  %3493 = vmatpush.msrb.mxu0 %v3484_v8 }
 0x240   : > { %5186 = vmatmul.msk.f32.gmra.mxu3 %vm277_vm1, %v5152_v25  ;;  %v3289_v8 = vld [vmem:[#allocation3 + $0x150] sm:$0xff] }
 0x241   : > { %v7786_v14 = vmax.f32 %v6647_v6, 0.0  ;;  %3300 = vmatpush.msrb.mxu3 %v3289_v8  ;;  %v5155_v8 = vld [vmem:[%s5529_s16 + $0x141] sm:$0xff] }
 0x242   : > { %v2077_v12 = vpop.f32.mrf.mxu2  ;;  %v6652_v59 = vld [vmem:[#allocation2 + $0x47] sm:$0xff] }
 0x243   : > { %v2355_v5 = vpop.f32.mrf.mxu3  ;;  %2826 = vst [vmem:[#allocation2 + $0x50] sm:$0xff] %v7786_v14  ;;  %v2165_v10 = vadd.f32 %v2077_v12, %v6252_v0  ;;  %2935 = vmatmul.f32.gmra.mxu1 %v6652_v59  ;;  %v2636_v44 = vpop.f32.mrf.mxu0 }
 0x245   : > { %v2443_v4 = vadd.f32 %v2355_v5, %v2165_v10  ;;  %v3678_v10 = vld [vmem:[#allocation3 + $0x258] sm:$0xff] }
 0x246   : > { %5253 = vmatmul.msk.f32.gmra.mxu0 %vm277_vm1, %v5219_v11  ;;  %v3095_v11 = vld [vmem:[#allocation3 + $0xd0] sm:$0xff]  ;;  %3687 = vmatpush.msrb.mxu1 %v3678_v10 }
 0x247   : > { %v6664_v37 = vadd.f32 %v2633_v28, %v2443_v4  ;;  %5121 = vmatmul.msk.f32.gmra.mxu2 %vm277_vm1, %v5087_v52  ;;  %v5088_v52 = vld [vmem:[%s5529_s16 + $0x138] sm:$0xff]  ;;  %v6678_v4 = vpop.f32.mrf.mxu1 }
 0x248   : > { %5187 = vmatmul.msk.f32.gmra.mxu3 %vm277_vm1, %v5153_v54  ;;  %v5154_v54 = vld [vmem:[%s5529_s16 + $0x139] sm:$0xff]  ;;  %3106 = vmatpush.msrb.mxu2 %v3095_v11 }
 0x249   : > { %v7787_v0 = vmax.f32 %v6664_v37, 0.0 }
 0x24a   : > { %v2080_v25 = vpop.f32.mrf.mxu2  ;;  %v6669_v14 = vld [vmem:[#allocation2 + $0x4f] sm:$0xff] }
 0x24b   : > { %v2358_v12 = vpop.f32.mrf.mxu3  ;;  %2827 = vst [vmem:[#allocation2 + $0x68] sm:$0xff] %v7787_v0  ;;  %v2166_v5 = vadd.f32 %v2080_v25, %v6266_v26  ;;  %2938 = vmatmul.f32.gmra.mxu1 %v6669_v14  ;;  %v2639_v28 = vpop.f32.mrf.mxu0 }
 0x24d   : > { %v2444_v20 = vadd.f32 %v2358_v12, %v2166_v5  ;;  %v5089_v5 = vld [vmem:[%s5529_s16 + $0x140] sm:$0xff] }
 0x24e   : > { %5254 = vmatmul.msk.f32.gmra.mxu0 %vm277_vm1, %v5220_v56 }
 0x24f   : > { %v6681_v26 = vadd.f32 %v2636_v44, %v2444_v20  ;;  %5122 = vmatmul.msk.f32.gmra.mxu2 %vm277_vm1, %v5088_v52  ;;  %v5221_v20 = vld [vmem:[%s5529_s16 + $0x142] sm:$0xff]  ;;  %v3483_v44 = vld [vmem:[#allocation3 + $0x1d0] sm:$0xff] }
 0x250   : > { %5188 = vmatmul.msk.f32.gmra.mxu3 %vm277_vm1, %v5154_v54  ;;  %3494 = vmatpush.msrb.mxu0 %v3483_v44  ;;  %v6696_v54 = vpop.f32.mrf.mxu1  ;;  %v5222_v44 = vld [vmem:[%s5529_s16 + $0x152] sm:$0xff] }
 0x251   : > { %v7788_v25 = vmax.f32 %v6681_v26, 0.0  ;;  %7896 = vst [vmem:[#allocation15_spill] sm:$0xff] %v6696_v54  ;;  %v3481_v54 = vld [vmem:[#allocation3 + $0x1c0] sm:$0xff] }
 0x252   : > { %v2083_v0 = vpop.f32.mrf.mxu2  ;;  %v6686_v11 = vld [vmem:[#allocation2 + $0x67] sm:$0xff] }
 0x253   : > { %v2361_v10 = vpop.f32.mrf.mxu3  ;;  %2828 = vst [vmem:[#allocation2 + $0x70] sm:$0xff] %v7788_v25  ;;  %v2167_v12 = vadd.f32 %v2083_v0, %v6279_v22  ;;  %2941 = vmatmul.f32.gmra.mxu1 %v6686_v11  ;;  %v2642_v56 = vpop.f32.mrf.mxu0 }
 0x255   : > { %v2445_v52 = vadd.f32 %v2361_v10, %v2167_v12  ;;  %v3677_v12 = vld [vmem:[#allocation3 + $0x250] sm:$0xff] }
 0x256   : > { %5255 = vmatmul.msk.f32.gmra.mxu0 %vm277_vm1, %v5221_v20  ;;  %v3094_v20 = vld [vmem:[#allocation3 + $0xc8] sm:$0xff]  ;;  %3688 = vmatpush.msrb.mxu1 %v3677_v12 }
 0x257   : > { %v6698_v63 = vadd.f32 %v2639_v28, %v2445_v52  ;;  %5123 = vmatmul.msk.f32.gmra.mxu2 %vm277_vm1, %v5089_v5  ;;  %v3288_v5 = vld [vmem:[#allocation3 + $0x148] sm:$0xff]  ;;  %v5090_v52 = vld [vmem:[%s5529_s16 + $0x150] sm:$0xff] }
 0x258   : > { %5189 = vmatmul.msk.f32.gmra.mxu3 %vm277_vm1, %v5155_v8  ;;  %v5156_v8 = vld [vmem:[%s5529_s16 + $0x151] sm:$0xff]  ;;  %3107 = vmatpush.msrb.mxu2 %v3094_v20 }
 0x259   : > { %v7790_v22 = vmax.f32 %v6698_v63, 0.0  ;;  %3301 = vmatpush.msrb.mxu3 %v3288_v5  ;;  %v3482_v5 = vld [vmem:[#allocation3 + $0x1c8] sm:$0xff] }
 0x25a   : > { %v2086_v0 = vpop.f32.mrf.mxu2  ;;  %v6703_v18 = vld [vmem:[#allocation2 + $0x6f] sm:$0xff]  ;;  %3495 = vmatpush.msrb.mxu0 %v3482_v5 }
 0x25b   : > { %v2364_v25 = vpop.f32.mrf.mxu3  ;;  %2829 = vst [vmem:[#allocation2 + $0x88] sm:$0xff] %v7790_v22  ;;  %v2168_v10 = vadd.f32 %v2086_v0, %v6291_v57  ;;  %2944 = vmatmul.f32.gmra.mxu1 %v6703_v18  ;;  %v2645_v28 = vpop.f32.mrf.mxu0  ;;  %v1890_v57 = vadd.f32 %v6398_v24, %v6301_v46  ;;  %v5157_v46 = vld [vmem:[%s5529_s16 + $0x159] sm:$0xff]  ;;  %v3676_v5 = vld [vmem:[#allocation3 + $0x248] sm:$0xff] }
 0x25c   : > { %v6719_v0 = vpop.f32.mrf.mxu1  ;;  %3689 = vmatpush.msrb.mxu1 %v3676_v5  ;;  %3496 = vmatpush.msrb.mxu0 %v3481_v54  ;;  %v1892_v5 = vadd.f32 %v6426_v13, %v6325_v49  ;;  %v5225_v13 = vld [vmem:[%s5529_s16 + $0x172] sm:$0xff] }
 0x25d   : > { %v2446_v50 = vadd.f32 %v2364_v25, %v2168_v10  ;;  %7897 = vst [vmem:[#allocation44_spill] sm:$0xff] %v6719_v0 }
 0x25e   : > { %5256 = vmatmul.msk.f32.gmra.mxu0 %vm277_vm1, %v5222_v44  ;;  %v5223_v44 = vld [vmem:[%s5529_s16 + $0x15a] sm:$0xff] }
 0x25f   : > { %v6713_v43 = vadd.f32 %v2642_v56, %v2446_v50  ;;  %5124 = vmatmul.msk.f32.gmra.mxu2 %vm277_vm1, %v5090_v52  ;;  %v5091_v52 = vld [vmem:[%s5529_s16 + $0x158] sm:$0xff] }
 0x260   : > { %5190 = vmatmul.msk.f32.gmra.mxu3 %vm277_vm1, %v5156_v8 }
 0x261   : > { %v7789_v12 = vmax.f32 %v6713_v43, 0.0 }
 0x262   : > { %v2089_v25 = vpop.f32.mrf.mxu2  ;;  %v6722_v20 = vld [vmem:[#allocation2 + $0x87] sm:$0xff] }
 0x263   : > { %v2367_v10 = vpop.f32.mrf.mxu3  ;;  %2830 = vst [vmem:[#allocation2 + $0x90] sm:$0xff] %v7789_v12  ;;  %v2169_v50 = vadd.f32 %v2089_v25, %v1890_v57  ;;  %2947 = vmatmul.f32.gmra.mxu1 %v6722_v20  ;;  %v2648_v56 = vpop.f32.mrf.mxu0  ;;  %v1891_v57 = vadd.f32 %v6411_v61, %v6313_v39  ;;  %v5092_v39 = vld [vmem:[%s5529_s16 + $0x168] sm:$0xff] }
 0x264   : > { %v5158_v61 = vld [vmem:[%s5529_s16 + $0x169] sm:$0xff] }
 0x265   : > { %v2447_v24 = vadd.f32 %v2367_v10, %v2169_v50  ;;  %v5224_v10 = vld [vmem:[%s5529_s16 + $0x16a] sm:$0xff]  ;;  %v6741_v50 = vpop.f32.mrf.mxu1 }
 0x266   : > { %5257 = vmatmul.msk.f32.gmra.mxu0 %vm277_vm1, %v5223_v44  ;;  %7899 = vst [vmem:[#allocation17_spill] sm:$0xff] %v6741_v50 }
 0x267   : > { %v6731_v8 = vadd.f32 %v2645_v28, %v2447_v24  ;;  %5125 = vmatmul.msk.f32.gmra.mxu2 %vm277_vm1, %v5091_v52  ;;  %v3093_v52 = vld [vmem:[#allocation3 + $0xc0] sm:$0xff] }
 0x268   : > { %5191 = vmatmul.msk.f32.gmra.mxu3 %vm277_vm1, %v5157_v46  ;;  %v3287_v46 = vld [vmem:[#allocation3 + $0x140] sm:$0xff]  ;;  %3108 = vmatpush.msrb.mxu2 %v3093_v52 }
 0x269   : > { %7898 = vst [vmem:[#allocation19_spill] sm:$0xff] %v6731_v8  ;;  %v7791_v25 = vmax.f32 %v6731_v8, 0.0  ;;  %3302 = vmatpush.msrb.mxu3 %v3287_v46 }
 0x26a   : > { %v2092_v12 = vpop.f32.mrf.mxu2  ;;  %v6738_v0 = vld [vmem:[#allocation2 + $0x8f] sm:$0xff] }
 0x26b   : > { %v2370_v22 = vpop.f32.mrf.mxu3  ;;  %2831 = vst [vmem:[#allocation2 + $0xa8] sm:$0xff] %v7791_v25  ;;  %v2170_v28 = vadd.f32 %v2092_v12, %v1891_v57  ;;  %2950 = vmatmul.f32.gmra.mxu1 %v6738_v0  ;;  %v2651_v44 = vpop.f32.mrf.mxu0  ;;  %v3092_v12 = vld [vmem:[#allocation3 + $0xb8] sm:$0xff] }
 0x26c   : > { %v3286_v57 = vld [vmem:[#allocation3 + $0x138] sm:$0xff]  ;;  %3109 = vmatpush.msrb.mxu2 %v3092_v12  ;;  %v5093_v12 = vld [vmem:[%s5529_s16 + $0x170] sm:$0xff] }
 0x26d   : > { %v2448_v24 = vadd.f32 %v2370_v22, %v2170_v28  ;;  %v3480_v25 = vld [vmem:[#allocation3 + $0x1b8] sm:$0xff]  ;;  %3303 = vmatpush.msrb.mxu3 %v3286_v57  ;;  %v3091_v28 = vld [vmem:[#allocation3 + $0xb0] sm:$0xff]  ;;  %v6764_v8 = vpop.f32.mrf.mxu1 }
 0x26e   : > { %5258 = vmatmul.msk.f32.gmra.mxu0 %vm277_vm1, %v5224_v10  ;;  %v3479_v10 = vld [vmem:[#allocation3 + $0x1b0] sm:$0xff]  ;;  %3110 = vmatpush.msrb.mxu2 %v3091_v28  ;;  %7901 = vst [vmem:[#allocation18_spill] sm:$0xff] %v6764_v8  ;;  %v3089_v28 = vld [vmem:[#allocation3 + $0xa0] sm:$0xff] }
 0x26f   : > { %v6749_v50 = vadd.f32 %v2648_v56, %v2448_v24  ;;  %5126 = vmatmul.msk.f32.gmra.mxu2 %vm277_vm1, %v5092_v39  ;;  %v3285_v56 = vld [vmem:[#allocation3 + $0x130] sm:$0xff]  ;;  %3497 = vmatpush.msrb.mxu0 %v3480_v25  ;;  %v3284_v24 = vld [vmem:[#allocation3 + $0x128] sm:$0xff]  ;;  %v3279_v8 = vld [vmem:[#allocation3 + $0x100] sm:$0xff] }
 0x270   : > { %5192 = vmatmul.msk.f32.gmra.mxu3 %vm277_vm1, %v5158_v61  ;;  %v3090_v61 = vld [vmem:[#allocation3 + $0xa8] sm:$0xff]  ;;  %v5159_v57 = vld [vmem:[%s5529_s16 + $0x171] sm:$0xff] }
 0x271   : > { %7900 = vst [vmem:[#allocation21_spill] sm:$0xff] %v6749_v50  ;;  %v7794_v22 = vmax.f32 %v6749_v50, 0.0  ;;  %3304 = vmatpush.msrb.mxu3 %v3285_v56  ;;  %3498 = vmatpush.msrb.mxu0 %v3479_v10  ;;  %v3478_v25 = vld [vmem:[#allocation3 + $0x1a8] sm:$0xff]  ;;  %v3283_v50 = vld [vmem:[#allocation3 + $0x120] sm:$0xff]  ;;  %v3282_v10 = vld [vmem:[#allocation3 + $0x118] sm:$0xff] }
 0x272   : > { %v2095_v52 = vpop.f32.mrf.mxu2  ;;  %v6756_v39 = vld [vmem:[#allocation2 + $0xa7] sm:$0xff]  ;;  %3111 = vmatpush.msrb.mxu2 %v3090_v61 }
 0x273   : > { %v2373_v46 = vpop.f32.mrf.mxu3  ;;  %2832 = vst [vmem:[#allocation2 + $0xb0] sm:$0xff] %v7794_v22  ;;  %v2171_v54 = vadd.f32 %v2095_v52, %v1892_v5  ;;  %2953 = vmatmul.f32.gmra.mxu1 %v6756_v39  ;;  %v2654_v49 = vpop.f32.mrf.mxu0  ;;  %3305 = vmatpush.msrb.mxu3 %v3284_v24  ;;  %v3477_v56 = vld [vmem:[#allocation3 + $0x1a0] sm:$0xff]  ;;  %v3088_v52 = vld [vmem:[#allocation3 + $0x98] sm:$0xff] }
 0x274   : > { %3112 = vmatpush.msrb.mxu2 %v3089_v28  ;;  %3499 = vmatpush.msrb.mxu0 %v3478_v25  ;;  %v3086_v25 = vld [vmem:[#allocation3 + $0x88] sm:$0xff]  ;;  %v5094_v28 = vld [vmem:[%s5529_s16 + $0x180] sm:$0xff] }
 0x275   : > { %v2449_v32 = vadd.f32 %v2373_v46, %v2171_v54  ;;  %3306 = vmatpush.msrb.mxu3 %v3283_v50  ;;  %v1893_v46 = vadd.f32 %v6437_v33, %v6337_v58  ;;  %v5226_v33 = vld [vmem:[%s5529_s16 + $0x182] sm:$0xff] }
 0x276   : > { %5259 = vmatmul.msk.f32.gmra.mxu0 %vm277_vm1, %v5225_v13  ;;  %3113 = vmatpush.msrb.mxu2 %v3088_v52  ;;  %v3476_v13 = vld [vmem:[#allocation3 + $0x198] sm:$0xff]  ;;  %v5160_v52 = vld [vmem:[%s5529_s16 + $0x181] sm:$0xff] }
 0x277   : > { %v6767_v5 = vadd.f32 %v2651_v44, %v2449_v32  ;;  %5127 = vmatmul.msk.f32.gmra.mxu2 %vm277_vm1, %v5093_v12  ;;  %v3087_v32 = vld [vmem:[#allocation3 + $0x90] sm:$0xff]  ;;  %3500 = vmatpush.msrb.mxu0 %v3477_v56 }
 0x278   : > { %5193 = vmatmul.msk.f32.gmra.mxu3 %vm277_vm1, %v5159_v57  ;;  %v3281_v12 = vld [vmem:[#allocation3 + $0x110] sm:$0xff]  ;;  %v3675_v57 = vld [vmem:[#allocation3 + $0x240] sm:$0xff]  ;;  %3114 = vmatpush.msrb.mxu2 %v3087_v32  ;;  %v3474_v32 = vld [vmem:[#allocation3 + $0x188] sm:$0xff] }
 0x279   : > { %v7795_v54 = vmax.f32 %v6767_v5, 0.0  ;;  %3307 = vmatpush.msrb.mxu3 %v3282_v10  ;;  %3690 = vmatpush.msrb.mxu1 %v3675_v57  ;;  %v3475_v56 = vld [vmem:[#allocation3 + $0x190] sm:$0xff]  ;;  %v3280_v10 = vld [vmem:[#allocation3 + $0x108] sm:$0xff] }
 0x27a   : > { %v2098_v44 = vpop.f32.mrf.mxu2  ;;  %v6774_v24 = vld [vmem:[#allocation2 + $0xaf] sm:$0xff]  ;;  %3501 = vmatpush.msrb.mxu0 %v3476_v13  ;;  %3115 = vmatpush.msrb.mxu2 %v3086_v25  ;;  %v1894_v13 = vadd.f32 %v6451_v27, %v6349_v9 }
 0x27b   : > { %v2376_v61 = vpop.f32.mrf.mxu3  ;;  %2833 = vst [vmem:[#allocation2 + $0xc8] sm:$0xff] %v7795_v54  ;;  %v2172_v50 = vadd.f32 %v2098_v44, %v1893_v46  ;;  %2956 = vmatmul.f32.gmra.mxu1 %v6774_v24  ;;  %v2657_v58 = vpop.f32.mrf.mxu0  ;;  %3308 = vmatpush.msrb.mxu3 %v3281_v12  ;;  %v3085_v54 = vld [vmem:[#allocation3 + $0x80] sm:$0xff]  ;;  %v5227_v25 = vld [vmem:[%s5529_s16 + $0x18a] sm:$0xff] }
 0x27c   : > { %v6783_v46 = vpop.f32.mrf.mxu1  ;;  %3502 = vmatpush.msrb.mxu0 %v3475_v56  ;;  %3116 = vmatpush.msrb.mxu2 %v3085_v54  ;;  %v3473_v12 = vld [vmem:[#allocation3 + $0x180] sm:$0xff]  ;;  %v5161_v9 = vld [vmem:[%s5529_s16 + $0x189] sm:$0xff] }
 0x27d   : > { %v2450_v22 = vadd.f32 %v2376_v61, %v2172_v50  ;;  %3309 = vmatpush.msrb.mxu3 %v3280_v10 }
 0x27e   : > { %5260 = vmatmul.msk.f32.gmra.mxu0 %vm277_vm1, %v5226_v33 }
 0x27f   : > { %v6785_v44 = vadd.f32 %v2654_v49, %v2450_v22  ;;  %5128 = vmatmul.msk.f32.gmra.mxu2 %vm277_vm1, %v5094_v28  ;;  %3503 = vmatpush.msrb.mxu0 %v3474_v32  ;;  %v5095_v28 = vld [vmem:[%s5529_s16 + $0x188] sm:$0xff] }
 0x280   : > { %5194 = vmatmul.msk.f32.gmra.mxu3 %vm277_vm1, %v5160_v52 }
 0x281   : > { %v2760_v61 = vmax.f32 %v6785_v44, 0.0  ;;  %3310 = vmatpush.msrb.mxu3 %v3279_v8  ;;  %3504 = vmatpush.msrb.mxu0 %v3473_v12  ;;  %v1895_v8 = vadd.f32 %v6464_v31, %v6361_v1 }
 0x282   : > { %v2101_v22 = vpop.f32.mrf.mxu2  ;;  %v6792_v50 = vld [vmem:[#allocation2 + $0xc7] sm:$0xff] }
 0x283   : > { %v2379_v49 = vpop.f32.mrf.mxu3  ;;  %2834 = vst [vmem:[#allocation2 + $0xd0] sm:$0xff] %v2760_v61  ;;  %v2173_v33 = vadd.f32 %v2101_v22, %v1894_v13  ;;  %2959 = vmatmul.f32.gmra.mxu1 %v6792_v50  ;;  %v2660_v57 = vpop.f32.mrf.mxu0  ;;  %v5228_v22 = vld [vmem:[%s5529_s16 + $0x19a] sm:$0xff] }
 0x284   : > { %v6807_v52 = vpop.f32.mrf.mxu1 }
 0x285   : > { %v2451_v27 = vadd.f32 %v2379_v49, %v2173_v33  ;;  %v3674_v49 = vld [vmem:[#allocation3 + $0x238] sm:$0xff] }
 0x286   : > { %5261 = vmatmul.msk.f32.gmra.mxu0 %vm277_vm1, %v5227_v25  ;;  %v5096_v33 = vld [vmem:[%s5529_s16 + $0x198] sm:$0xff]  ;;  %3691 = vmatpush.msrb.mxu1 %v3674_v49  ;;  %v5097_v49 = vld [vmem:[%s5529_s16 + $0x1a0] sm:$0xff] }
 0x287   : > { %v6801_v54 = vadd.f32 %v2657_v58, %v2451_v27  ;;  %5129 = vmatmul.msk.f32.gmra.mxu2 %vm277_vm1, %v5095_v28  ;;  %v5162_v25 = vld [vmem:[%s5529_s16 + $0x199] sm:$0xff]  ;;  %v1896_v28 = vadd.f32 %v6479_v35, %v6373_v7  ;;  %v1897_v35 = vadd.f32 %v6490_v45, %v6384_v47  ;;  %v7902_v45 = vmov 0.0  }
 0x288   : > { %5195 = vmatmul.msk.f32.gmra.mxu3 %vm277_vm1, %v5161_v9 }
 0x289   : > { %v7798_v56 = vmax.f32 %v6801_v54, 0.0 }
 0x28a   : > { %v2104_v10 = vpop.f32.mrf.mxu2  ;;  %v6810_v13 = vld [vmem:[#allocation2 + $0xcf] sm:$0xff] }
 0x28b   : > { %v2382_v32 = vpop.f32.mrf.mxu3  ;;  %2835 = vst [vmem:[#allocation2 + $0xe8] sm:$0xff] %v7798_v56  ;;  %v2174_v58 = vadd.f32 %v2104_v10, %v1895_v8  ;;  %2962 = vmatmul.f32.gmra.mxu1 %v6810_v13  ;;  %v2663_v12 = vpop.f32.mrf.mxu0 }
 0x28d   : > { %v2452_v1 = vadd.f32 %v2382_v32, %v2174_v58  ;;  %v5229_v58 = vld [vmem:[%s5529_s16 + $0x1a2] sm:$0xff] }
 0x28e   : > { %5262 = vmatmul.msk.f32.gmra.mxu0 %vm277_vm1, %v5228_v22  ;;  %v6832_v22 = vpop.f32.mrf.mxu1 }
 0x28f   : > { %v6819_v31 = vadd.f32 %v2660_v57, %v2452_v1  ;;  %5130 = vmatmul.msk.f32.gmra.mxu2 %vm277_vm1, %v5096_v33  ;;  %v5163_v33 = vld [vmem:[%s5529_s16 + $0x1a1] sm:$0xff] }
 0x290   : > { %5196 = vmatmul.msk.f32.gmra.mxu3 %vm277_vm1, %v5162_v25 }
 0x291   : > { %v7796_v9 = vmax.f32 %v6819_v31, 0.0 }
 0x292   : > { %v2107_v27 = vpop.f32.mrf.mxu2  ;;  %v6826_v10 = vld [vmem:[#allocation2 + $0xe7] sm:$0xff] }
 0x293   : > { %v2385_v8 = vpop.f32.mrf.mxu3  ;;  %2836 = vst [vmem:[#allocation2 + $0xf0] sm:$0xff] %v7796_v9  ;;  %v2175_v32 = vadd.f32 %v2107_v27, %v1896_v28  ;;  %2965 = vmatmul.f32.gmra.mxu1 %v6826_v10  ;;  %v2666_v57 = vpop.f32.mrf.mxu0 }
 0x295   : > { %v2453_v25 = vadd.f32 %v2385_v8, %v2175_v32  ;;  %v3673_v32 = vld [vmem:[#allocation3 + $0x230] sm:$0xff] }
 0x296   : > { %5263 = vmatmul.msk.f32.gmra.mxu0 %vm277_vm1, %v5229_v58  ;;  %v3246_v58 = vld [vmem:[#allocation2 + $0x9] sm:$0xff]  ;;  %3692 = vmatpush.msrb.mxu1 %v3673_v32 }
 0x297   : > { %v6837_v7 = vadd.f32 %v2663_v12, %v2453_v25  ;;  %5131 = vmatmul.msk.f32.gmra.mxu2 %vm277_vm1, %v5097_v49  ;;  %v6849_v49 = vpop.f32.mrf.mxu1  ;;  %v1898_v25 = vadd.f32 %v6506_v2, %v6393_v16  ;;  %v1899_v2 = vadd.f32 %v6529_v62, %v6404_v3  ;;  %v7903_v62 = vmax.f32 %v6601_v36, 0.0 }
 0x298   : > { %5197 = vmatmul.msk.f32.gmra.mxu3 %vm277_vm1, %v5163_v33 }
 0x299   : > { %v7797_v1 = vmax.f32 %v6837_v7, 0.0 }
 0x29a   : > { %v2110_v28 = vpop.f32.mrf.mxu2  ;;  %v6844_v9 = vld [vmem:[#allocation2 + $0xef] sm:$0xff] }
 0x29b   : > { %v2388_v27 = vpop.f32.mrf.mxu3  ;;  %2837 = vst [vmem:[#allocation2 + $0x108] sm:$0xff] %v7797_v1  ;;  %v2176_v8 = vadd.f32 %v2110_v28, %v1897_v35  ;;  %2968 = vmatmul.f32.gmra.mxu1 %v6844_v9  ;;  %v2669_v12 = vpop.f32.mrf.mxu0 }
 0x29d   : > { %v2454_v33 = vadd.f32 %v2388_v27, %v2176_v8 }
 0x29e   : > { %3505 = vmatmul.f32.vlgmr.msrb.gmra.mxu0 %v6620_v51 }
 0x29f   : > { %v6852_v47 = vadd.f32 %v2666_v57, %v2454_v33  ;;  %3117 = vmatmul.f32.vlgmr.msrb.gmra.mxu2 %v7902_v45  ;;  %v3247_v57 = vld [vmem:[#allocation2 + $0x11] sm:$0xff]  ;;  %v6864_v32 = vpop.f32.mrf.mxu1 }
 0x2a0   : > { %3311 = vmatmul.f32.vlgmr.msrb.gmra.mxu3 %v3246_v58 }
 0x2a1   : > { %v2764_v35 = vmax.f32 %v6852_v47, 0.0 }
 0x2a2   : > { %v2113_v28 = vpop.f32.mrf.mxu2  ;;  %v6858_v56 = vld [vmem:[#allocation2 + $0x107] sm:$0xff] }
 0x2a3   : > { %v2391_v1 = vpop.f32.mrf.mxu3  ;;  %2838 = vst [vmem:[#allocation2 + $0x110] sm:$0xff] %v2764_v35  ;;  %v2177_v27 = vadd.f32 %v2113_v28, %v1898_v25  ;;  %2971 = vmatmul.f32.gmra.mxu1 %v6858_v56  ;;  %v2672_v51 = vpop.f32.mrf.mxu0 }
 0x2a5   : > { %v2455_v8 = vadd.f32 %v2391_v1, %v2177_v27  ;;  %v3248_v27 = vld [vmem:[#allocation2 + $0x29] sm:$0xff] }
 0x2a6   : > { %3508 = vmatmul.f32.gmra.mxu0 %v6637_v21 }
 0x2a7   : > { %v6866_v16 = vadd.f32 %v2669_v12, %v2455_v8  ;;  %3120 = vmatmul.f32.gmra.mxu2 %v7902_v45  ;;  %v3672_v12 = vld [vmem:[#allocation3 + $0x228] sm:$0xff]  ;;  %v1900_v8 = vadd.f32 %v6554_v17, %v6415_v19  ;;  %v7904_v19 = vmax.f32 %v6615_v60, 0.0 }
 0x2a8   : > { %3314 = vmatmul.f32.gmra.mxu3 %v3247_v57  ;;  %3693 = vmatpush.msrb.mxu1 %v3672_v12 }
 0x2a9   : > { %v7799_v58 = vmax.f32 %v6866_v16, 0.0 }
 0x2aa   : > { %v2116_v33 = vpop.f32.mrf.mxu2  ;;  %v6872_v28 = vld [vmem:[#allocation2 + $0x10f] sm:$0xff] }
 0x2ab   : > { %v2394_v25 = vpop.f32.mrf.mxu3  ;;  %2839 = vst [vmem:[#allocation2 + $0x128] sm:$0xff] %v7799_v58  ;;  %v2178_v21 = vadd.f32 %v2116_v33, %v1899_v2  ;;  %2974 = vmatmul.f32.gmra.mxu1 %v6872_v28  ;;  %v2675_v1 = vpop.f32.mrf.mxu0 }
 0x2ad   : > { %v2456_v45 = vadd.f32 %v2394_v25, %v2178_v21  ;;  %v3249_v25 = vld [vmem:[#allocation2 + $0x31] sm:$0xff] }
 0x2ae   : > { %3511 = vmatmul.f32.gmra.mxu0 %v6652_v59 }
 0x2af   : > { %v6878_v3 = vadd.f32 %v2672_v51, %v2456_v45  ;;  %3123 = vmatmul.f32.gmra.mxu2 %v7903_v62  ;;  %v1901_v45 = vadd.f32 %v6575_v48, %v6424_v41  ;;  %v7905_v48 = vmax.f32 %v6630_v34, 0.0 }
 0x2b0   : > { %3317 = vmatmul.f32.gmra.mxu3 %v3248_v27  ;;  %v6882_v57 = vpop.f32.mrf.mxu1 }
 0x2b1   : > { %v7809_v2 = vmax.f32 %v6878_v3, 0.0 }
 0x2b2   : > { %v2119_v33 = vpop.f32.mrf.mxu2  ;;  %v6887_v12 = vld [vmem:[#allocation2 + $0x127] sm:$0xff] }
 0x2b3   : > { %v2397_v58 = vpop.f32.mrf.mxu3  ;;  %2840 = vst [vmem:[#allocation2 + $0x130] sm:$0xff] %v7809_v2  ;;  %v2179_v59 = vadd.f32 %v2119_v33, %v1900_v8  ;;  %2977 = vmatmul.f32.gmra.mxu1 %v6887_v12  ;;  %v2678_v36 = vpop.f32.mrf.mxu0 }
 0x2b5   : > { %v2457_v51 = vadd.f32 %v2397_v58, %v2179_v59  ;;  %v3671_v58 = vld [vmem:[#allocation3 + $0x220] sm:$0xff]  ;;  %v3250_v59 = vld [vmem:[#allocation2 + $0x49] sm:$0xff] }
 0x2b6   : > { %3514 = vmatmul.f32.gmra.mxu0 %v6669_v14  ;;  %3694 = vmatpush.msrb.mxu1 %v3671_v58 }
 0x2b7   : > { %v6893_v21 = vadd.f32 %v2675_v1, %v2457_v51  ;;  %3126 = vmatmul.f32.gmra.mxu2 %v7904_v19 }
 0x2b8   : > { %3320 = vmatmul.f32.gmra.mxu3 %v3249_v25  ;;  %v6897_v17 = vpop.f32.mrf.mxu1  ;;  %v1902_v25 = vadd.f32 %v6597_v53, %v6435_v23  ;;  %v7906_v23 = vmax.f32 %v6647_v6, 0.0 }
 0x2b9   : > { %v7807_v27 = vmax.f32 %v6893_v21, 0.0 }
 0x2ba   : > { %v2122_v62 = vpop.f32.mrf.mxu2  ;;  %v6902_v33 = vld [vmem:[#allocation2 + $0x12f] sm:$0xff] }
 0x2bb   : > { %v2400_v8 = vpop.f32.mrf.mxu3  ;;  %2841 = vst [vmem:[#allocation2 + $0x148] sm:$0xff] %v7807_v27  ;;  %v2180_v14 = vadd.f32 %v2122_v62, %v1901_v45  ;;  %2980 = vmatmul.f32.gmra.mxu1 %v6902_v33  ;;  %v2681_v60 = vpop.f32.mrf.mxu0 }
 0x2bd   : > { %v2458_v1 = vadd.f32 %v2400_v8, %v2180_v14  ;;  %v3251_v8 = vld [vmem:[#allocation2 + $0x51] sm:$0xff] }
 0x2be   : > { %3517 = vmatmul.f32.gmra.mxu0 %v6686_v11 }
 0x2bf   : > { %v6908_v41 = vadd.f32 %v2678_v36, %v2458_v1  ;;  %3129 = vmatmul.f32.gmra.mxu2 %v7905_v48  ;;  %v1903_v1 = vadd.f32 %v6613_v29, %v6446_v42  ;;  %v7907_v29 = vmax.f32 %v6664_v37, 0.0 }
 0x2c0   : > { %3323 = vmatmul.f32.gmra.mxu3 %v3250_v59  ;;  %v6912_v51 = vpop.f32.mrf.mxu1 }
 0x2c1   : > { %v7805_v19 = vmax.f32 %v6908_v41, 0.0 }
 0x2c2   : > { %v2125_v45 = vpop.f32.mrf.mxu2  ;;  %v6917_v58 = vld [vmem:[#allocation2 + $0x147] sm:$0xff] }
 0x2c3   : > { %v2403_v62 = vpop.f32.mrf.mxu3  ;;  %2842 = vst [vmem:[#allocation2 + $0x150] sm:$0xff] %v7805_v19  ;;  %v2181_v11 = vadd.f32 %v2125_v45, %v1902_v25  ;;  %2983 = vmatmul.f32.gmra.mxu1 %v6917_v58  ;;  %v2684_v34 = vpop.f32.mrf.mxu0 }
 0x2c5   : > { %v2459_v36 = vadd.f32 %v2403_v62, %v2181_v11  ;;  %v3252_v11 = vld [vmem:[#allocation2 + $0x69] sm:$0xff] }
 0x2c6   : > { %3520 = vmatmul.f32.gmra.mxu0 %v6703_v18 }
 0x2c7   : > { %v6923_v14 = vadd.f32 %v2681_v60, %v2459_v36  ;;  %3132 = vmatmul.f32.gmra.mxu2 %v7906_v23  ;;  %v3670_v60 = vld [vmem:[#allocation3 + $0x218] sm:$0xff] }
 0x2c8   : > { %3326 = vmatmul.f32.gmra.mxu3 %v3251_v8  ;;  %v6927_v53 = vpop.f32.mrf.mxu1  ;;  %3695 = vmatpush.msrb.mxu1 %v3670_v60  ;;  %v1904_v8 = vadd.f32 %v6634_v55, %v6457_v15  ;;  %v7908_v15 = vmax.f32 %v6681_v26, 0.0 }
 0x2c9   : > { %v7804_v59 = vmax.f32 %v6923_v14, 0.0 }
 0x2ca   : > { %v2128_v48 = vpop.f32.mrf.mxu2  ;;  %v6932_v45 = vld [vmem:[#allocation2 + $0x14f] sm:$0xff] }
 0x2cb   : > { %v2406_v25 = vpop.f32.mrf.mxu3  ;;  %2843 = vst [vmem:[#allocation2 + $0x168] sm:$0xff] %v7804_v59  ;;  %v2182_v18 = vadd.f32 %v2128_v48, %v1903_v1  ;;  %2986 = vmatmul.f32.gmra.mxu1 %v6932_v45  ;;  %v2687_v6 = vpop.f32.mrf.mxu0 }
 0x2cd   : > { %v2460_v62 = vadd.f32 %v2406_v25, %v2182_v18  ;;  %v3253_v25 = vld [vmem:[#allocation2 + $0x71] sm:$0xff] }
 0x2ce   : > { %3523 = vmatmul.f32.gmra.mxu0 %v6722_v20 }
 0x2cf   : > { %v6938_v42 = vadd.f32 %v2684_v34, %v2460_v62  ;;  %3135 = vmatmul.f32.gmra.mxu2 %v7907_v29  ;;  %v1905_v62 = vadd.f32 %v6654_v30, %v6468_v38  ;;  %v7909_v30 = vmax.f32 %v6698_v63, 0.0 }
 0x2d0   : > { %3329 = vmatmul.f32.gmra.mxu3 %v3252_v11  ;;  %v6942_v36 = vpop.f32.mrf.mxu1 }
 0x2d1   : > { %v7803_v23 = vmax.f32 %v6938_v42, 0.0 }
 0x2d2   : > { %v2131_v1 = vpop.f32.mrf.mxu2  ;;  %v6947_v60 = vld [vmem:[#allocation2 + $0x167] sm:$0xff] }
 0x2d3   : > { %v2409_v48 = vpop.f32.mrf.mxu3  ;;  %2844 = vst [vmem:[#allocation2 + $0x170] sm:$0xff] %v7803_v23  ;;  %v2183_v20 = vadd.f32 %v2131_v1, %v1904_v8  ;;  %2989 = vmatmul.f32.gmra.mxu1 %v6947_v60  ;;  %v2690_v37 = vpop.f32.mrf.mxu0 }
 0x2d5   : > { %v2461_v34 = vadd.f32 %v2409_v48, %v2183_v20  ;;  %v3254_v20 = vld [vmem:[#allocation2 + $0x89] sm:$0xff] }
 0x2d6   : > { %3526 = vmatmul.f32.gmra.mxu0 %v6738_v0 }
 0x2d7   : > { %v6953_v18 = vadd.f32 %v2687_v6, %v2461_v34  ;;  %3138 = vmatmul.f32.gmra.mxu2 %v7908_v15  ;;  %v3669_v6 = vld [vmem:[#allocation3 + $0x210] sm:$0xff] }
 0x2d8   : > { %3332 = vmatmul.f32.gmra.mxu3 %v3253_v25  ;;  %v6957_v55 = vpop.f32.mrf.mxu1  ;;  %3696 = vmatpush.msrb.mxu1 %v3669_v6  ;;  %v1906_v25 = vadd.f32 %v6678_v4, %v6477_v40  ;;  %v7910_v40 = vmax.f32 %v6713_v43, 0.0 }
 0x2d9   : > { %v7801_v11 = vmax.f32 %v6953_v18, 0.0 }
 0x2da   : > { %v2134_v29 = vpop.f32.mrf.mxu2  ;;  %v6962_v1 = vld [vmem:[#allocation2 + $0x16f] sm:$0xff] }
 0x2db   : > { %v2412_v8 = vpop.f32.mrf.mxu3  ;;  %2845 = vst [vmem:[#allocation2 + $0x188] sm:$0xff] %v7801_v11  ;;  %v2184_v0 = vadd.f32 %v2134_v29, %v1905_v62  ;;  %2992 = vmatmul.f32.gmra.mxu1 %v6962_v1  ;;  %v2693_v26 = vpop.f32.mrf.mxu0 }
 0x2dd   : > { %v2462_v48 = vadd.f32 %v2412_v8, %v2184_v0  ;;  %v3255_v8 = vld [vmem:[#allocation2 + $0x91] sm:$0xff] }
 0x2de   : > { %3529 = vmatmul.f32.gmra.mxu0 %v6756_v39 }
 0x2df   : > { %v6968_v38 = vadd.f32 %v2690_v37, %v2462_v48  ;;  %3141 = vmatmul.f32.gmra.mxu2 %v7909_v30  ;;  %v7911_v48 = vld [vmem:[#allocation10_spill] sm:$0xff] }
 0x2e0   : > { %3335 = vmatmul.f32.gmra.mxu3 %v3254_v20  ;;  %v6972_v34 = vpop.f32.mrf.mxu1  ;;  %v7912_v20 = vld [vmem:[#allocation15_spill] sm:$0xff] }
 0x2e1   : > { %v7800_v15 = vmax.f32 %v6968_v38, 0.0  ;;  %v1907_v30 = vadd.f32 %v7912_v20, %v7911_v48  ;;  %v7915_v20 = vld [vmem:[#allocation9_spill] sm:$0xff] }
 0x2e2   : > { %v2137_v62 = vpop.f32.mrf.mxu2  ;;  %v6977_v6 = vld [vmem:[#allocation2 + $0x187] sm:$0xff] }
 0x2e3   : > { %v2415_v29 = vpop.f32.mrf.mxu3  ;;  %2846 = vst [vmem:[#allocation2 + $0x190] sm:$0xff] %v7800_v15  ;;  %v2185_v39 = vadd.f32 %v2137_v62, %v1906_v25  ;;  %2995 = vmatmul.f32.gmra.mxu1 %v6977_v6  ;;  %v2696_v63 = vpop.f32.mrf.mxu0 }
 0x2e5   : > { %v2463_v37 = vadd.f32 %v2415_v29, %v2185_v39  ;;  %v3256_v39 = vld [vmem:[#allocation2 + $0xa9] sm:$0xff] }
 0x2e6   : > { %3532 = vmatmul.f32.gmra.mxu0 %v6774_v24 }
 0x2e7   : > { %v6983_v0 = vadd.f32 %v2693_v26, %v2463_v37  ;;  %3144 = vmatmul.f32.gmra.mxu2 %v7910_v40  ;;  %v3668_v26 = vld [vmem:[#allocation3 + $0x208] sm:$0xff] }
 0x2e8   : > { %3338 = vmatmul.f32.gmra.mxu3 %v3255_v8  ;;  %v6987_v4 = vpop.f32.mrf.mxu1  ;;  %3697 = vmatpush.msrb.mxu1 %v3668_v26  ;;  %v7913_v8 = vld [vmem:[#allocation19_spill] sm:$0xff] }
 0x2e9   : > { %v7802_v25 = vmax.f32 %v6983_v0, 0.0  ;;  %v7914_v40 = vmax.f32 %v7913_v8, 0.0 }
 0x2ea   : > { %v2140_v62 = vpop.f32.mrf.mxu2  ;;  %v6992_v11 = vld [vmem:[#allocation2 + $0x18f] sm:$0xff] }
 0x2eb   : > { %v2418_v15 = vpop.f32.mrf.mxu3  ;;  %2847 = vst [vmem:[#allocation2 + $0x1a8] sm:$0xff] %v7802_v25  ;;  %v2186_v24 = vadd.f32 %v2140_v62, %v1907_v30  ;;  %2998 = vmatmul.f32.gmra.mxu1 %v6992_v11  ;;  %v2699_v43 = vpop.f32.mrf.mxu0  ;;  %v7916_v25 = vld [vmem:[#allocation44_spill] sm:$0xff] }
 0x2ec   : > { %v1908_v30 = vadd.f32 %v7916_v25, %v7915_v20  ;;  %v7917_v25 = vld [vmem:[#allocation21_spill] sm:$0xff] }
 0x2ed   : > { %v2464_v29 = vadd.f32 %v2418_v15, %v2186_v24  ;;  %v3257_v24 = vld [vmem:[#allocation2 + $0xb1] sm:$0xff]  ;;  %v7920_v20 = vld [vmem:[#allocation17_spill] sm:$0xff] }
 0x2ee   : > { %3535 = vmatmul.f32.gmra.mxu0 %v6792_v50 }
 0x2ef   : > { %v6998_v37 = vadd.f32 %v2696_v63, %v2464_v29  ;;  %3147 = vmatmul.f32.gmra.mxu2 %v7914_v40  ;;  %v7919_v40 = vld [vmem:[#allocation12_spill] sm:$0xff] }
 0x2f0   : > { %3341 = vmatmul.f32.gmra.mxu3 %v3256_v39  ;;  %v7002_v48 = vpop.f32.mrf.mxu1  ;;  %v7918_v39 = vmax.f32 %v7917_v25, 0.0  ;;  %v1909_v19 = vadd.f32 %v7920_v20, %v7919_v40  ;;  %v3258_v25 = vld [vmem:[#allocation2 + $0xc9] sm:$0xff]  ;;  %v7921_v40 = vmax.f32 %v6767_v5, 0.0 }
 0x2f1   : > { %v7806_v62 = vmax.f32 %v6998_v37, 0.0  ;;  %v7922_v20 = vld [vmem:[#allocation11_spill] sm:$0xff] }
 0x2f2   : > { %v2143_v23 = vpop.f32.mrf.mxu2  ;;  %v7007_v26 = vld [vmem:[#allocation2 + $0x1a7] sm:$0xff] }
 0x2f3   : > { %v2421_v59 = vpop.f32.mrf.mxu3  ;;  %2848 = vst [vmem:[#allocation2 + $0x1b0] sm:$0xff] %v7806_v62  ;;  %v2187_v50 = vadd.f32 %v2143_v23, %v1908_v30  ;;  %3001 = vmatmul.f32.gmra.mxu1 %v7007_v26  ;;  %v2702_v15 = vpop.f32.mrf.mxu0 }
 0x2f5   : > { %v2465_v63 = vadd.f32 %v2421_v59, %v2187_v50  ;;  %v3876_v50 = vld [vmem:[#allocation3 + $0x2f8] sm:$0xff] }
 0x2f6   : > { %3538 = vmatmul.f32.gmra.mxu0 %v6810_v13  ;;  %3877 = vmatpush.msra.mxu2 %v3876_v50 }
 0x2f7   : > { %v7013_v29 = vadd.f32 %v2699_v43, %v2465_v63  ;;  %3150 = vmatmul.f32.gmra.mxu2 %v7918_v39  ;;  %v3667_v43 = vld [vmem:[#allocation3 + $0x200] sm:$0xff]  ;;  %v4071_v63 = vld [vmem:[#allocation3 + $0x378] sm:$0xff] }
 0x2f8   : > { %3344 = vmatmul.f32.gmra.mxu3 %v3257_v24  ;;  %v7017_v8 = vpop.f32.mrf.mxu1  ;;  %3698 = vmatpush.msrb.mxu1 %v3667_v43 }
 0x2f9   : > { %v7808_v23 = vmax.f32 %v7013_v29, 0.0  ;;  %4072 = vmatpush.msra.mxu3 %v4071_v63  ;;  %v4459_v63 = vld [vmem:[#allocation3 + $0x478] sm:$0xff] }
 0x2fa   : > { %v2146_v30 = vpop.f32.mrf.mxu2  ;;  %v7022_v27 = vld [vmem:[#allocation2 + $0x1af] sm:$0xff]  ;;  %4460 = vmatpush.msra.mxu1 %v4459_v63  ;;  %v7925_v63 = vmax.f32 %v6801_v54, 0.0 }
 0x2fb   : > { %v2424_v62 = vpop.f32.mrf.mxu3  ;;  %2849 = vst [vmem:[#allocation2 + $0x1c8] sm:$0xff] %v7808_v23  ;;  %v2188_v13 = vadd.f32 %v2146_v30, %v1909_v19  ;;  %3004 = vmatmul.f32.gmra.mxu1 %v7022_v27  ;;  %v2705_v59 = vpop.f32.mrf.mxu0  ;;  %v7923_v30 = vld [vmem:[#allocation18_spill] sm:$0xff] }
 0x2fc   : > { %v1910_v23 = vadd.f32 %v7923_v30, %v7922_v20 }
 0x2fd   : > { %v2466_v24 = vadd.f32 %v2424_v62, %v2188_v13 }
 0x2fe   : > { %3541 = vmatmul.f32.gmra.mxu0 %v6826_v10 }
 0x2ff   : > { %v7028_v39 = vadd.f32 %v2702_v15, %v2466_v24  ;;  %3153 = vmatmul.f32.gmra.mxu2 %v7921_v40  ;;  %v4265_v15 = vld [vmem:[#allocation3 + $0x3f8] sm:$0xff]  ;;  %v3875_v40 = vld [vmem:[#allocation3 + $0x2f0] sm:$0xff] }
 0x300   : > { %3347 = vmatmul.f32.gmra.mxu3 %v3258_v25  ;;  %v7032_v19 = vpop.f32.mrf.mxu1  ;;  %4266 = vmatpush.msra.mxu0 %v4265_v15  ;;  %v3259_v24 = vld [vmem:[#allocation2 + $0xd1] sm:$0xff] }
 0x301   : > { %v7812_v2 = vmax.f32 %v7028_v39, 0.0  ;;  %3878 = vmatpush.msra.mxu2 %v3875_v40  ;;  %v7926_v40 = vld [vmem:[#allocation13_spill] sm:$0xff] }
 0x302   : > { %v2149_v43 = vpop.f32.mrf.mxu2  ;;  %v7037_v62 = vld [vmem:[#allocation2 + $0x1c7] sm:$0xff] }
 0x303   : > { %v2427_v50 = vpop.f32.mrf.mxu3  ;;  %2850 = vst [vmem:[#allocation2 + $0x1d0] sm:$0xff] %v7812_v2  ;;  %v2189_v10 = vadd.f32 %v2149_v43, %v1910_v23  ;;  %3007 = vmatmul.f32.gmra.mxu1 %v7037_v62  ;;  %v2708_v5 = vpop.f32.mrf.mxu0  ;;  %v7924_v23 = vld [vmem:[#allocation14_spill] sm:$0xff] }
 0x304   : > { %v1911_v30 = vadd.f32 %v6783_v46, %v7924_v23  ;;  %v1912_v23 = vadd.f32 %v6807_v52, %v7926_v40 }
 0x305   : > { %v2467_v13 = vadd.f32 %v2427_v50, %v2189_v10  ;;  %v4070_v50 = vld [vmem:[#allocation3 + $0x370] sm:$0xff] }
 0x306   : > { %3544 = vmatmul.f32.gmra.mxu0 %v6844_v9  ;;  %4073 = vmatpush.msra.mxu3 %v4070_v50  ;;  %v4264_v50 = vld [vmem:[#allocation3 + $0x3f0] sm:$0xff] }
 0x307   : > { %v7043_v25 = vadd.f32 %v2705_v59, %v2467_v13  ;;  %3156 = vmatmul.f32.gmra.mxu2 %v2760_v61  ;;  %v3260_v13 = vld [vmem:[#allocation2 + $0xe9] sm:$0xff]  ;;  %4267 = vmatpush.msra.mxu0 %v4264_v50  ;;  %v7928_v50 = vld [vmem:[#allocation16_spill] sm:$0xff] }
 0x308   : > { %3350 = vmatmul.f32.gmra.mxu3 %v3259_v24  ;;  %v7047_v20 = vpop.f32.mrf.mxu1 }
 0x309   : > { %v7810_v43 = vmax.f32 %v7043_v25, 0.0 }
 0x30a   : > { %v2152_v10 = vpop.f32.mrf.mxu2  ;;  %v7052_v9 = vld [vmem:[#allocation2 + $0x1cf] sm:$0xff] }
 0x30b   : > { %v2430_v15 = vpop.f32.mrf.mxu3  ;;  %2851 = vst [vmem:[#allocation2 + $0x1e8] sm:$0xff] %v7810_v43  ;;  %v2190_v44 = vadd.f32 %v2152_v10, %v1911_v30  ;;  %3010 = vmatmul.f32.gmra.mxu1 %v7052_v9  ;;  %v2711_v61 = vpop.f32.mrf.mxu0 }
 0x30d   : > { %v2468_v59 = vadd.f32 %v2430_v15, %v2190_v44  ;;  %v4458_v44 = vld [vmem:[#allocation3 + $0x470] sm:$0xff] }
 0x30e   : > { %3547 = vmatmul.f32.gmra.mxu0 %v6858_v56  ;;  %4461 = vmatpush.msra.mxu1 %v4458_v44  ;;  %v3262_v44 = vld [vmem:[#allocation2 + $0x109] sm:$0xff] }
 0x30f   : > { %v7058_v46 = vadd.f32 %v2708_v5, %v2468_v59  ;;  %3159 = vmatmul.f32.gmra.mxu2 %v7925_v63  ;;  %v3261_v59 = vld [vmem:[#allocation2 + $0xf1] sm:$0xff]  ;;  %v3874_v63 = vld [vmem:[#allocation3 + $0x2e8] sm:$0xff] }
 0x310   : > { %3353 = vmatmul.f32.gmra.mxu3 %v3260_v13  ;;  %v7062_v24 = vpop.f32.mrf.mxu1  ;;  %v7927_v13 = vmax.f32 %v6819_v31, 0.0  ;;  %3879 = vmatpush.msra.mxu2 %v3874_v63  ;;  %v4263_v63 = vld [vmem:[#allocation3 + $0x3e8] sm:$0xff] }
 0x311   : > { %v7811_v30 = vmax.f32 %v7058_v46, 0.0  ;;  %4268 = vmatpush.msra.mxu0 %v4263_v63 }
 0x312   : > { %v2155_v10 = vpop.f32.mrf.mxu2  ;;  %v7067_v15 = vld [vmem:[#allocation2 + $0x1e7] sm:$0xff] }
 0x313   : > { %v2433_v43 = vpop.f32.mrf.mxu3  ;;  %2852 = vst [vmem:[#allocation2 + $0x1f0] sm:$0xff] %v7811_v30  ;;  %v2191_v56 = vadd.f32 %v2155_v10, %v1912_v23  ;;  %3013 = vmatmul.f32.gmra.mxu1 %v7067_v15  ;;  %v2714_v54 = vpop.f32.mrf.mxu0  ;;  %v1913_v23 = vadd.f32 %v6832_v22, %v7928_v50  ;;  %v4069_v30 = vld [vmem:[#allocation3 + $0x368] sm:$0xff] }
 0x314   : > { %4074 = vmatpush.msra.mxu3 %v4069_v30 }
 0x315   : > { %v2469_v5 = vadd.f32 %v2433_v43, %v2191_v56 }
 0x316   : > { %3550 = vmatmul.f32.gmra.mxu0 %v6872_v28 }
 0x317   : > { %v2747_v52 = vadd.f32 %v2711_v61, %v2469_v5  ;;  %3162 = vmatmul.f32.gmra.mxu2 %v7927_v13  ;;  %v7085_v61 = vld [vmem:[%s7759_s4] ss:$0 sm:$0xff] }
 0x318   : > { %3356 = vmatmul.f32.gmra.mxu3 %v3261_v59  ;;  %v7075_v40 = vpop.f32.mrf.mxu1  ;;  %v7929_v59 = vmax.f32 %v6837_v7, 0.0  ;;  %v3263_v7 = vld [vmem:[#allocation2 + $0x111] sm:$0xff] }
 0x319   : > { %v2779_v10 = vmax.f32 %v2747_v52, 0.0  ;;  %v3020_v52 = vadd.f32 %v7085_v61, %v6849_v49  ;;  %v3873_v49 = vld [vmem:[#allocation3 + $0x2e0] sm:$0xff] }
 0x31a   : > { %v2158_v43 = vpop.f32.mrf.mxu2  ;;  %v7079_v2 = vld [vmem:[#allocation2 + $0x1ef] sm:$0xff]  ;;  %3880 = vmatpush.msra.mxu2 %v3873_v49  ;;  %v4456_v49 = vld [vmem:[#allocation3 + $0x460] sm:$0xff] }
 0x31b   : > { %v2436_v56 = vpop.f32.mrf.mxu3  ;;  %2853 = vst [vmem:[#allocation2 + $0x208] sm:$0xff] %v2779_v10  ;;  %v2192_v28 = vadd.f32 %v2158_v43, %v1913_v23  ;;  %3016 = vmatmul.f32.gmra.mxu1 %v7079_v2  ;;  %v3506_v31 = vpop.f32.mrf.mxu0  ;;  %v3634_v10 = vld [vmem:[#allocation2 + $0x28] sm:$0xff] }
 0x31d   : > { %v2470_v5 = vadd.f32 %v2436_v56, %v2192_v28  ;;  %v4457_v56 = vld [vmem:[#allocation3 + $0x468] sm:$0xff] }
 0x31e   : > { %3553 = vmatmul.f32.gmra.mxu0 %v6887_v12  ;;  %4462 = vmatpush.msra.mxu1 %v4457_v56  ;;  %v7112_v56 = vld [vmem:[#allocation2 + $0x48] sm:$0xff] }
 0x31f   : > { %v2748_v22 = vadd.f32 %v2714_v54, %v2470_v5  ;;  %3165 = vmatmul.f32.gmra.mxu2 %v7929_v59 }
 0x320   : > { %3359 = vmatmul.f32.gmra.mxu3 %v3262_v44  ;;  %v7090_v30 = vpop.f32.mrf.mxu1  ;;  %v3021_v44 = vadd.f32 %v7085_v61, %v6864_v32  ;;  %v3022_v32 = vadd.f32 %v7085_v61, %v6882_v57  ;;  %4463 = vmatpush.msra.mxu1 %v4456_v49  ;;  %v3872_v57 = vld [vmem:[#allocation3 + $0x2d8] sm:$0xff]  ;;  %v7136_v49 = vld [vmem:[#allocation2 + $0x68] sm:$0xff] }
 0x321   : > { %v2780_v13 = vmax.f32 %v2748_v22, 0.0  ;;  %v4068_v22 = vld [vmem:[#allocation3 + $0x360] sm:$0xff]  ;;  %3881 = vmatpush.msra.mxu2 %v3872_v57  ;;  %v3267_v57 = vld [vmem:[#allocation2 + $0x151] sm:$0xff] }
 0x322   : > { %v3118_v50 = vpop.f32.mrf.mxu2  ;;  %4075 = vmatpush.msra.mxu3 %v4068_v22 }
 0x323   : > { %v3312_v23 = vpop.f32.mrf.mxu3  ;;  %2854 = vst [vmem:[#allocation2 + $0x210] sm:$0xff] %v2780_v13  ;;  %v3214_v43 = vadd.f32 %v3118_v50, %v3020_v52  ;;  %3699 = vmatmul.f32.vlgmr.msrb.gmra.mxu1 %v3634_v10  ;;  %v3509_v12 = vpop.f32.mrf.mxu0  ;;  %v3635_v13 = vld [vmem:[#allocation2 + $0x30] sm:$0xff]  ;;  %v4262_v10 = vld [vmem:[#allocation3 + $0x3e0] sm:$0xff] }
 0x324   : > { %4269 = vmatpush.msra.mxu0 %v4262_v10 }
 0x325   : > { %v3408_v54 = vadd.f32 %v3312_v23, %v3214_v43 }
 0x326   : > { %3556 = vmatmul.f32.gmra.mxu0 %v6902_v33 }
 0x327   : > { %3168 = vmatmul.f32.gmra.mxu2 %v2764_v35  ;;  %v7097_v28 = vadd.f32 %v3506_v31, %v3408_v54  ;;  %v3264_v35 = vld [vmem:[#allocation2 + $0x129] sm:$0xff]  ;;  %v7930_v31 = vmax.f32 %v6866_v16, 0.0 }
 0x328   : > { %3362 = vmatmul.f32.gmra.mxu3 %v3263_v7  ;;  %v7099_v5 = vpop.f32.mrf.mxu1 }
 0x32a   : > { %v3121_v59 = vpop.f32.mrf.mxu2 }
 0x32b   : > { %v3315_v52 = vpop.f32.mrf.mxu3  ;;  %v3215_v33 = vadd.f32 %v3121_v59, %v3021_v44  ;;  %3702 = vmatmul.f32.gmra.mxu1 %v3635_v13  ;;  %v3512_v63 = vpop.f32.mrf.mxu0  ;;  %v3265_v44 = vld [vmem:[#allocation2 + $0x131] sm:$0xff] }
 0x32c   : > { %v4067_v13 = vld [vmem:[#allocation3 + $0x358] sm:$0xff] }
 0x32d   : > { %v3409_v47 = vadd.f32 %v3315_v52, %v3215_v33  ;;  %v3023_v52 = vadd.f32 %v7085_v61, %v6897_v17  ;;  %4076 = vmatpush.msra.mxu3 %v4067_v13 }
 0x32e   : > { %3559 = vmatmul.f32.gmra.mxu0 %v6917_v58 }
 0x32f   : > { %3171 = vmatmul.f32.gmra.mxu2 %v7930_v31  ;;  %v7106_v50 = vadd.f32 %v3509_v12, %v3409_v47  ;;  %v7931_v12 = vmax.f32 %v6878_v3, 0.0 }
 0x330   : > { %3365 = vmatmul.f32.gmra.mxu3 %v3264_v35  ;;  %v7108_v23 = vpop.f32.mrf.mxu1  ;;  %v7124_v35 = vld [vmem:[#allocation2 + $0x50] sm:$0xff] }
 0x332   : > { %v3124_v43 = vpop.f32.mrf.mxu2 }
 0x333   : > { %v3318_v54 = vpop.f32.mrf.mxu3  ;;  %v3216_v7 = vadd.f32 %v3124_v43, %v3022_v32  ;;  %3705 = vmatmul.f32.gmra.mxu1 %v7112_v56  ;;  %v3515_v58 = vpop.f32.mrf.mxu0  ;;  %v3266_v32 = vld [vmem:[#allocation2 + $0x149] sm:$0xff]  ;;  %v3024_v43 = vadd.f32 %v7085_v61, %v6912_v51 }
 0x334   : > { %v3871_v51 = vld [vmem:[#allocation3 + $0x2d0] sm:$0xff] }
 0x335   : > { %v3410_v16 = vadd.f32 %v3318_v54, %v3216_v7  ;;  %v4261_v54 = vld [vmem:[#allocation3 + $0x3d8] sm:$0xff]  ;;  %3882 = vmatpush.msra.mxu2 %v3871_v51 }
 0x336   : > { %3562 = vmatmul.f32.gmra.mxu0 %v6932_v45  ;;  %v3269_v51 = vld [vmem:[#allocation2 + $0x171] sm:$0xff] }
 0x337   : > { %3174 = vmatmul.f32.gmra.mxu2 %v7931_v12  ;;  %v7118_v22 = vadd.f32 %v3512_v63, %v3410_v16  ;;  %v7932_v63 = vmax.f32 %v6893_v21, 0.0  ;;  %4270 = vmatpush.msra.mxu0 %v4261_v54  ;;  %v4455_v12 = vld [vmem:[#allocation3 + $0x458] sm:$0xff] }
 0x338   : > { %3368 = vmatmul.f32.gmra.mxu3 %v3265_v44  ;;  %v7120_v59 = vpop.f32.mrf.mxu1  ;;  %4464 = vmatpush.msra.mxu1 %v4455_v12  ;;  %v7160_v12 = vld [vmem:[#allocation2 + $0x88] sm:$0xff] }
 0x33a   : > { %v3127_v33 = vpop.f32.mrf.mxu2 }
 0x33b   : > { %v3321_v47 = vpop.f32.mrf.mxu3  ;;  %v3217_v45 = vadd.f32 %v3127_v33, %v3023_v52  ;;  %3708 = vmatmul.f32.gmra.mxu1 %v7124_v35  ;;  %v3518_v3 = vpop.f32.mrf.mxu0  ;;  %v3025_v33 = vadd.f32 %v7085_v61, %v6927_v53 }
 0x33d   : > { %v3411_v31 = vadd.f32 %v3321_v47, %v3217_v45  ;;  %v4066_v47 = vld [vmem:[#allocation3 + $0x350] sm:$0xff] }
 0x33e   : > { %3565 = vmatmul.f32.gmra.mxu0 %v6947_v60  ;;  %4077 = vmatpush.msra.mxu3 %v4066_v47 }
 0x33f   : > { %3177 = vmatmul.f32.gmra.mxu2 %v7932_v63  ;;  %v7130_v10 = vadd.f32 %v3515_v58, %v3411_v31  ;;  %v7933_v58 = vmax.f32 %v6908_v41, 0.0 }
 0x340   : > { %3371 = vmatmul.f32.gmra.mxu3 %v3266_v32  ;;  %v7132_v17 = vpop.f32.mrf.mxu1  ;;  %v7148_v32 = vld [vmem:[#allocation2 + $0x70] sm:$0xff] }
 0x342   : > { %v3130_v7 = vpop.f32.mrf.mxu2 }
 0x343   : > { %v3324_v16 = vpop.f32.mrf.mxu3  ;;  %v3218_v44 = vadd.f32 %v3130_v7, %v3024_v43  ;;  %3711 = vmatmul.f32.gmra.mxu1 %v7136_v49  ;;  %v3521_v60 = vpop.f32.mrf.mxu0  ;;  %v3268_v43 = vld [vmem:[#allocation2 + $0x169] sm:$0xff]  ;;  %v3026_v7 = vadd.f32 %v7085_v61, %v6942_v36 }
 0x344   : > { %v3870_v36 = vld [vmem:[#allocation3 + $0x2c8] sm:$0xff] }
 0x345   : > { %v3412_v21 = vadd.f32 %v3324_v16, %v3218_v44  ;;  %v4260_v16 = vld [vmem:[#allocation3 + $0x3d0] sm:$0xff]  ;;  %3883 = vmatpush.msra.mxu2 %v3870_v36 }
 0x346   : > { %3568 = vmatmul.f32.gmra.mxu0 %v6962_v1  ;;  %v3271_v36 = vld [vmem:[#allocation2 + $0x191] sm:$0xff] }
 0x347   : > { %3180 = vmatmul.f32.gmra.mxu2 %v7933_v58  ;;  %v7142_v52 = vadd.f32 %v3518_v3, %v3412_v21  ;;  %v7934_v3 = vmax.f32 %v6923_v14, 0.0  ;;  %4271 = vmatpush.msra.mxu0 %v4260_v16  ;;  %v4454_v58 = vld [vmem:[#allocation3 + $0x450] sm:$0xff] }
 0x348   : > { %3374 = vmatmul.f32.gmra.mxu3 %v3267_v57  ;;  %v7144_v13 = vpop.f32.mrf.mxu1  ;;  %4465 = vmatpush.msra.mxu1 %v4454_v58  ;;  %v7184_v58 = vld [vmem:[#allocation2 + $0xa8] sm:$0xff] }
 0x34a   : > { %v3133_v45 = vpop.f32.mrf.mxu2 }
 0x34b   : > { %v3327_v31 = vpop.f32.mrf.mxu3  ;;  %v3219_v1 = vadd.f32 %v3133_v45, %v3025_v33  ;;  %3714 = vmatmul.f32.gmra.mxu1 %v7148_v32  ;;  %v3524_v41 = vpop.f32.mrf.mxu0  ;;  %v3027_v45 = vadd.f32 %v7085_v61, %v6957_v55 }
 0x34d   : > { %v3413_v63 = vadd.f32 %v3327_v31, %v3219_v1  ;;  %v4065_v31 = vld [vmem:[#allocation3 + $0x348] sm:$0xff] }
 0x34e   : > { %3571 = vmatmul.f32.gmra.mxu0 %v6977_v6  ;;  %4078 = vmatpush.msra.mxu3 %v4065_v31 }
 0x34f   : > { %3183 = vmatmul.f32.gmra.mxu2 %v7934_v3  ;;  %v7154_v54 = vadd.f32 %v3521_v60, %v3413_v63  ;;  %v7935_v60 = vmax.f32 %v6938_v42, 0.0 }
 0x350   : > { %3377 = vmatmul.f32.gmra.mxu3 %v3268_v43  ;;  %v7156_v53 = vpop.f32.mrf.mxu1  ;;  %v7172_v43 = vld [vmem:[#allocation2 + $0x90] sm:$0xff] }
 0x352   : > { %v3136_v44 = vpop.f32.mrf.mxu2 }
 0x353   : > { %v3330_v21 = vpop.f32.mrf.mxu3  ;;  %v3220_v57 = vadd.f32 %v3136_v44, %v3026_v7  ;;  %3717 = vmatmul.f32.gmra.mxu1 %v7160_v12  ;;  %v3527_v6 = vpop.f32.mrf.mxu0  ;;  %v3270_v7 = vld [vmem:[#allocation2 + $0x189] sm:$0xff]  ;;  %v3028_v44 = vadd.f32 %v7085_v61, %v6972_v34  ;;  %v3869_v34 = vld [vmem:[#allocation3 + $0x2c0] sm:$0xff] }
 0x354   : > { %3884 = vmatpush.msra.mxu2 %v3869_v34  ;;  %v7208_v34 = vld [vmem:[#allocation2 + $0xc8] sm:$0xff] }
 0x355   : > { %v3414_v14 = vadd.f32 %v3330_v21, %v3220_v57  ;;  %v4259_v21 = vld [vmem:[#allocation3 + $0x3c8] sm:$0xff] }
 0x356   : > { %3574 = vmatmul.f32.gmra.mxu0 %v6992_v11 }
 0x357   : > { %3186 = vmatmul.f32.gmra.mxu2 %v7935_v60  ;;  %v7166_v33 = vadd.f32 %v3524_v41, %v3414_v14  ;;  %v7936_v41 = vmax.f32 %v6953_v18, 0.0  ;;  %4272 = vmatpush.msra.mxu0 %v4259_v21  ;;  %v4453_v60 = vld [vmem:[#allocation3 + $0x448] sm:$0xff]  ;;  %v7938_v21 = vmax.f32 %v6983_v0, 0.0 }
 0x358   : > { %3380 = vmatmul.f32.gmra.mxu3 %v3269_v51  ;;  %v7168_v47 = vpop.f32.mrf.mxu1  ;;  %4466 = vmatpush.msra.mxu1 %v4453_v60  ;;  %v4257_v60 = vld [vmem:[#allocation3 + $0x3b8] sm:$0xff] }
 0x35a   : > { %v3139_v1 = vpop.f32.mrf.mxu2 }
 0x35b   : > { %v3333_v63 = vpop.f32.mrf.mxu3  ;;  %v3221_v11 = vadd.f32 %v3139_v1, %v3027_v45  ;;  %3720 = vmatmul.f32.gmra.mxu1 %v7172_v43  ;;  %v3530_v42 = vpop.f32.mrf.mxu0  ;;  %v3029_v1 = vadd.f32 %v7085_v61, %v6987_v4 }
 0x35d   : > { %v3415_v3 = vadd.f32 %v3333_v63, %v3221_v11  ;;  %v4064_v63 = vld [vmem:[#allocation3 + $0x340] sm:$0xff] }
 0x35e   : > { %3577 = vmatmul.f32.gmra.mxu0 %v7007_v26  ;;  %4079 = vmatpush.msra.mxu3 %v4064_v63  ;;  %v4256_v63 = vld [vmem:[#allocation3 + $0x3b0] sm:$0xff] }
 0x35f   : > { %3189 = vmatmul.f32.gmra.mxu2 %v7936_v41  ;;  %v7178_v16 = vadd.f32 %v3527_v6, %v3415_v3  ;;  %v7937_v6 = vmax.f32 %v6968_v38, 0.0 }
 0x360   : > { %3383 = vmatmul.f32.gmra.mxu3 %v3270_v7  ;;  %v7180_v55 = vpop.f32.mrf.mxu1  ;;  %v7196_v7 = vld [vmem:[#allocation2 + $0xb0] sm:$0xff] }
 0x362   : > { %v3142_v57 = vpop.f32.mrf.mxu2 }
 0x363   : > { %v3336_v14 = vpop.f32.mrf.mxu3  ;;  %v3222_v51 = vadd.f32 %v3142_v57, %v3028_v44  ;;  %3723 = vmatmul.f32.gmra.mxu1 %v7184_v58  ;;  %v3533_v26 = vpop.f32.mrf.mxu0  ;;  %v4258_v44 = vld [vmem:[#allocation3 + $0x3c0] sm:$0xff] }
 0x364   : > { %4273 = vmatpush.msra.mxu0 %v4258_v44  ;;  %v4255_v44 = vld [vmem:[#allocation3 + $0x3a8] sm:$0xff] }
 0x365   : > { %v3416_v18 = vadd.f32 %v3336_v14, %v3222_v51  ;;  %v3030_v14 = vadd.f32 %v7085_v61, %v7002_v48  ;;  %v3868_v51 = vld [vmem:[#allocation3 + $0x2b8] sm:$0xff] }
 0x366   : > { %3580 = vmatmul.f32.gmra.mxu0 %v7022_v27  ;;  %3885 = vmatpush.msra.mxu2 %v3868_v51 }
 0x367   : > { %3192 = vmatmul.f32.gmra.mxu2 %v7937_v6  ;;  %v7190_v45 = vadd.f32 %v3530_v42, %v3416_v18  ;;  %v3272_v42 = vld [vmem:[#allocation2 + $0x1a9] sm:$0xff]  ;;  %v4063_v18 = vld [vmem:[#allocation3 + $0x338] sm:$0xff]  ;;  %4274 = vmatpush.msra.mxu0 %v4257_v60  ;;  %v4254_v60 = vld [vmem:[#allocation3 + $0x3a0] sm:$0xff] }
 0x368   : > { %3386 = vmatmul.f32.gmra.mxu3 %v3271_v36  ;;  %v7192_v31 = vpop.f32.mrf.mxu1 }
 0x369   : > { %4080 = vmatpush.msra.mxu3 %v4063_v18  ;;  %4275 = vmatpush.msra.mxu0 %v4256_v63 }
 0x36a   : > { %v3145_v11 = vpop.f32.mrf.mxu2 }
 0x36b   : > { %v3339_v3 = vpop.f32.mrf.mxu3  ;;  %v3223_v27 = vadd.f32 %v3145_v11, %v3029_v1  ;;  %3726 = vmatmul.f32.gmra.mxu1 %v7196_v7  ;;  %v3536_v38 = vpop.f32.mrf.mxu0  ;;  %v4062_v1 = vld [vmem:[#allocation3 + $0x330] sm:$0xff]  ;;  %v4452_v11 = vld [vmem:[#allocation3 + $0x440] sm:$0xff]  ;;  %4276 = vmatpush.msra.mxu0 %v4255_v44  ;;  %v7941_v44 = vmax.f32 %v7013_v29, 0.0  ;;  %v7232_v29 = vld [vmem:[#allocation2 + $0xe8] sm:$0xff] }
 0x36c   : > { %4081 = vmatpush.msra.mxu3 %v4062_v1  ;;  %4467 = vmatpush.msra.mxu1 %v4452_v11  ;;  %v4253_v1 = vld [vmem:[#allocation3 + $0x398] sm:$0xff] }
 0x36d   : > { %v3417_v41 = vadd.f32 %v3339_v3, %v3223_v27  ;;  %v3866_v3 = vld [vmem:[#allocation3 + $0x2a8] sm:$0xff]  ;;  %4277 = vmatpush.msra.mxu0 %v4254_v60 }
 0x36e   : > { %3583 = vmatmul.f32.gmra.mxu0 %v7037_v62  ;;  %v4061_v27 = vld [vmem:[#allocation3 + $0x328] sm:$0xff] }
 0x36f   : > { %3195 = vmatmul.f32.gmra.mxu2 %v7938_v21  ;;  %v7202_v4 = vadd.f32 %v3533_v26, %v3417_v41  ;;  %v3867_v26 = vld [vmem:[#allocation3 + $0x2b0] sm:$0xff]  ;;  %v3865_v21 = vld [vmem:[#allocation3 + $0x2a0] sm:$0xff]  ;;  %4082 = vmatpush.msra.mxu3 %v4061_v27 }
 0x370   : > { %3389 = vmatmul.f32.gmra.mxu3 %v3272_v42  ;;  %v7204_v57 = vpop.f32.mrf.mxu1  ;;  %3886 = vmatpush.msra.mxu2 %v3867_v26  ;;  %v3273_v41 = vld [vmem:[#allocation2 + $0x1b1] sm:$0xff]  ;;  %v7939_v42 = vmax.f32 %v6998_v37, 0.0  ;;  %v3274_v27 = vld [vmem:[#allocation2 + $0x1c9] sm:$0xff] }
 0x371   : > { %v7220_v37 = vld [vmem:[#allocation2 + $0xd0] sm:$0xff]  ;;  %4278 = vmatpush.msra.mxu0 %v4253_v1 }
 0x372   : > { %v3148_v36 = vpop.f32.mrf.mxu2  ;;  %3887 = vmatpush.msra.mxu2 %v3866_v3  ;;  %v4252_v3 = vld [vmem:[#allocation3 + $0x390] sm:$0xff] }
 0x373   : > { %v3342_v6 = vpop.f32.mrf.mxu3  ;;  %v3224_v0 = vadd.f32 %v3148_v36, %v3030_v14  ;;  %3729 = vmatmul.f32.gmra.mxu1 %v7208_v34  ;;  %v3539_v62 = vpop.f32.mrf.mxu0  ;;  %v4060_v14 = vld [vmem:[#allocation3 + $0x320] sm:$0xff]  ;;  %v3031_v36 = vadd.f32 %v7085_v61, %v7017_v8  ;;  %v4058_v8 = vld [vmem:[#allocation3 + $0x310] sm:$0xff]  ;;  %4279 = vmatpush.msra.mxu0 %v4252_v3 }
 0x374   : > { %3888 = vmatpush.msra.mxu2 %v3865_v21  ;;  %4083 = vmatpush.msra.mxu3 %v4060_v14  ;;  %v4251_v21 = vld [vmem:[#allocation3 + $0x388] sm:$0xff] }
 0x375   : > { %v3418_v48 = vadd.f32 %v3342_v6, %v3224_v0  ;;  %v4059_v6 = vld [vmem:[#allocation3 + $0x318] sm:$0xff]  ;;  %4280 = vmatpush.msra.mxu0 %v4251_v21 }
 0x376   : > { %3586 = vmatmul.f32.gmra.mxu0 %v7052_v9  ;;  %v3864_v9 = vld [vmem:[#allocation3 + $0x298] sm:$0xff]  ;;  %4084 = vmatpush.msra.mxu3 %v4059_v6  ;;  %v4250_v6 = vld [vmem:[#allocation3 + $0x380] sm:$0xff] }
 0x377   : > { %3198 = vmatmul.f32.gmra.mxu2 %v7939_v42  ;;  %v7214_v51 = vadd.f32 %v3536_v38, %v3418_v48  ;;  %v3863_v48 = vld [vmem:[#allocation3 + $0x290] sm:$0xff]  ;;  %v4057_v42 = vld [vmem:[#allocation3 + $0x308] sm:$0xff]  ;;  %4281 = vmatpush.msra.mxu0 %v4250_v6 }
 0x378   : > { %3392 = vmatmul.f32.gmra.mxu3 %v3273_v41  ;;  %v7216_v18 = vpop.f32.mrf.mxu1  ;;  %3889 = vmatpush.msra.mxu2 %v3864_v9  ;;  %v3862_v41 = vld [vmem:[#allocation3 + $0x288] sm:$0xff]  ;;  %v3032_v9 = vadd.f32 %v7085_v61, %v7032_v19  ;;  %v7943_v19 = vmax.f32 %v7028_v39, 0.0 }
 0x379   : > { %7940 = vst [vmem:[#allocation23_spill] sm:$0xff] %v7214_v51  ;;  %4085 = vmatpush.msra.mxu3 %v4058_v8  ;;  %v3276_v39 = vld [vmem:[#allocation2 + $0x1e9] sm:$0xff]  ;;  %v7406_v51 = vld [vmem:[#allocation2 + $0xd1] sm:$0xff] }
 0x37a   : > { %v3151_v0 = vpop.f32.mrf.mxu2  ;;  %3890 = vmatpush.msra.mxu2 %v3863_v48  ;;  %v4451_v48 = vld [vmem:[#allocation3 + $0x438] sm:$0xff] }
 0x37b   : > { %v3345_v26 = vpop.f32.mrf.mxu3  ;;  %v3225_v38 = vadd.f32 %v3151_v0, %v3031_v36  ;;  %3732 = vmatmul.f32.gmra.mxu1 %v7220_v37  ;;  %v3542_v63 = vpop.f32.mrf.mxu0  ;;  %v3861_v36 = vld [vmem:[#allocation3 + $0x280] sm:$0xff]  ;;  %4086 = vmatpush.msra.mxu3 %v4057_v42  ;;  %v7244_v42 = vld [vmem:[#allocation2 + $0xf0] sm:$0xff] }
 0x37c   : > { %3891 = vmatpush.msra.mxu2 %v3862_v41  ;;  %4468 = vmatpush.msra.mxu1 %v4451_v48 }
 0x37d   : > { %v3419_v11 = vadd.f32 %v3345_v26, %v3225_v38 }
 0x37e   : > { %3589 = vmatmul.f32.gmra.mxu0 %v7067_v15  ;;  %v4056_v15 = vld [vmem:[#allocation3 + $0x300] sm:$0xff]  ;;  %3892 = vmatpush.msra.mxu2 %v3861_v36 }
 0x37f   : > { %3201 = vmatmul.f32.gmra.mxu2 %v7941_v44  ;;  %v7226_v14 = vadd.f32 %v3539_v62, %v3419_v11  ;;  %4087 = vmatpush.msra.mxu3 %v4056_v15  ;;  %v3275_v11 = vld [vmem:[#allocation2 + $0x1d1] sm:$0xff] }
 0x380   : > { %3395 = vmatmul.f32.gmra.mxu3 %v3274_v27  ;;  %v7228_v60 = vpop.f32.mrf.mxu1  ;;  %v3033_v27 = vadd.f32 %v7085_v61, %v7047_v20  ;;  %v3034_v20 = vadd.f32 %v7085_v61, %v7062_v24 }
 0x381   : > { %7942 = vst [vmem:[#allocation20_spill] sm:$0xff] %v7226_v14  ;;  %v4033_v14 = vld [vmem:[#allocation2 + $0xe7] sm:$0xff] }
 0x382   : > { %v3154_v0 = vpop.f32.mrf.mxu2 }
 0x383   : > { %v3348_v26 = vpop.f32.mrf.mxu3  ;;  %v3226_v1 = vadd.f32 %v3154_v0, %v3032_v9  ;;  %3735 = vmatmul.f32.gmra.mxu1 %v7232_v29  ;;  %v3545_v62 = vpop.f32.mrf.mxu0  ;;  %v3470_v9 = vld [vmem:[#allocation2 + $0x207] sm:$0xff] }
 0x385   : > { %v3420_v38 = vadd.f32 %v3348_v26, %v3226_v1  ;;  %v7255_v1 = vld [vmem:[#allocation2 + $0x108] sm:$0xff] }
 0x386   : > { %3592 = vmatmul.f32.gmra.mxu0 %v7079_v2 }
 0x387   : > { %3204 = vmatmul.f32.gmra.mxu2 %v7943_v19  ;;  %v7238_v8 = vadd.f32 %v3542_v63, %v3420_v38  ;;  %v7945_v63 = vmax.f32 %v7043_v25, 0.0  ;;  %v3471_v19 = vld [vmem:[#allocation2 + $0x20f] sm:$0xff] }
 0x388   : > { %3398 = vmatmul.f32.gmra.mxu3 %v3275_v11  ;;  %v7240_v3 = vpop.f32.mrf.mxu1  ;;  %v4450_v25 = vld [vmem:[#allocation3 + $0x430] sm:$0xff] }
 0x389   : > { %7944 = vst [vmem:[#allocation25_spill] sm:$0xff] %v7238_v8  ;;  %4469 = vmatpush.msra.mxu1 %v4450_v25  ;;  %v7380_v8 = vld [vmem:[#allocation2 + $0xb1] sm:$0xff] }
 0x38a   : > { %v3157_v41 = vpop.f32.mrf.mxu2 }
 0x38b   : > { %v3351_v44 = vpop.f32.mrf.mxu3  ;;  %v3227_v21 = vadd.f32 %v3157_v41, %v3033_v27  ;;  %3738 = vmatmul.f32.gmra.mxu1 %v7244_v42  ;;  %v3548_v2 = vpop.f32.mrf.mxu0  ;;  %v3277_v27 = vld [vmem:[#allocation2 + $0x1f1] sm:$0xff] }
 0x38d   : > { %v3421_v36 = vadd.f32 %v3351_v44, %v3227_v21  ;;  %v3035_v44 = vadd.f32 %v7085_v61, %v7075_v40  ;;  %v3036_v40 = vadd.f32 %v7085_v61, %v7090_v30 }
 0x38e   : > { %3595 = vmatmul.f32.gmra.mxu0 %v3470_v9  ;;  %v7266_v9 = vld [vmem:[#allocation2 + $0x110] sm:$0xff] }
 0x38f   : > { %3207 = vmatmul.f32.gmra.mxu2 %v7945_v63  ;;  %v7249_v15 = vadd.f32 %v3545_v62, %v3421_v36  ;;  %v7947_v62 = vmax.f32 %v7058_v46, 0.0  ;;  %v4023_v46 = vld [vmem:[#allocation2 + $0x47] sm:$0xff] }
 0x390   : > { %3401 = vmatmul.f32.gmra.mxu3 %v3276_v39  ;;  %v7251_v6 = vpop.f32.mrf.mxu1 }
 0x391   : > { %7946 = vst [vmem:[#allocation22_spill] sm:$0xff] %v7249_v15  ;;  %v4031_v15 = vld [vmem:[#allocation2 + $0xc7] sm:$0xff] }
 0x392   : > { %v3160_v0 = vpop.f32.mrf.mxu2 }
 0x393   : > { %v3354_v26 = vpop.f32.mrf.mxu3  ;;  %v3228_v38 = vadd.f32 %v3160_v0, %v3034_v20  ;;  %3741 = vmatmul.f32.gmra.mxu1 %v7255_v1  ;;  %v3551_v48 = vpop.f32.mrf.mxu0  ;;  %v3828_v0 = vld [vmem:[#allocation2 + $0x29] sm:$0xff] }
 0x395   : > { %v3422_v11 = vadd.f32 %v3354_v26, %v3228_v38 }
 0x396   : > { %3598 = vmatmul.f32.gmra.mxu0 %v3471_v19  ;;  %v7276_v19 = vld [vmem:[#allocation2 + $0x128] sm:$0xff] }
 0x397   : > { %3210 = vmatmul.f32.gmra.mxu2 %v7947_v62  ;;  %v7260_v41 = vadd.f32 %v3548_v2, %v3422_v11 }
 0x398   : > { %3404 = vmatmul.f32.gmra.mxu3 %v3277_v27  ;;  %v7262_v24 = vpop.f32.mrf.mxu1 }
 0x399   : > { %7948 = vst [vmem:[#allocation27_spill] sm:$0xff] %v7260_v41  ;;  %v7354_v41 = vld [vmem:[#allocation2 + $0x91] sm:$0xff] }
 0x39a   : > { %v3163_v21 = vpop.f32.mrf.mxu2 }
 0x39b   : > { %v3357_v36 = vpop.f32.mrf.mxu3  ;;  %v3229_v39 = vadd.f32 %v3163_v21, %v3035_v44  ;;  %3744 = vmatmul.f32.gmra.mxu1 %v7266_v9  ;;  %v3554_v63 = vpop.f32.mrf.mxu0  ;;  %v4449_v44 = vld [vmem:[#allocation3 + $0x428] sm:$0xff] }
 0x39c   : > { %v4024_v21 = vld [vmem:[#allocation2 + $0x4f] sm:$0xff]  ;;  %4470 = vmatpush.msra.mxu1 %v4449_v44 }
 0x39d   : > { %v3423_v20 = vadd.f32 %v3357_v36, %v3229_v39  ;;  %v3037_v36 = vadd.f32 %v7085_v61, %v7099_v5 }
 0x39e   : > { %4282 = vmatmul.f32.vlgmr.msra.gmra.mxu0 %v7112_v56  ;;  %v3829_v56 = vld [vmem:[#allocation2 + $0x31] sm:$0xff] }
 0x39f   : > { %3893 = vmatmul.f32.vlgmr.msra.gmra.mxu2 %v3828_v0  ;;  %v7270_v2 = vadd.f32 %v3551_v48, %v3423_v20  ;;  %v7286_v0 = vld [vmem:[#allocation2 + $0x130] sm:$0xff] }
 0x3a0   : > { %4088 = vmatmul.f32.vlgmr.msra.gmra.mxu3 %v4023_v46  ;;  %v7272_v26 = vpop.f32.mrf.mxu1 }
 0x3a1   : > { %7949 = vst [vmem:[#allocation24_spill] sm:$0xff] %v7270_v2  ;;  %v4029_v2 = vld [vmem:[#allocation2 + $0xa7] sm:$0xff] }
 0x3a2   : > { %v3166_v38 = vpop.f32.mrf.mxu2 }
 0x3a3   : > { %v3360_v11 = vpop.f32.mrf.mxu3  ;;  %v3230_v25 = vadd.f32 %v3166_v38, %v3036_v40  ;;  %3747 = vmatmul.f32.gmra.mxu1 %v7276_v19  ;;  %v3557_v27 = vpop.f32.mrf.mxu0 }
 0x3a5   : > { %v3424_v62 = vadd.f32 %v3360_v11, %v3230_v25  ;;  %v4025_v11 = vld [vmem:[#allocation2 + $0x67] sm:$0xff]  ;;  %v3038_v25 = vadd.f32 %v7085_v61, %v7108_v23 }
 0x3a6   : > { %4285 = vmatmul.f32.gmra.mxu0 %v7124_v35  ;;  %v7289_v35 = vld [vmem:[#allocation2 + $0x49] sm:$0xff] }
 0x3a7   : > { %3896 = vmatmul.f32.gmra.mxu2 %v3829_v56  ;;  %v7280_v48 = vadd.f32 %v3554_v63, %v3424_v62  ;;  %v7299_v56 = vld [vmem:[#allocation2 + $0x148] sm:$0xff] }
 0x3a8   : > { %4091 = vmatmul.f32.gmra.mxu3 %v4024_v21  ;;  %v7282_v30 = vpop.f32.mrf.mxu1 }
 0x3a9   : > { %7950 = vst [vmem:[#allocation29_spill] sm:$0xff] %v7280_v48  ;;  %v7328_v48 = vld [vmem:[#allocation2 + $0x71] sm:$0xff] }
 0x3aa   : > { %v3169_v39 = vpop.f32.mrf.mxu2 }
 0x3ab   : > { %v3363_v20 = vpop.f32.mrf.mxu3  ;;  %v3231_v46 = vadd.f32 %v3169_v39, %v3037_v36  ;;  %3750 = vmatmul.f32.gmra.mxu1 %v7286_v0  ;;  %v3560_v40 = vpop.f32.mrf.mxu0 }
 0x3ad   : > { %v3425_v38 = vadd.f32 %v3363_v20, %v3231_v46  ;;  %v7302_v20 = vld [vmem:[#allocation2 + $0x51] sm:$0xff] }
 0x3ae   : > { %4288 = vmatmul.f32.gmra.mxu0 %v7136_v49  ;;  %v4448_v49 = vld [vmem:[#allocation3 + $0x420] sm:$0xff]  ;;  %v4026_v46 = vld [vmem:[#allocation2 + $0x6f] sm:$0xff] }
 0x3af   : > { %3899 = vmatmul.f32.gmra.mxu2 %v7289_v35  ;;  %v7293_v63 = vadd.f32 %v3557_v27, %v3425_v38  ;;  %4471 = vmatpush.msra.mxu1 %v4448_v49  ;;  %v3039_v38 = vadd.f32 %v7085_v61, %v7120_v59  ;;  %v7315_v49 = vld [vmem:[#allocation2 + $0x69] sm:$0xff] }
 0x3b0   : > { %4094 = vmatmul.f32.gmra.mxu3 %v4025_v11  ;;  %v7295_v5 = vpop.f32.mrf.mxu1 }
 0x3b1   : > { %7951 = vst [vmem:[#allocation26_spill] sm:$0xff] %v7293_v63  ;;  %v4027_v63 = vld [vmem:[#allocation2 + $0x87] sm:$0xff] }
 0x3b2   : > { %v3172_v62 = vpop.f32.mrf.mxu2 }
 0x3b3   : > { %v3366_v44 = vpop.f32.mrf.mxu3  ;;  %v3232_v21 = vadd.f32 %v3172_v62, %v3038_v25  ;;  %3753 = vmatmul.f32.gmra.mxu1 %v7299_v56  ;;  %v3563_v36 = vpop.f32.mrf.mxu0  ;;  %v7312_v62 = vld [vmem:[#allocation2 + $0x150] sm:$0xff] }
 0x3b5   : > { %v3426_v39 = vadd.f32 %v3366_v44, %v3232_v21 }
 0x3b6   : > { %4291 = vmatmul.f32.gmra.mxu0 %v7148_v32 }
 0x3b7   : > { %3902 = vmatmul.f32.gmra.mxu2 %v7302_v20  ;;  %v7306_v23 = vadd.f32 %v3560_v40, %v3426_v39  ;;  %v3040_v39 = vadd.f32 %v7085_v61, %v7132_v17 }
 0x3b8   : > { %4097 = vmatmul.f32.gmra.mxu3 %v4026_v46  ;;  %v7308_v27 = vpop.f32.mrf.mxu1 }
 0x3b9   : > { %7952 = vst [vmem:[#allocation31_spill] sm:$0xff] %v7306_v23 }
 0x3ba   : > { %v3175_v11 = vpop.f32.mrf.mxu2 }
 0x3bb   : > { %v3369_v25 = vpop.f32.mrf.mxu3  ;;  %v3233_v44 = vadd.f32 %v3175_v11, %v3039_v38  ;;  %3756 = vmatmul.f32.gmra.mxu1 %v7312_v62  ;;  %v3566_v21 = vpop.f32.mrf.mxu0  ;;  %v7325_v11 = vld [vmem:[#allocation2 + $0x168] sm:$0xff] }
 0x3bd   : > { %v3427_v32 = vadd.f32 %v3369_v25, %v3233_v44 }
 0x3be   : > { %4294 = vmatmul.f32.gmra.mxu0 %v7160_v12  ;;  %v4447_v12 = vld [vmem:[#allocation3 + $0x418] sm:$0xff] }
 0x3bf   : > { %3905 = vmatmul.f32.gmra.mxu2 %v7315_v49  ;;  %v7319_v40 = vadd.f32 %v3563_v36, %v3427_v32  ;;  %4472 = vmatpush.msra.mxu1 %v4447_v12  ;;  %v3041_v32 = vadd.f32 %v7085_v61, %v7144_v13  ;;  %v7341_v12 = vld [vmem:[#allocation2 + $0x89] sm:$0xff] }
 0x3c0   : > { %4100 = vmatmul.f32.gmra.mxu3 %v4027_v63  ;;  %v7321_v59 = vpop.f32.mrf.mxu1  ;;  %v4028_v63 = vld [vmem:[#allocation2 + $0x8f] sm:$0xff] }
 0x3c1   : > { %7953 = vst [vmem:[#allocation28_spill] sm:$0xff] %v7319_v40 }
 0x3c2   : > { %v3178_v46 = vpop.f32.mrf.mxu2 }
 0x3c3   : > { %v3372_v38 = vpop.f32.mrf.mxu3  ;;  %v3234_v25 = vadd.f32 %v3178_v46, %v3040_v39  ;;  %3759 = vmatmul.f32.gmra.mxu1 %v7325_v11  ;;  %v3569_v44 = vpop.f32.mrf.mxu0 }
 0x3c5   : > { %v3428_v23 = vadd.f32 %v3372_v38, %v3234_v25  ;;  %v7338_v38 = vld [vmem:[#allocation2 + $0x170] sm:$0xff] }
 0x3c6   : > { %4297 = vmatmul.f32.gmra.mxu0 %v7172_v43 }
 0x3c7   : > { %3908 = vmatmul.f32.gmra.mxu2 %v7328_v48  ;;  %v7332_v17 = vadd.f32 %v3566_v21, %v3428_v23  ;;  %v3042_v21 = vadd.f32 %v7085_v61, %v7156_v53 }
 0x3c8   : > { %4103 = vmatmul.f32.gmra.mxu3 %v4028_v63  ;;  %v7334_v36 = vpop.f32.mrf.mxu1 }
 0x3c9   : > { %7954 = vst [vmem:[#allocation33_spill] sm:$0xff] %v7332_v17 }
 0x3ca   : > { %v3181_v39 = vpop.f32.mrf.mxu2 }
 0x3cb   : > { %v3375_v46 = vpop.f32.mrf.mxu3  ;;  %v3235_v25 = vadd.f32 %v3181_v39, %v3041_v32  ;;  %3762 = vmatmul.f32.gmra.mxu1 %v7338_v38  ;;  %v3572_v40 = vpop.f32.mrf.mxu0  ;;  %v7351_v39 = vld [vmem:[#allocation2 + $0x188] sm:$0xff] }
 0x3cd   : > { %v3429_v43 = vadd.f32 %v3375_v46, %v3235_v25 }
 0x3ce   : > { %4300 = vmatmul.f32.gmra.mxu0 %v7184_v58  ;;  %v4446_v58 = vld [vmem:[#allocation3 + $0x410] sm:$0xff] }
 0x3cf   : > { %3911 = vmatmul.f32.gmra.mxu2 %v7341_v12  ;;  %v7345_v23 = vadd.f32 %v3569_v44, %v3429_v43  ;;  %4473 = vmatpush.msra.mxu1 %v4446_v58  ;;  %v3043_v43 = vadd.f32 %v7085_v61, %v7168_v47  ;;  %v7367_v58 = vld [vmem:[#allocation2 + $0xa9] sm:$0xff] }
 0x3d0   : > { %4106 = vmatmul.f32.gmra.mxu3 %v4029_v2  ;;  %v7347_v13 = vpop.f32.mrf.mxu1  ;;  %v4030_v2 = vld [vmem:[#allocation2 + $0xaf] sm:$0xff] }
 0x3d1   : > { %7955 = vst [vmem:[#allocation30_spill] sm:$0xff] %v7345_v23 }
 0x3d2   : > { %v3184_v63 = vpop.f32.mrf.mxu2 }
 0x3d3   : > { %v3378_v32 = vpop.f32.mrf.mxu3  ;;  %v3236_v46 = vadd.f32 %v3184_v63, %v3042_v21  ;;  %3765 = vmatmul.f32.gmra.mxu1 %v7351_v39  ;;  %v3575_v25 = vpop.f32.mrf.mxu0 }
 0x3d5   : > { %v3430_v17 = vadd.f32 %v3378_v32, %v3236_v46  ;;  %v7364_v32 = vld [vmem:[#allocation2 + $0x190] sm:$0xff] }
 0x3d6   : > { %4303 = vmatmul.f32.gmra.mxu0 %v7196_v7 }
 0x3d7   : > { %3914 = vmatmul.f32.gmra.mxu2 %v7354_v41  ;;  %v7358_v53 = vadd.f32 %v3572_v40, %v3430_v17  ;;  %v3044_v17 = vadd.f32 %v7085_v61, %v7180_v55 }
 0x3d8   : > { %4109 = vmatmul.f32.gmra.mxu3 %v4030_v2  ;;  %v7360_v44 = vpop.f32.mrf.mxu1 }
 0x3d9   : > { %7956 = vst [vmem:[#allocation35_spill] sm:$0xff] %v7358_v53 }
 0x3da   : > { %v3187_v21 = vpop.f32.mrf.mxu2 }
 0x3db   : > { %v3381_v63 = vpop.f32.mrf.mxu3  ;;  %v3237_v46 = vadd.f32 %v3187_v21, %v3043_v43  ;;  %3768 = vmatmul.f32.gmra.mxu1 %v7364_v32  ;;  %v3578_v23 = vpop.f32.mrf.mxu0  ;;  %v7377_v21 = vld [vmem:[#allocation2 + $0x1a8] sm:$0xff] }
 0x3dd   : > { %v3431_v7 = vadd.f32 %v3381_v63, %v3237_v46 }
 0x3de   : > { %4306 = vmatmul.f32.gmra.mxu0 %v7208_v34  ;;  %v4445_v34 = vld [vmem:[#allocation3 + $0x408] sm:$0xff] }
 0x3df   : > { %3917 = vmatmul.f32.gmra.mxu2 %v7367_v58  ;;  %v7371_v40 = vadd.f32 %v3575_v25, %v3431_v7  ;;  %4474 = vmatpush.msra.mxu1 %v4445_v34  ;;  %v3045_v7 = vadd.f32 %v7085_v61, %v7192_v31  ;;  %v7393_v34 = vld [vmem:[#allocation2 + $0xc9] sm:$0xff] }
 0x3e0   : > { %4112 = vmatmul.f32.gmra.mxu3 %v4031_v15  ;;  %v7373_v47 = vpop.f32.mrf.mxu1  ;;  %v4032_v15 = vld [vmem:[#allocation2 + $0xcf] sm:$0xff] }
 0x3e1   : > { %7957 = vst [vmem:[#allocation32_spill] sm:$0xff] %v7371_v40 }
 0x3e2   : > { %v3190_v2 = vpop.f32.mrf.mxu2 }
 0x3e3   : > { %v3384_v43 = vpop.f32.mrf.mxu3  ;;  %v3238_v63 = vadd.f32 %v3190_v2, %v3044_v17  ;;  %3771 = vmatmul.f32.gmra.mxu1 %v7377_v21  ;;  %v3581_v46 = vpop.f32.mrf.mxu0 }
 0x3e5   : > { %v3432_v53 = vadd.f32 %v3384_v43, %v3238_v63  ;;  %v7390_v43 = vld [vmem:[#allocation2 + $0x1b0] sm:$0xff] }
 0x3e6   : > { %4309 = vmatmul.f32.gmra.mxu0 %v7220_v37 }
 0x3e7   : > { %3920 = vmatmul.f32.gmra.mxu2 %v7380_v8  ;;  %v7384_v55 = vadd.f32 %v3578_v23, %v3432_v53  ;;  %v3046_v53 = vadd.f32 %v7085_v61, %v7204_v57 }
 0x3e8   : > { %4115 = vmatmul.f32.gmra.mxu3 %v4032_v15  ;;  %v7386_v25 = vpop.f32.mrf.mxu1 }
 0x3e9   : > { %7958 = vst [vmem:[#allocation37_spill] sm:$0xff] %v7384_v55 }
 0x3ea   : > { %v3193_v17 = vpop.f32.mrf.mxu2 }
 0x3eb   : > { %v3387_v2 = vpop.f32.mrf.mxu3  ;;  %v3239_v63 = vadd.f32 %v3193_v17, %v3045_v7  ;;  %3774 = vmatmul.f32.gmra.mxu1 %v7390_v43  ;;  %v3584_v40 = vpop.f32.mrf.mxu0  ;;  %v7403_v17 = vld [vmem:[#allocation2 + $0x1c8] sm:$0xff] }
 0x3ed   : > { %v3433_v37 = vadd.f32 %v3387_v2, %v3239_v63 }
 0x3ee   : > { %4312 = vmatmul.f32.gmra.mxu0 %v7232_v29  ;;  %v4444_v29 = vld [vmem:[#allocation3 + $0x400] sm:$0xff] }
 0x3ef   : > { %3923 = vmatmul.f32.gmra.mxu2 %v7393_v34  ;;  %v7397_v23 = vadd.f32 %v3581_v46, %v3433_v37  ;;  %4475 = vmatpush.msra.mxu1 %v4444_v29  ;;  %v3047_v37 = vadd.f32 %v7085_v61, %v7216_v18  ;;  %v7419_v29 = vld [vmem:[#allocation2 + $0xe9] sm:$0xff]  ;;  %v5330_v18 = vld [vmem:[%s7759_s4] ss:$0 sm:$0xff] }
 0x3f0   : > { %4118 = vmatmul.f32.gmra.mxu3 %v4033_v14  ;;  %v7399_v31 = vpop.f32.mrf.mxu1  ;;  %v4034_v14 = vld [vmem:[#allocation2 + $0xef] sm:$0xff] }
 0x3f1   : > { %7959 = vst [vmem:[#allocation34_spill] sm:$0xff] %v7397_v23 }
 0x3f2   : > { %7960 = vst [vmem:[#allocation39_spill] sm:$0xff] %v7399_v31  ;;  %v3196_v15 = vpop.f32.mrf.mxu2  ;;  %v4035_v31 = vld [vmem:[#allocation2 + $0x107] sm:$0xff] }
 0x3f3   : > { %v3390_v7 = vpop.f32.mrf.mxu3  ;;  %v3240_v2 = vadd.f32 %v3196_v15, %v3046_v53  ;;  %3777 = vmatmul.f32.gmra.mxu1 %v7403_v17  ;;  %v3587_v63 = vpop.f32.mrf.mxu0 }
 0x3f5   : > { %v3434_v55 = vadd.f32 %v3390_v7, %v3240_v2  ;;  %v7416_v7 = vld [vmem:[#allocation2 + $0x1d0] sm:$0xff] }
 0x3f6   : > { %4315 = vmatmul.f32.gmra.mxu0 %v7244_v42 }
 0x3f7   : > { %3926 = vmatmul.f32.gmra.mxu2 %v7406_v51  ;;  %v7410_v57 = vadd.f32 %v3584_v40, %v3434_v55  ;;  %v3048_v55 = vadd.f32 %v5330_v18, %v7228_v60 }
 0x3f8   : > { %4121 = vmatmul.f32.gmra.mxu3 %v4034_v14  ;;  %v7412_v46 = vpop.f32.mrf.mxu1 }
 0x3f9   : > { %7961 = vst [vmem:[#allocation36_spill] sm:$0xff] %v7410_v57 }
 0x3fa   : > { %7962 = vst [vmem:[#allocation41_spill] sm:$0xff] %v7412_v46  ;;  %v3199_v53 = vpop.f32.mrf.mxu2  ;;  %v7446_v46 = vld [vmem:[#allocation2 + $0x109] sm:$0xff] }
 0x3fb   : > { %v3393_v15 = vpop.f32.mrf.mxu3  ;;  %v3241_v2 = vadd.f32 %v3199_v53, %v3047_v37  ;;  %3780 = vmatmul.f32.gmra.mxu1 %v7416_v7  ;;  %v3590_v23 = vpop.f32.mrf.mxu0  ;;  %v7431_v53 = vld [vmem:[#allocation2 + $0x1e8] sm:$0xff] }
 0x3fd   : > { %v3435_v42 = vadd.f32 %v3393_v15, %v3241_v2 }
 0x3fe   : > { %4318 = vmatmul.f32.gmra.mxu0 %v7255_v1 }
 0x3ff   : > { %3929 = vmatmul.f32.gmra.mxu2 %v7419_v29  ;;  %v7423_v40 = vadd.f32 %v3587_v63, %v3435_v42  ;;  %v4036_v63 = vld [vmem:[#allocation2 + $0x10f] sm:$0xff] }
 0x400   : > { %4124 = vmatmul.f32.gmra.mxu3 %v4035_v31  ;;  %v7425_v61 = vpop.f32.mrf.mxu1  ;;  %v7434_v31 = vld [vmem:[#allocation2 + $0xf1] sm:$0xff] }
 0x401   : > { %7963 = vst [vmem:[#allocation38_spill] sm:$0xff] %v7423_v40  ;;  %v3049_v40 = vadd.f32 %v5330_v18, %v7240_v3 }
 0x402   : > { %7964 = vst [vmem:[#allocation40_spill] sm:$0xff] %v7425_v61  ;;  %v3202_v14 = vpop.f32.mrf.mxu2 }
 0x403   : > { %v3396_v37 = vpop.f32.mrf.mxu3  ;;  %v3242_v15 = vadd.f32 %v3202_v14, %v3048_v55  ;;  %3783 = vmatmul.f32.gmra.mxu1 %v7431_v53  ;;  %v3593_v1 = vpop.f32.mrf.mxu0  ;;  %v7443_v14 = vld [vmem:[#allocation2 + $0x1f0] sm:$0xff] }
 0x405   : > { %v3436_v2 = vadd.f32 %v3396_v37, %v3242_v15 }
 0x406   : > { %4321 = vmatmul.f32.gmra.mxu0 %v7266_v9  ;;  %v4037_v9 = vld [vmem:[#allocation2 + $0x127] sm:$0xff] }
 0x407   : > { %3932 = vmatmul.f32.gmra.mxu2 %v7434_v31  ;;  %v7438_v42 = vadd.f32 %v3590_v23, %v3436_v2  ;;  %v3050_v2 = vadd.f32 %v5330_v18, %v7251_v6 }
 0x408   : > { %4127 = vmatmul.f32.gmra.mxu3 %v4036_v63  ;;  %v7440_v60 = vpop.f32.mrf.mxu1 }
 0x409   : > { %7965 = vst [vmem:[#allocation42_spill] sm:$0xff] %v7438_v42 }
 0x40a   : > { %7966 = vst [vmem:[#allocation43_spill] sm:$0xff] %v7440_v60  ;;  %v3205_v57 = vpop.f32.mrf.mxu2  ;;  %v7458_v60 = vld [vmem:[#allocation2 + $0x111] sm:$0xff] }
 0x40b   : > { %v3399_v55 = vpop.f32.mrf.mxu3  ;;  %v3243_v61 = vadd.f32 %v3205_v57, %v3049_v40  ;;  %3786 = vmatmul.f32.gmra.mxu1 %v7443_v14  ;;  %v3596_v37 = vpop.f32.mrf.mxu0  ;;  %v7455_v40 = vld [vmem:[#allocation2 + $0x208] sm:$0xff] }
 0x40d   : > { %v3437_v15 = vadd.f32 %v3399_v55, %v3243_v61 }
 0x40e   : > { %4324 = vmatmul.f32.gmra.mxu0 %v7276_v19  ;;  %v4038_v19 = vld [vmem:[#allocation2 + $0x12f] sm:$0xff] }
 0x40f   : > { %3935 = vmatmul.f32.gmra.mxu2 %v7446_v46  ;;  %v7450_v23 = vadd.f32 %v3593_v1, %v3437_v15  ;;  %v3051_v15 = vadd.f32 %v5330_v18, %v7262_v24  ;;  %v3796_v18 = vadd.f32 %v7272_v26, %v7097_v28  ;;  %v3797_v28 = vadd.f32 %v7282_v30, %v7106_v50 }
 0x410   : > { %4130 = vmatmul.f32.gmra.mxu3 %v4037_v9  ;;  %v7452_v3 = vpop.f32.mrf.mxu1  ;;  %v3798_v50 = vadd.f32 %v7295_v5, %v7118_v22  ;;  %v3799_v22 = vadd.f32 %v7308_v27, %v7130_v10  ;;  %v3800_v10 = vadd.f32 %v7321_v59, %v7142_v52  ;;  %v3801_v52 = vadd.f32 %v7334_v36, %v7154_v54 }
 0x411   : > { %7967 = vst [vmem:[#allocation45_spill] sm:$0xff] %v7450_v23  ;;  %v3802_v54 = vadd.f32 %v7347_v13, %v7166_v33  ;;  %v3803_v33 = vadd.f32 %v7360_v44, %v7178_v16  ;;  %v7567_v16 = vld [vmem:[#allocation2 + $0x1b1] sm:$0xff] }
 0x412   : > { %7968 = vst [vmem:[#allocation10_spill] sm:$0xff] %v7452_v3  ;;  %v3208_v63 = vpop.f32.mrf.mxu2  ;;  %v7470_v3 = vld [vmem:[#allocation2 + $0x129] sm:$0xff] }
 0x413   : > { %v3402_v57 = vpop.f32.mrf.mxu3  ;;  %v3244_v42 = vadd.f32 %v3208_v63, %v3050_v2  ;;  %3789 = vmatmul.f32.gmra.mxu1 %v7455_v40  ;;  %v3599_v61 = vpop.f32.mrf.mxu0  ;;  %v7467_v63 = vld [vmem:[#allocation2 + $0x210] sm:$0xff] }
 0x415   : > { %v3438_v55 = vadd.f32 %v3402_v57, %v3244_v42 }
 0x416   : > { %4327 = vmatmul.f32.gmra.mxu0 %v7286_v0  ;;  %v4039_v0 = vld [vmem:[#allocation2 + $0x147] sm:$0xff] }
 0x417   : > { %3938 = vmatmul.f32.gmra.mxu2 %v7458_v60  ;;  %v7462_v1 = vadd.f32 %v3596_v37, %v3438_v55 }
 0x418   : > { %4133 = vmatmul.f32.gmra.mxu3 %v4038_v19  ;;  %v7464_v6 = vpop.f32.mrf.mxu1 }
 0x41a   : > { %v3211_v9 = vpop.f32.mrf.mxu2 }
 0x41b   : > { %v3405_v2 = vpop.f32.mrf.mxu3  ;;  %v3245_v23 = vadd.f32 %v3211_v9, %v3051_v15  ;;  %3792 = vmatmul.f32.gmra.mxu1 %v7467_v63  ;;  %v4283_v42 = vpop.f32.mrf.mxu0 }
 0x41d   : > { %v3439_v57 = vadd.f32 %v3405_v2, %v3245_v23  ;;  %v7481_v2 = vld [vmem:[#allocation2 + $0x131] sm:$0xff] }
 0x41e   : > { %4330 = vmatmul.f32.gmra.mxu0 %v7299_v56  ;;  %v4040_v56 = vld [vmem:[#allocation2 + $0x14f] sm:$0xff] }
 0x41f   : > { %3941 = vmatmul.f32.gmra.mxu2 %v7470_v3  ;;  %v7474_v37 = vadd.f32 %v3599_v61, %v3439_v57 }
 0x420   : > { %4136 = vmatmul.f32.gmra.mxu3 %v4039_v0  ;;  %v7476_v24 = vpop.f32.mrf.mxu1 }
 0x422   : > { %v3894_v55 = vpop.f32.mrf.mxu2 }
 0x423   : > { %v4089_v19 = vpop.f32.mrf.mxu3  ;;  %v3990_v15 = vadd.f32 %v3894_v55, %v3796_v18  ;;  %4476 = vmatmul.f32.vlgmr.msra.gmra.mxu1 %v7289_v35  ;;  %v4286_v23 = vpop.f32.mrf.mxu0 }
 0x425   : > { %v4185_v9 = vadd.f32 %v4089_v19, %v3990_v15  ;;  %v7492_v19 = vld [vmem:[#allocation2 + $0x149] sm:$0xff] }
 0x426   : > { %4333 = vmatmul.f32.gmra.mxu0 %v7312_v62  ;;  %v4041_v62 = vld [vmem:[#allocation2 + $0x167] sm:$0xff] }
 0x427   : > { %3944 = vmatmul.f32.gmra.mxu2 %v7481_v2  ;;  %v7485_v61 = vadd.f32 %v4283_v42, %v4185_v9 }
 0x428   : > { %4139 = vmatmul.f32.gmra.mxu3 %v4040_v56  ;;  %v7487_v57 = vpop.f32.mrf.mxu1 }
 0x42a   : > { %v3897_v26 = vpop.f32.mrf.mxu2 }
 0x42b   : > { %v4092_v0 = vpop.f32.mrf.mxu3  ;;  %v3991_v35 = vadd.f32 %v3897_v26, %v3797_v28  ;;  %4479 = vmatmul.f32.gmra.mxu1 %v7302_v20  ;;  %v4289_v18 = vpop.f32.mrf.mxu0  ;;  %v7503_v26 = vld [vmem:[#allocation2 + $0x151] sm:$0xff] }
 0x42d   : > { %v4186_v55 = vadd.f32 %v4092_v0, %v3991_v35 }
 0x42e   : > { %4336 = vmatmul.f32.gmra.mxu0 %v7325_v11  ;;  %v4042_v11 = vld [vmem:[#allocation2 + $0x16f] sm:$0xff] }
 0x42f   : > { %3947 = vmatmul.f32.gmra.mxu2 %v7492_v19  ;;  %v7496_v42 = vadd.f32 %v4286_v23, %v4186_v55 }
 0x430   : > { %4142 = vmatmul.f32.gmra.mxu3 %v4041_v62  ;;  %v7498_v15 = vpop.f32.mrf.mxu1  ;;  %v7514_v62 = vld [vmem:[#allocation2 + $0x169] sm:$0xff] }
 0x432   : > { %v3900_v30 = vpop.f32.mrf.mxu2 }
 0x433   : > { %v4095_v9 = vpop.f32.mrf.mxu3  ;;  %v3992_v20 = vadd.f32 %v3900_v30, %v3798_v50  ;;  %4482 = vmatmul.f32.gmra.mxu1 %v7315_v49  ;;  %v4292_v28 = vpop.f32.mrf.mxu0  ;;  %v4043_v50 = vld [vmem:[#allocation2 + $0x187] sm:$0xff] }
 0x435   : > { %v4187_v56 = vadd.f32 %v4095_v9, %v3992_v20 }
 0x436   : > { %4339 = vmatmul.f32.gmra.mxu0 %v7338_v38 }
 0x437   : > { %3950 = vmatmul.f32.gmra.mxu2 %v7503_v26  ;;  %v7507_v23 = vadd.f32 %v4289_v18, %v4187_v56  ;;  %v7525_v56 = vld [vmem:[#allocation2 + $0x171] sm:$0xff] }
 0x438   : > { %4145 = vmatmul.f32.gmra.mxu3 %v4042_v11  ;;  %v7509_v0 = vpop.f32.mrf.mxu1 }
 0x43a   : > { %v3903_v5 = vpop.f32.mrf.mxu2 }
 0x43b   : > { %v4098_v35 = vpop.f32.mrf.mxu3  ;;  %v3993_v49 = vadd.f32 %v3903_v5, %v3799_v22  ;;  %4485 = vmatmul.f32.gmra.mxu1 %v7328_v48  ;;  %v4295_v38 = vpop.f32.mrf.mxu0 }
 0x43d   : > { %v4188_v55 = vadd.f32 %v4098_v35, %v3993_v49  ;;  %v7536_v49 = vld [vmem:[#allocation2 + $0x189] sm:$0xff] }
 0x43e   : > { %4342 = vmatmul.f32.gmra.mxu0 %v7351_v39  ;;  %v4044_v39 = vld [vmem:[#allocation2 + $0x18f] sm:$0xff] }
 0x43f   : > { %3953 = vmatmul.f32.gmra.mxu2 %v7514_v62  ;;  %v7518_v18 = vadd.f32 %v4292_v28, %v4188_v55 }
 0x440   : > { %4148 = vmatmul.f32.gmra.mxu3 %v4043_v50  ;;  %v7520_v30 = vpop.f32.mrf.mxu1 }
 0x442   : > { %v3906_v27 = vpop.f32.mrf.mxu2 }
 0x443   : > { %v4101_v9 = vpop.f32.mrf.mxu3  ;;  %v3994_v48 = vadd.f32 %v3906_v27, %v3800_v10  ;;  %4488 = vmatmul.f32.gmra.mxu1 %v7341_v12  ;;  %v4298_v59 = vpop.f32.mrf.mxu0 }
 0x445   : > { %v4189_v20 = vadd.f32 %v4101_v9, %v3994_v48  ;;  %v7547_v9 = vld [vmem:[#allocation2 + $0x191] sm:$0xff] }
 0x446   : > { %4345 = vmatmul.f32.gmra.mxu0 %v7364_v32  ;;  %v4045_v32 = vld [vmem:[#allocation2 + $0x1a7] sm:$0xff] }
 0x447   : > { %3956 = vmatmul.f32.gmra.mxu2 %v7525_v56  ;;  %v7529_v28 = vadd.f32 %v4295_v38, %v4189_v20 }
 0x448   : > { %4151 = vmatmul.f32.gmra.mxu3 %v4044_v39  ;;  %v7531_v11 = vpop.f32.mrf.mxu1 }
 0x44a   : > { %v3909_v22 = vpop.f32.mrf.mxu2 }
 0x44b   : > { %v4104_v5 = vpop.f32.mrf.mxu3  ;;  %v3995_v12 = vadd.f32 %v3909_v22, %v3801_v52  ;;  %4491 = vmatmul.f32.gmra.mxu1 %v7354_v41  ;;  %v4301_v41 = vpop.f32.mrf.mxu0  ;;  %v7558_v22 = vld [vmem:[#allocation2 + $0x1a9] sm:$0xff] }
 0x44d   : > { %v4190_v35 = vadd.f32 %v4104_v5, %v3995_v12 }
 0x44e   : > { %4348 = vmatmul.f32.gmra.mxu0 %v7377_v21  ;;  %v4046_v21 = vld [vmem:[#allocation2 + $0x1af] sm:$0xff] }
 0x44f   : > { %3959 = vmatmul.f32.gmra.mxu2 %v7536_v49  ;;  %v7540_v55 = vadd.f32 %v4298_v59, %v4190_v35  ;;  %v4049_v35 = vld [vmem:[#allocation2 + $0x1e7] sm:$0xff] }
 0x450   : > { %4154 = vmatmul.f32.gmra.mxu3 %v4045_v32  ;;  %v7542_v50 = vpop.f32.mrf.mxu1  ;;  %v4050_v32 = vld [vmem:[#allocation2 + $0x1ef] sm:$0xff] }
 0x452   : > { %v3912_v36 = vpop.f32.mrf.mxu2 }
 0x453   : > { %v4107_v38 = vpop.f32.mrf.mxu3  ;;  %v3996_v10 = vadd.f32 %v3912_v36, %v3802_v54  ;;  %4494 = vmatmul.f32.gmra.mxu1 %v7367_v58  ;;  %v4304_v59 = vpop.f32.mrf.mxu0  ;;  %v4051_v54 = vld [vmem:[#allocation2 + $0x207] sm:$0xff]  ;;  %v4052_v36 = vld [vmem:[#allocation2 + $0x20f] sm:$0xff] }
 0x455   : > { %v4191_v27 = vadd.f32 %v4107_v38, %v3996_v10  ;;  %v7602_v38 = vld [vmem:[#allocation2 + $0x209] sm:$0xff]  ;;  %v5331_v10 = vld [vmem:[#allocation2] sm:$0xff] }
 0x456   : > { %4351 = vmatmul.f32.gmra.mxu0 %v7390_v43  ;;  %v4047_v43 = vld [vmem:[#allocation2 + $0x1c7] sm:$0xff] }
 0x457   : > { %3962 = vmatmul.f32.gmra.mxu2 %v7547_v9  ;;  %v7551_v48 = vadd.f32 %v4301_v41, %v4191_v27  ;;  %v7608_v41 = vld [vmem:[#allocation2 + $0x211] sm:$0xff] }
 0x458   : > { %4157 = vmatmul.f32.gmra.mxu3 %v4046_v21  ;;  %v7553_v20 = vpop.f32.mrf.mxu1 }
 0x45a   : > { %v3915_v13 = vpop.f32.mrf.mxu2 }
 0x45b   : > { %v3997_v39 = vadd.f32 %v3915_v13, %v3803_v33  ;;  %4497 = vmatmul.f32.gmra.mxu1 %v7380_v8  ;;  %v4110_v58 = vpop.f32.mrf.mxu3  ;;  %v4048_v8 = vld [vmem:[#allocation2 + $0x1cf] sm:$0xff] }
 0x45d   : > { %v4192_v52 = vadd.f32 %v4110_v58, %v3997_v39 }
 0x45e   : > { %4354 = vmatmul.f32.gmra.mxu0 %v7403_v17  ;;  %v7574_v17 = vld [vmem:[#allocation2 + $0x1c9] sm:$0xff] }
 0x45f   : > { %3965 = vmatmul.f32.gmra.mxu2 %v7558_v22  ;;  %v7562_v5 = vadd.f32 %v4304_v59, %v4192_v52 }
 0x460   : > { %4160 = vmatmul.f32.gmra.mxu3 %v4047_v43  ;;  %v7564_v12 = vpop.f32.mrf.mxu1 }
 0x463   : > { %4500 = vmatmul.f32.gmra.mxu1 %v7393_v34  ;;  %v4113_v58 = vpop.f32.mrf.mxu3 }
 0x466   : > { %4357 = vmatmul.f32.gmra.mxu0 %v7416_v7  ;;  %v7581_v7 = vld [vmem:[#allocation2 + $0x1d1] sm:$0xff] }
 0x467   : > { %3968 = vmatmul.f32.gmra.mxu2 %v7567_v16 }
 0x468   : > { %4163 = vmatmul.f32.gmra.mxu3 %v4048_v8  ;;  %v7571_v44 = vpop.f32.mrf.mxu1 }
 0x46b   : > { %4503 = vmatmul.f32.gmra.mxu1 %v7406_v51  ;;  %v4116_v8 = vpop.f32.mrf.mxu3 }
 0x46e   : > { %4360 = vmatmul.f32.gmra.mxu0 %v7431_v53  ;;  %v7588_v53 = vld [vmem:[#allocation2 + $0x1e9] sm:$0xff] }
 0x46f   : > { %3971 = vmatmul.f32.gmra.mxu2 %v7574_v17 }
 0x470   : > { %4166 = vmatmul.f32.gmra.mxu3 %v4049_v35  ;;  %v7578_v34 = vpop.f32.mrf.mxu1 }
 0x473   : > { %4506 = vmatmul.f32.gmra.mxu1 %v7419_v29 }
 0x476   : > { %4363 = vmatmul.f32.gmra.mxu0 %v7443_v14  ;;  %v7595_v14 = vld [vmem:[#allocation2 + $0x1f1] sm:$0xff] }
 0x477   : > { %3974 = vmatmul.f32.gmra.mxu2 %v7581_v7 }
 0x478   : > { %4169 = vmatmul.f32.gmra.mxu3 %v4050_v32  ;;  %v7585_v51 = vpop.f32.mrf.mxu1 }
 0x47b   : > { %4509 = vmatmul.f32.gmra.mxu1 %v7434_v31 }
 0x47e   : > { %4366 = vmatmul.f32.gmra.mxu0 %v7455_v40  ;;  %v4053_v40 = vld [vmem:[#allocation2 + $0x227] sm:$0xff] }
 0x47f   : > { %3977 = vmatmul.f32.gmra.mxu2 %v7588_v53 }
 0x480   : > { %4172 = vmatmul.f32.gmra.mxu3 %v4051_v54  ;;  %v7592_v29 = vpop.f32.mrf.mxu1 }
 0x483   : > { %4512 = vmatmul.f32.gmra.mxu1 %v7446_v46 }
 0x486   : > { %4369 = vmatmul.f32.gmra.mxu0 %v7467_v63  ;;  %v4054_v63 = vld [vmem:[#allocation2 + $0x22f] sm:$0xff] }
 0x487   : > { %3980 = vmatmul.f32.gmra.mxu2 %v7595_v14 }
 0x488   : > { %4175 = vmatmul.f32.gmra.mxu3 %v4052_v36  ;;  %v7599_v31 = vpop.f32.mrf.mxu1  ;;  %v4119_v36 = vpop.f32.mrf.mxu3 }
 0x48b   : > { %4515 = vmatmul.f32.gmra.mxu1 %v7458_v60 }
 0x48e   : > { %4372 = vmatmul.f32.gmra.mxu0 %v5331_v10 }
 0x48f   : > { %3983 = vmatmul.f32.gmra.mxu2 %v7602_v38 }
 0x490   : > { %4178 = vmatmul.f32.gmra.mxu3 %v4053_v40  ;;  %v7605_v46 = vpop.f32.mrf.mxu1 }
 0x493   : > { %4518 = vmatmul.f32.gmra.mxu1 %v7470_v3  ;;  %v3918_v3 = vpop.f32.mrf.mxu2 }
 0x496   : > { %4375 = vmatmul.f32.gmra.mxu0 %v5331_v10 }
 0x497   : > { %3986 = vmatmul.f32.gmra.mxu2 %v7608_v41 }
 0x498   : > { %4181 = vmatmul.f32.gmra.mxu3 %v4054_v63  ;;  %v7611_v60 = vpop.f32.mrf.mxu1 }
 0x49b   : > { %4521 = vmatmul.f32.gmra.mxu1 %v7481_v2  ;;  %v3921_v52 = vpop.f32.mrf.mxu2 }
 0x4a0   : > { %v4477_v27 = vpop.f32.mrf.mxu1 }
 0x4a1   : > { %v4573_v21 = vadd.f32 %v4477_v27, %v7485_v61  ;;  %v4307_v61 = vpop.f32.mrf.mxu0 }
 0x4a3   : > { %v4605_v33 = vmax.f32 %v4573_v21, 0.0  ;;  %4524 = vmatmul.f32.gmra.mxu1 %v7492_v19  ;;  %v3924_v54 = vpop.f32.mrf.mxu2  ;;  %v4122_v21 = vpop.f32.mrf.mxu3 }
 0x4a5   : > { %4637 = vst [vmem:[%s7619_s11] sm:$0xff] %v4605_v33 }
 0x4a8   : > { %v4480_v13 = vpop.f32.mrf.mxu1 }
 0x4a9   : > { %v4574_v39 = vadd.f32 %v4480_v13, %v7496_v42  ;;  %v4310_v32 = vpop.f32.mrf.mxu0 }
 0x4ab   : > { %v4606_v2 = vmax.f32 %v4574_v39, 0.0  ;;  %4527 = vmatmul.f32.gmra.mxu1 %v7503_v26 }
 0x4ad   : > { %4638 = vst [vmem:[%s7619_s11 + $0x8] sm:$0xff] %v4606_v2 }
 0x4b0   : > { %v4483_v59 = vpop.f32.mrf.mxu1 }
 0x4b1   : > { %v4575_v19 = vadd.f32 %v4483_v59, %v7507_v23  ;;  %v4313_v10 = vpop.f32.mrf.mxu0  ;;  %v3804_v59 = vadd.f32 %v7373_v47, %v7190_v45 }
 0x4b3   : > { %v4607_v43 = vmax.f32 %v4575_v19, 0.0  ;;  %4530 = vmatmul.f32.gmra.mxu1 %v7514_v62  ;;  %v3927_v62 = vpop.f32.mrf.mxu2 }
 0x4b5   : > { %4639 = vst [vmem:[%s7619_s11 + $0x10] sm:$0xff] %v4607_v43 }
 0x4b8   : > { %v4486_v35 = vpop.f32.mrf.mxu1 }
 0x4b9   : > { %v4576_v42 = vadd.f32 %v4486_v35, %v7518_v18 }
 0x4bb   : > { %v4608_v26 = vmax.f32 %v4576_v42, 0.0  ;;  %4533 = vmatmul.f32.gmra.mxu1 %v7525_v56  ;;  %v4316_v56 = vpop.f32.mrf.mxu0  ;;  %v3930_v13 = vpop.f32.mrf.mxu2 }
 0x4bd   : > { %4640 = vst [vmem:[%s7619_s11 + $0x18] sm:$0xff] %v4608_v26 }
 0x4c0   : > { %v4489_v40 = vpop.f32.mrf.mxu1 }
 0x4c1   : > { %v4577_v23 = vadd.f32 %v4489_v40, %v7529_v28 }
 0x4c3   : > { %v4609_v63 = vmax.f32 %v4577_v23, 0.0  ;;  %4536 = vmatmul.f32.gmra.mxu1 %v7536_v49  ;;  %v4125_v49 = vpop.f32.mrf.mxu3  ;;  %v4319_v19 = vpop.f32.mrf.mxu0 }
 0x4c4   : > { %v3933_v43 = vpop.f32.mrf.mxu2 }
 0x4c5   : > { %4641 = vst [vmem:[%s7619_s11 + $0x20] sm:$0xff] %v4609_v63 }
 0x4c8   : > { %v4492_v27 = vpop.f32.mrf.mxu1 }
 0x4c9   : > { %v4578_v18 = vadd.f32 %v4492_v27, %v7540_v55  ;;  %v3998_v55 = vadd.f32 %v3918_v3, %v3804_v59  ;;  %v7971_v59 = vld [vmem:[#allocation20_spill] sm:$0xff] }
 0x4cb   : > { %v4610_v33 = vmax.f32 %v4578_v18, 0.0  ;;  %4539 = vmatmul.f32.gmra.mxu1 %v7547_v9  ;;  %v4193_v42 = vadd.f32 %v4113_v58, %v3998_v55  ;;  %v4322_v47 = vpop.f32.mrf.mxu0  ;;  %v7970_v58 = vld [vmem:[#allocation39_spill] sm:$0xff]  ;;  %v7972_v55 = vld [vmem:[#allocation41_spill] sm:$0xff] }
 0x4cc   : > { %v3936_v63 = vpop.f32.mrf.mxu2 }
 0x4cd   : > { %4642 = vst [vmem:[%s7619_s11 + $0x28] sm:$0xff] %v4610_v33  ;;  %v4387_v23 = vadd.f32 %v4307_v61, %v4193_v42 }
 0x4d0   : > { %v4495_v39 = vpop.f32.mrf.mxu1 }
 0x4d1   : > { %v4579_v28 = vadd.f32 %v4495_v39, %v7551_v48  ;;  %v3805_v48 = vadd.f32 %v7386_v25, %v7202_v4 }
 0x4d3   : > { %v4611_v2 = vmax.f32 %v4579_v28, 0.0  ;;  %4542 = vmatmul.f32.gmra.mxu1 %v7558_v22  ;;  %v4128_v22 = vpop.f32.mrf.mxu3  ;;  %v3999_v40 = vadd.f32 %v3921_v52, %v3805_v48  ;;  %v4325_v61 = vpop.f32.mrf.mxu0 }
 0x4d5   : > { %4643 = vst [vmem:[%s7619_s11 + $0x30] sm:$0xff] %v4611_v2  ;;  %v4194_v27 = vadd.f32 %v4116_v8, %v3999_v40  ;;  %v3939_v8 = vpop.f32.mrf.mxu2  ;;  %v7974_v40 = vld [vmem:[#allocation40_spill] sm:$0xff] }
 0x4d7   : > { %v4388_v39 = vadd.f32 %v4310_v32, %v4194_v27 }
 0x4d8   : > { %v4498_v35 = vpop.f32.mrf.mxu1 }
 0x4d9   : > { %v4580_v9 = vadd.f32 %v4498_v35, %v7562_v5  ;;  %v7969_v5 = vld [vmem:[#allocation23_spill] sm:$0xff]  ;;  %v3807_v35 = vadd.f32 %v7972_v55, %v7971_v59  ;;  %v7978_v59 = vld [vmem:[#allocation10_spill] sm:$0xff] }
 0x4da   : > { %v3806_v33 = vadd.f32 %v7970_v58, %v7969_v5  ;;  %v7975_v58 = vld [vmem:[#allocation22_spill] sm:$0xff] }
 0x4db   : > { %v4612_v26 = vmax.f32 %v4580_v9, 0.0  ;;  %4545 = vmatmul.f32.gmra.mxu1 %v7567_v16  ;;  %v4131_v4 = vpop.f32.mrf.mxu3 }
 0x4dc   : > { %v4000_v16 = vadd.f32 %v3924_v54, %v3806_v33  ;;  %v7976_v33 = vld [vmem:[#allocation43_spill] sm:$0xff] }
 0x4dd   : > { %4644 = vst [vmem:[%s7619_s11 + $0x38] sm:$0xff] %v4612_v26 }
 0x4de   : > { %v4195_v52 = vadd.f32 %v4119_v36, %v4000_v16  ;;  %v7973_v36 = vld [vmem:[#allocation25_spill] sm:$0xff]  ;;  %v3809_v16 = vadd.f32 %v7976_v33, %v7975_v58  ;;  %v4442_v58 = vld [vmem:[#allocation2 + $0x231] sm:$0xff] }
 0x4e0   : > { %v4501_v45 = vpop.f32.mrf.mxu1  ;;  %v4389_v9 = vadd.f32 %v4313_v10, %v4195_v52 }
 0x4e1   : > { %v4581_v3 = vadd.f32 %v4501_v45, %v4387_v23  ;;  %v3808_v23 = vadd.f32 %v7974_v40, %v7973_v36  ;;  %v4328_v45 = vpop.f32.mrf.mxu0 }
 0x4e3   : > { %v4613_v18 = vmax.f32 %v4581_v3, 0.0  ;;  %4548 = vmatmul.f32.gmra.mxu1 %v7574_v17  ;;  %v4001_v17 = vadd.f32 %v3927_v62, %v3807_v35  ;;  %v4134_v54 = vpop.f32.mrf.mxu3  ;;  %v4002_v3 = vadd.f32 %v3930_v13, %v3808_v23 }
 0x4e5   : > { %4645 = vst [vmem:[%s7619_s11 + $0x40] sm:$0xff] %v4613_v18  ;;  %v4196_v32 = vadd.f32 %v4122_v21, %v4001_v17  ;;  %v4197_v62 = vadd.f32 %v4125_v49, %v4002_v3  ;;  %v7977_v49 = vld [vmem:[#allocation27_spill] sm:$0xff] }
 0x4e6   : > { %v3810_v55 = vadd.f32 %v7978_v59, %v7977_v49  ;;  %v4441_v3 = vld [vmem:[#allocation2 + $0x229] sm:$0xff] }
 0x4e7   : > { %v4390_v27 = vadd.f32 %v4316_v56, %v4196_v32  ;;  %v7982_v59 = vld [vmem:[#allocation31_spill] sm:$0xff] }
 0x4e8   : > { %v4504_v25 = vpop.f32.mrf.mxu1  ;;  %v4004_v35 = vadd.f32 %v3936_v63, %v3810_v55  ;;  %v3814_v55 = vadd.f32 %v7498_v15, %v7982_v59  ;;  %v7987_v59 = vld [vmem:[#allocation32_spill] sm:$0xff] }
 0x4e9   : > { %v4582_v28 = vadd.f32 %v4504_v25, %v4388_v39  ;;  %v4331_v39 = vpop.f32.mrf.mxu0  ;;  %v4391_v25 = vadd.f32 %v4319_v19, %v4197_v62 }
 0x4ea   : > { %v4199_v19 = vadd.f32 %v4131_v4, %v4004_v35 }
 0x4eb   : > { %v4614_v2 = vmax.f32 %v4582_v28, 0.0  ;;  %4551 = vmatmul.f32.gmra.mxu1 %v7581_v7  ;;  %v3942_v7 = vpop.f32.mrf.mxu2  ;;  %v4137_v21 = vpop.f32.mrf.mxu3 }
 0x4ec   : > { %v4393_v36 = vadd.f32 %v4325_v61, %v4199_v19 }
 0x4ed   : > { %4646 = vst [vmem:[%s7619_s11 + $0x48] sm:$0xff] %v4614_v2 }
 0x4f0   : > { %v4507_v42 = vpop.f32.mrf.mxu1 }
 0x4f1   : > { %v4583_v26 = vadd.f32 %v4507_v42, %v4389_v9  ;;  %v4334_v42 = vpop.f32.mrf.mxu0 }
 0x4f3   : > { %v4615_v48 = vmax.f32 %v4583_v26, 0.0  ;;  %4554 = vmatmul.f32.gmra.mxu1 %v7588_v53  ;;  %v4003_v53 = vadd.f32 %v3933_v43, %v3809_v16  ;;  %v3945_v28 = vpop.f32.mrf.mxu2 }
 0x4f5   : > { %4647 = vst [vmem:[%s7619_s11 + $0x50] sm:$0xff] %v4615_v48  ;;  %v4198_v13 = vadd.f32 %v4128_v22, %v4003_v53  ;;  %v7979_v22 = vld [vmem:[#allocation24_spill] sm:$0xff] }
 0x4f6   : > { %v3811_v48 = vadd.f32 %v7464_v6, %v7979_v22 }
 0x4f7   : > { %v4392_v17 = vadd.f32 %v4322_v47, %v4198_v13 }
 0x4f8   : > { %v4510_v18 = vpop.f32.mrf.mxu1 }
 0x4f9   : > { %v4584_v5 = vadd.f32 %v4510_v18, %v4390_v27  ;;  %v4337_v27 = vpop.f32.mrf.mxu0 }
 0x4fb   : > { %v4616_v10 = vmax.f32 %v4584_v5, 0.0  ;;  %4557 = vmatmul.f32.gmra.mxu1 %v7595_v14  ;;  %v4140_v14 = vpop.f32.mrf.mxu3  ;;  %v3948_v26 = vpop.f32.mrf.mxu2  ;;  %v7980_v5 = vld [vmem:[#allocation29_spill] sm:$0xff] }
 0x4fc   : > { %v3812_v62 = vadd.f32 %v7476_v24, %v7980_v5 }
 0x4fd   : > { %4648 = vst [vmem:[%s7619_s11 + $0x58] sm:$0xff] %v4616_v10 }
 0x500   : > { %v4513_v52 = vpop.f32.mrf.mxu1 }
 0x501   : > { %v4585_v2 = vadd.f32 %v4513_v52, %v4391_v25  ;;  %v4340_v25 = vpop.f32.mrf.mxu0 }
 0x503   : > { %v4617_v56 = vmax.f32 %v4585_v2, 0.0  ;;  %4560 = vmatmul.f32.gmra.mxu1 %v7602_v38  ;;  %v4005_v38 = vadd.f32 %v3939_v8, %v3811_v48  ;;  %v4143_v40 = vpop.f32.mrf.mxu3  ;;  %v3951_v4 = vpop.f32.mrf.mxu2 }
 0x505   : > { %4649 = vst [vmem:[%s7619_s11 + $0x60] sm:$0xff] %v4617_v56  ;;  %v4200_v47 = vadd.f32 %v4134_v54, %v4005_v38  ;;  %v7981_v54 = vld [vmem:[#allocation26_spill] sm:$0xff] }
 0x506   : > { %v3813_v53 = vadd.f32 %v7487_v57, %v7981_v54 }
 0x507   : > { %v4394_v10 = vadd.f32 %v4328_v45, %v4200_v47 }
 0x508   : > { %v4516_v9 = vpop.f32.mrf.mxu1  ;;  %v4007_v2 = vadd.f32 %v3945_v28, %v3813_v53  ;;  %v7986_v53 = vld [vmem:[#allocation35_spill] sm:$0xff] }
 0x509   : > { %v4586_v43 = vadd.f32 %v4516_v9, %v4392_v17  ;;  %v4343_v35 = vpop.f32.mrf.mxu0 }
 0x50a   : > { %v4202_v45 = vadd.f32 %v4140_v14, %v4007_v2 }
 0x50b   : > { %v4618_v32 = vmax.f32 %v4586_v43, 0.0  ;;  %4563 = vmatmul.f32.gmra.mxu1 %v7608_v41  ;;  %v4006_v41 = vadd.f32 %v3942_v7, %v3812_v62  ;;  %v4146_v61 = vpop.f32.mrf.mxu3  ;;  %v3954_v52 = vpop.f32.mrf.mxu2 }
 0x50c   : > { %v4396_v17 = vadd.f32 %v4334_v42, %v4202_v45 }
 0x50d   : > { %4650 = vst [vmem:[%s7619_s11 + $0x68] sm:$0xff] %v4618_v32  ;;  %v4201_v33 = vadd.f32 %v4137_v21, %v4006_v41  ;;  %v4008_v21 = vadd.f32 %v3948_v26, %v3814_v55  ;;  %v3819_v55 = vadd.f32 %v7553_v20, %v7987_v59 }
 0x50f   : > { %v4395_v13 = vadd.f32 %v4331_v39, %v4201_v33  ;;  %v4203_v19 = vadd.f32 %v4143_v40, %v4008_v21  ;;  %v7983_v39 = vld [vmem:[#allocation28_spill] sm:$0xff] }
 0x510   : > { %v4519_v23 = vpop.f32.mrf.mxu1  ;;  %v3815_v32 = vadd.f32 %v7509_v0, %v7983_v39 }
 0x511   : > { %v4587_v63 = vadd.f32 %v4519_v23, %v4393_v36  ;;  %v4397_v48 = vadd.f32 %v4337_v27, %v4203_v19  ;;  %v4346_v36 = vpop.f32.mrf.mxu0 }
 0x512   : > { %v4009_v22 = vadd.f32 %v3951_v4, %v3815_v32 }
 0x513   : > { %v4619_v18 = vmax.f32 %v4587_v63, 0.0  ;;  %4566 = vmatmul.f32.gmra.mxu1 %v4441_v3  ;;  %v4149_v49 = vpop.f32.mrf.mxu3  ;;  %v3957_v9 = vpop.f32.mrf.mxu2  ;;  %v7984_v3 = vld [vmem:[#allocation33_spill] sm:$0xff] }
 0x514   : > { %v4204_v23 = vadd.f32 %v4146_v61, %v4009_v22  ;;  %v3816_v63 = vadd.f32 %v7520_v30, %v7984_v3 }
 0x515   : > { %4651 = vst [vmem:[%s7619_s11 + $0x70] sm:$0xff] %v4619_v18 }
 0x516   : > { %v4010_v40 = vadd.f32 %v3954_v52, %v3816_v63  ;;  %v4398_v47 = vadd.f32 %v4340_v25, %v4204_v23  ;;  %v3818_v25 = vadd.f32 %v7542_v50, %v7986_v53  ;;  %v7989_v23 = vld [vmem:[#allocation34_spill] sm:$0xff] }
 0x518   : > { %v4522_v6 = vpop.f32.mrf.mxu1  ;;  %v4205_v62 = vadd.f32 %v4149_v49, %v4010_v40 }
 0x519   : > { %v4588_v8 = vadd.f32 %v4522_v6, %v4394_v10  ;;  %v4349_v4 = vpop.f32.mrf.mxu0  ;;  %v7985_v10 = vld [vmem:[#allocation30_spill] sm:$0xff] }
 0x51a   : > { %v3817_v6 = vadd.f32 %v7531_v11, %v7985_v10 }
 0x51b   : > { %v4620_v16 = vmax.f32 %v4588_v8, 0.0  ;;  %4569 = vmatmul.f32.gmra.mxu1 %v4442_v58  ;;  %v4152_v14 = vpop.f32.mrf.mxu3  ;;  %v3960_v26 = vpop.f32.mrf.mxu2  ;;  %v4399_v8 = vadd.f32 %v4343_v35, %v4205_v62 }
 0x51c   : > { %v4011_v58 = vadd.f32 %v3957_v9, %v3817_v6 }
 0x51d   : > { %4652 = vst [vmem:[%s7619_s11 + $0x78] sm:$0xff] %v4620_v16 }
 0x51e   : > { %v4206_v16 = vadd.f32 %v4152_v14, %v4011_v58 }
 0x520   : > { %v4525_v24 = vpop.f32.mrf.mxu1 }
 0x521   : > { %v4589_v7 = vadd.f32 %v4525_v24, %v4395_v13  ;;  %v4352_v52 = vpop.f32.mrf.mxu0  ;;  %v4012_v13 = vadd.f32 %v3960_v26, %v3818_v25  ;;  %v4400_v24 = vadd.f32 %v4346_v36, %v4206_v16 }
 0x523   : > { %v4621_v56 = vmax.f32 %v4589_v7, 0.0  ;;  %v4155_v18 = vpop.f32.mrf.mxu3  ;;  %v3963_v41 = vpop.f32.mrf.mxu2 }
 0x524   : > { %v4207_v45 = vadd.f32 %v4155_v18, %v4012_v13  ;;  %v4013_v21 = vadd.f32 %v3963_v41, %v3819_v55 }
 0x525   : > { %4653 = vst [vmem:[%s7619_s11 + $0x80] sm:$0xff] %v4621_v56 }
 0x528   : > { %v4528_v57 = vpop.f32.mrf.mxu1 }
 0x529   : > { %v4590_v43 = vadd.f32 %v4528_v57, %v4396_v17  ;;  %v4355_v35 = vpop.f32.mrf.mxu0  ;;  %v4401_v17 = vadd.f32 %v4349_v4, %v4207_v45  ;;  %v7990_v4 = vld [vmem:[#allocation36_spill] sm:$0xff] }
 0x52b   : > { %v4622_v28 = vmax.f32 %v4590_v43, 0.0  ;;  %v4158_v30 = vpop.f32.mrf.mxu3  ;;  %v3966_v2 = vpop.f32.mrf.mxu2 }
 0x52c   : > { %v4208_v43 = vadd.f32 %v4158_v30, %v4013_v21 }
 0x52d   : > { %4654 = vst [vmem:[%s7619_s11 + $0x88] sm:$0xff] %v4622_v28  ;;  %v7988_v28 = vld [vmem:[#allocation37_spill] sm:$0xff] }
 0x52e   : > { %v3820_v39 = vadd.f32 %v7564_v12, %v7988_v28  ;;  %v4402_v22 = vadd.f32 %v4352_v52, %v4208_v43 }
 0x530   : > { %v4531_v38 = vpop.f32.mrf.mxu1  ;;  %v4014_v14 = vadd.f32 %v3966_v2, %v3820_v39 }
 0x531   : > { %v4591_v15 = vadd.f32 %v4531_v38, %v4397_v48  ;;  %v4358_v38 = vpop.f32.mrf.mxu0 }
 0x533   : > { %v4623_v42 = vmax.f32 %v4591_v15, 0.0  ;;  %v4161_v49 = vpop.f32.mrf.mxu3  ;;  %v3969_v9 = vpop.f32.mrf.mxu2 }
 0x534   : > { %v4209_v15 = vadd.f32 %v4161_v49, %v4014_v14 }
 0x535   : > { %4655 = vst [vmem:[%s7619_s11 + $0x90] sm:$0xff] %v4623_v42  ;;  %v3821_v42 = vadd.f32 %v7571_v44, %v7989_v23 }
 0x536   : > { %v4403_v63 = vadd.f32 %v4355_v35, %v4209_v15 }
 0x537   : > { %v4015_v3 = vadd.f32 %v3969_v9, %v3821_v42 }
 0x538   : > { %v4534_v5 = vpop.f32.mrf.mxu1 }
 0x539   : > { %v4592_v0 = vadd.f32 %v4534_v5, %v4398_v47  ;;  %v4361_v5 = vpop.f32.mrf.mxu0 }
 0x53b   : > { %v4624_v27 = vmax.f32 %v4592_v0, 0.0  ;;  %v4164_v32 = vpop.f32.mrf.mxu3  ;;  %v3972_v36 = vpop.f32.mrf.mxu2 }
 0x53c   : > { %v4210_v18 = vadd.f32 %v4164_v32, %v4015_v3  ;;  %v3827_v3 = vadd.f32 %v7611_v60, %v7474_v37 }
 0x53d   : > { %4656 = vst [vmem:[%s7619_s11 + $0x98] sm:$0xff] %v4624_v27  ;;  %v3822_v27 = vadd.f32 %v7578_v34, %v7990_v4 }
 0x53e   : > { %v4404_v10 = vadd.f32 %v4358_v38, %v4210_v18 }
 0x53f   : > { %v4016_v41 = vadd.f32 %v3972_v36, %v3822_v27 }
 0x540   : > { %v4537_v61 = vpop.f32.mrf.mxu1 }
 0x541   : > { %v4593_v33 = vadd.f32 %v4537_v61, %v4399_v8  ;;  %v4364_v16 = vpop.f32.mrf.mxu0 }
 0x543   : > { %v4625_v54 = vmax.f32 %v4593_v33, 0.0  ;;  %v4167_v40 = vpop.f32.mrf.mxu3  ;;  %v3975_v62 = vpop.f32.mrf.mxu2  ;;  %v7991_v33 = vld [vmem:[#allocation38_spill] sm:$0xff] }
 0x544   : > { %v4211_v8 = vadd.f32 %v4167_v40, %v4016_v41  ;;  %v3823_v30 = vadd.f32 %v7585_v51, %v7991_v33 }
 0x545   : > { %4657 = vst [vmem:[%s7619_s11 + $0xa0] sm:$0xff] %v4625_v54 }
 0x546   : > { %v4017_v53 = vadd.f32 %v3975_v62, %v3823_v30  ;;  %v4405_v25 = vadd.f32 %v4361_v5, %v4211_v8 }
 0x548   : > { %v4540_v7 = vpop.f32.mrf.mxu1 }
 0x549   : > { %v4594_v11 = vadd.f32 %v4540_v7, %v4400_v24  ;;  %v7992_v7 = vld [vmem:[#allocation42_spill] sm:$0xff]  ;;  %v4367_v45 = vpop.f32.mrf.mxu0 }
 0x54b   : > { %v4626_v56 = vmax.f32 %v4594_v11, 0.0  ;;  %v4170_v44 = vpop.f32.mrf.mxu3  ;;  %v3978_v54 = vpop.f32.mrf.mxu2  ;;  %v3824_v11 = vadd.f32 %v7592_v29, %v7992_v7 }
 0x54c   : > { %v4212_v2 = vadd.f32 %v4170_v44, %v4017_v53 }
 0x54d   : > { %4658 = vst [vmem:[%s7619_s11 + $0xa8] sm:$0xff] %v4626_v56  ;;  %v4018_v56 = vadd.f32 %v3978_v54, %v3824_v11 }
 0x54e   : > { %v4406_v49 = vadd.f32 %v4364_v16, %v4212_v2 }
 0x550   : > { %v4543_v50 = vpop.f32.mrf.mxu1 }
 0x551   : > { %v4595_v57 = vadd.f32 %v4543_v50, %v4401_v17  ;;  %v7993_v17 = vld [vmem:[#allocation45_spill] sm:$0xff]  ;;  %v4370_v29 = vpop.f32.mrf.mxu0 }
 0x552   : > { %v3825_v9 = vadd.f32 %v7599_v31, %v7993_v17 }
 0x553   : > { %v4627_v19 = vmax.f32 %v4595_v57, 0.0  ;;  %v4173_v24 = vpop.f32.mrf.mxu3  ;;  %v3981_v59 = vpop.f32.mrf.mxu2 }
 0x554   : > { %v4213_v21 = vadd.f32 %v4173_v24, %v4018_v56  ;;  %v4019_v57 = vadd.f32 %v3981_v59, %v3825_v9 }
 0x555   : > { %4659 = vst [vmem:[%s7619_s11 + $0xb0] sm:$0xff] %v4627_v19 }
 0x556   : > { %v4407_v43 = vadd.f32 %v4367_v45, %v4213_v21 }
 0x558   : > { %v4546_v48 = vpop.f32.mrf.mxu1 }
 0x559   : > { %v4596_v20 = vadd.f32 %v4546_v48, %v4402_v22  ;;  %v3826_v22 = vadd.f32 %v7605_v46, %v7462_v1  ;;  %v4373_v15 = vpop.f32.mrf.mxu0 }
 0x55b   : > { %v4628_v26 = vmax.f32 %v4596_v20, 0.0  ;;  %v4176_v50 = vpop.f32.mrf.mxu3  ;;  %v3984_v39 = vpop.f32.mrf.mxu2 }
 0x55c   : > { %v4214_v32 = vadd.f32 %v4176_v50, %v4019_v57  ;;  %v4020_v38 = vadd.f32 %v3984_v39, %v3826_v22 }
 0x55d   : > { %4660 = vst [vmem:[%s7619_s11 + $0xb8] sm:$0xff] %v4628_v26 }
 0x55e   : > { %v4408_v20 = vadd.f32 %v4370_v29, %v4214_v32 }
 0x560   : > { %v4549_v47 = vpop.f32.mrf.mxu1 }
 0x561   : > { %v4597_v12 = vadd.f32 %v4549_v47, %v4403_v63  ;;  %v4376_v5 = vpop.f32.mrf.mxu0 }
 0x563   : > { %v4629_v0 = vmax.f32 %v4597_v12, 0.0  ;;  %v4179_v48 = vpop.f32.mrf.mxu3  ;;  %v3987_v42 = vpop.f32.mrf.mxu2 }
 0x564   : > { %v4215_v26 = vadd.f32 %v4179_v48, %v4020_v38  ;;  %v4021_v40 = vadd.f32 %v3987_v42, %v3827_v3 }
 0x565   : > { %4661 = vst [vmem:[%s7619_s11 + $0xc0] sm:$0xff] %v4629_v0 }
 0x566   : > { %v4409_v63 = vadd.f32 %v4373_v15, %v4215_v26 }
 0x568   : > { %v4552_v6 = vpop.f32.mrf.mxu1 }
 0x569   : > { %v4598_v58 = vadd.f32 %v4552_v6, %v4404_v10 }
 0x56b   : > { %v4630_v61 = vmax.f32 %v4598_v58, 0.0  ;;  %v4182_v1 = vpop.f32.mrf.mxu3 }
 0x56c   : > { %v4216_v12 = vadd.f32 %v4182_v1, %v4021_v40 }
 0x56d   : > { %4662 = vst [vmem:[%s7619_s11 + $0xc8] sm:$0xff] %v4630_v61 }
 0x56e   : > { %v4410_v0 = vadd.f32 %v4376_v5, %v4216_v12 }
 0x570   : > { %v4555_v52 = vpop.f32.mrf.mxu1 }
 0x571   : > { %v4599_v34 = vadd.f32 %v4555_v52, %v4405_v25 }
 0x573   : > { %v4631_v13 = vmax.f32 %v4599_v34, 0.0 }
 0x575   : > { %4663 = vst [vmem:[%s7619_s11 + $0xd0] sm:$0xff] %v4631_v13 }
 0x578   : > { %v4558_v51 = vpop.f32.mrf.mxu1 }
 0x579   : > { %v4600_v55 = vadd.f32 %v4558_v51, %v4406_v49 }
 0x57b   : > { %v4632_v35 = vmax.f32 %v4600_v55, 0.0 }
 0x57d   : > { %4664 = vst [vmem:[%s7619_s11 + $0xd8] sm:$0xff] %v4632_v35 }
 0x580   : > { %v4561_v19 = vpop.f32.mrf.mxu1 }
 0x581   : > { %v4601_v28 = vadd.f32 %v4561_v19, %v4407_v43 }
 0x583   : > { %v4633_v14 = vmax.f32 %v4601_v28, 0.0 }
 0x585   : > { %4665 = vst [vmem:[%s7619_s11 + $0xe0] sm:$0xff] %v4633_v14 }
 0x588   : > { %v4564_v31 = vpop.f32.mrf.mxu1 }
 0x589   : > { %v4602_v36 = vadd.f32 %v4564_v31, %v4408_v20 }
 0x58b   : > { %v4634_v23 = vmax.f32 %v4602_v36, 0.0 }
 0x58d   : > { %4666 = vst [vmem:[%s7619_s11 + $0xe8] sm:$0xff] %v4634_v23 }
 0x590   : > { %v4567_v46 = vpop.f32.mrf.mxu1 }
 0x591   : > { %v4603_v47 = vadd.f32 %v4567_v46, %v4409_v63 }
 0x593   : > { %v4635_v18 = vmax.f32 %v4603_v47, 0.0 }
 0x595   : > { %4667 = vst [vmem:[%s7619_s11 + $0xf0] sm:$0xff] %v4635_v18 }
 0x598   : > { %v4570_v37 = vpop.f32.mrf.mxu1 }
 0x599   : > { %v4604_v60 = vadd.f32 %v4570_v37, %v4410_v0 }
 0x59b   : > { %v4636_v62 = vmax.f32 %v4604_v60, 0.0 }
 0x59d   : > { %4668 = vst [vmem:[%s7619_s11 + $0xf8] sm:$0xff] %v4636_v62 }
 0x59e   : > { %5389 = shalt.err (!%p5386_p8)
}
 0x59f   : > { %s5434_s9 = smov 128   ;;  %s5435_s10 = smov 8  }
 0x5a0   : > { %5277 = dma.vmem_to_hbm [thread:$0]  (%p5504_p5), %s4683_s17, 4096, %s4685_s23, %s4670_s22, %s5434_s9, %s5434_s9, %s5435_s10  }
 0x5a1 PF: > { %p5289_p9 = scmp.ge.s32.totalorder %s5428_s21, 2  ;;  %s4699_s11 = sand.u32 1, %s5416_s18  }
 0x5a2   : > { %s4700_s12 = scalar_lea.sflag [#allocation5], %s4699_s11 }
 0x5a3   : > { %p5284_p10 = pnand %p5289_p9, %p5508_p6 }
 0x5a5   : > { %p5285_p11 = pneg %p5284_p10 }
 0x5a7   : > { %5411 = dma.done.wait (%p5285_p11), %s4700_s12, 4096  }
 0x5a8   : > { %5413 = vsyncadd (%p5285_p11), %s4700_s12, 4294963200  ;;  %p16_p12 = scmp.ge.s32.totalorder %s5491_s24, 4   ;;  %s7994_s18 = smov %s5420_s19 }
 0x5a9   : > { %s7995_s19 = smov %s5424_s20  ;;  %s7996_s20 = smov %s5502_s27 }
 0x5aa   : > { %s7997_s21 = smov %s5491_s24  ;;  %18 = sbr.rel (!%p16_p12) target bundleno = 4 (0x4), region = 101 }
 0x5af   :  { %4706 = vsyncpa [#allocation4], 1 }
 0x5b0   :  { %4708 = vsyncpa [#allocation4 + $0x1], 1 }
 0x5b1   :  { %4709 = vsyncpa [#allocation5], 1 }
 0x5b2   :  { %4711 = vsyncpa [#allocation5 + $0x1], 1 }

</bundles_post_ra>
